<compile_context>
chip_gen: v7x
topology: tpu7x:2x2x1
jax: 0.10.0
libtpu: 0.0.40
codegen_flags: <defaults>
</compile_context>

<pallas_src>
import jax
import jax.numpy as jnp
from jax.experimental import pallas as pl
from jax.experimental.pallas import tpu as pltpu


def _round_up(n, m):
    return ((n + m - 1) // m) * m


# ----------------------------- Pallas kernel -------------------------------- #
def _make_litho_kernel(doses, steep, target, kxp, kyp, tm):
    """Grid = (row_tile i [parallel], optical kernel k [arbitrary reduction])."""
    n_out = len(doses)

    def kernel(sc_ref, mask_ref, fhri_ref, fwa_ref, fwb_ref, iwri_ref, ihblk_ref,
               kre_ref, kim_ref, *rest):
        out_refs = rest[:n_out]
        mcat_s, tblk_s, acc_s = rest[n_out:]
        k = pl.program_id(1)

        @pl.when(k == 0)
        def _():
            # maskFFT (norm='forward') restricted to the knx x kny corner freqs:
            #   [Ar; Ai]  = [Fh_re; Fh_im] @ mask                      (2*kxp, W)
            #   [Mr | Mi] = Ar @ [Fw_re|Fw_im] + Ai @ [-Fw_im|Fw_re]   (kxp, 2*kyp)
            a_ri = jnp.dot(fhri_ref[...], mask_ref[...],
                           preferred_element_type=jnp.float32,
                           precision=jax.lax.Precision.HIGHEST)
            ar, ai = a_ri[:kxp], a_ri[kxp:]
            mcat_s[...] = (
                jnp.dot(ar, fwa_ref[...], preferred_element_type=jnp.float32,
                        precision=jax.lax.Precision.HIGHEST)
                + jnp.dot(ai, fwb_ref[...], preferred_element_type=jnp.float32,
                          precision=jax.lax.Precision.HIGHEST))
            acc_s[...] = jnp.zeros_like(acc_s)

        # _kernelMult: elementwise complex multiply with the reordered kernel k.
        mr, mi = mcat_s[:, :kyp], mcat_s[:, kyp:]
        kr, ki = kre_ref[0], kim_ref[0]
        tr = mr * kr - mi * ki
        ti = mr * ki + mi * kr

        # Real block matrix [[Tr, -Ti], [Ti, Tr]] for the fused complex matmul.
        tblk_s[:kxp, :kyp] = tr
        tblk_s[:kxp, kyp:] = -ti
        tblk_s[kxp:, :kyp] = ti
        tblk_s[kxp:, kyp:] = tr

        # IFFT2 (norm='forward', unnormalized) over the nonzero frequencies only,
        # as two fused real matmuls on stacked real/imag blocks (bf16 on the MXU).
        uri = jnp.dot(tblk_s[...].astype(jnp.bfloat16), iwri_ref[...],
                      preferred_element_type=jnp.float32)        # (2*kxp, W) = [Ur; Ui]
        tri = jnp.dot(ihblk_ref[0], uri.astype(jnp.bfloat16),
                      preferred_element_type=jnp.float32)        # (2*tm, W)  = [re; im]

        # aerial += scale_k * |tmp_k|^2  (re^2 and im^2 halves summed at the end)
        acc_s[...] += sc_ref[k] * (tri * tri)

        @pl.when(k == pl.num_programs(1) - 1)
        def _():
            aerial = acc_s[:tm, :] + acc_s[tm:, :]
            # aerial(dose) = dose^2 * aerial(1): one pass emits all doses.
            for dose, o_ref in zip(doses, out_refs):
                z = steep * ((dose * dose) * aerial - target)
                o_ref[...] = 1.0 / (1.0 + jnp.exp(-z))

    return kernel


# ------------------------------ host-side glue ------------------------------ #
def _build_dft_operands(H, W, knx, kny, kxp, kyp):
    """DFT matrices restricted to the corner-placed frequencies, zero-padded."""
    knxh, knyh = knx // 2, kny // 2
    rows = jnp.concatenate([jnp.arange(knxh + 1),
                            jnp.arange(H - knxh, H)]).astype(jnp.float32)   # (knx,)
    cols = jnp.concatenate([jnp.arange(knyh + 1),
                            jnp.arange(W - knyh, W)]).astype(jnp.float32)   # (kny,)
    x = jnp.arange(H, dtype=jnp.float32)
    y = jnp.arange(W, dtype=jnp.float32)

    # forward DFT, torch norm='forward' (1/(H*W)) folded in, selected rows only
    ang = 2.0 * jnp.pi * rows[:, None] * x[None, :] / H                     # (knx, H)
    fh_r = jnp.zeros((kxp, H), jnp.float32).at[:knx].set(jnp.cos(ang) / (H * W))
    fh_i = jnp.zeros((kxp, H), jnp.float32).at[:knx].set(-jnp.sin(ang) / (H * W))
    fhri = jnp.concatenate([fh_r, fh_i], axis=0)                            # (2*kxp, H)

    ang = 2.0 * jnp.pi * y[:, None] * cols[None, :] / W                     # (W, kny)
    fw_r = jnp.zeros((W, kyp), jnp.float32).at[:, :kny].set(jnp.cos(ang))
    fw_i = jnp.zeros((W, kyp), jnp.float32).at[:, :kny].set(-jnp.sin(ang))
    fwa = jnp.concatenate([fw_r, fw_i], axis=1)                             # (W, 2*kyp)
    fwb = jnp.concatenate([-fw_i, fw_r], axis=1)                            # (W, 2*kyp)

    # inverse DFT (norm='forward' => unnormalized), selected rows / cols only
    ang = 2.0 * jnp.pi * cols[:, None] * y[None, :] / W                     # (kny, W)
    iw_r = jnp.zeros((kyp, W), jnp.float32).at[:kny].set(jnp.cos(ang))
    iw_i = jnp.zeros((kyp, W), jnp.float32).at[:kny].set(jnp.sin(ang))
    iwri = jnp.concatenate([iw_r, iw_i], axis=0).astype(jnp.bfloat16)       # (2*kyp, W)

    ang = 2.0 * jnp.pi * x[:, None] * rows[None, :] / H                     # (H, knx)
    ih_r = jnp.zeros((H, kxp), jnp.float32).at[:, :knx].set(jnp.cos(ang))
    ih_i = jnp.zeros((H, kxp), jnp.float32).at[:, :knx].set(jnp.sin(ang))
    return fhri, fwa, fwb, iwri, ih_r, ih_i


def _build_ih_tiles(ih_r, ih_i, tm):
    """Per row-tile real block matrix [[Ih_r, -Ih_i], [Ih_i, Ih_r]]."""
    H, kxp = ih_r.shape
    nt = H // tm
    ih_r = ih_r.reshape(nt, tm, kxp)
    ih_i = ih_i.reshape(nt, tm, kxp)
    top = jnp.concatenate([ih_r, -ih_i], axis=2)
    bot = jnp.concatenate([ih_i, ih_r], axis=2)
    return jnp.concatenate([top, bot], axis=1).astype(jnp.bfloat16)   # (nt, 2*tm, 2*kxp)


def _reorder_kernels(kernels_c, kxp, kyp):
    """Corner-placed _kernelMult weights reordered to the selected frequency
    rows/cols and zero-padded to lane/sublane-friendly (K, kxp, kyp) planes."""
    kr = jnp.real(kernels_c).astype(jnp.float32)
    ki = jnp.imag(kernels_c).astype(jnp.float32)
    K, knx, kny = kr.shape
    assert knx % 2 == 1 and kny % 2 == 1, "odd-sized optical kernels expected"
    knxh, knyh = knx // 2, kny // 2
    kr = jnp.roll(kr, shift=(-knxh, -knyh), axis=(-2, -1))
    ki = jnp.roll(ki, shift=(-knxh, -knyh), axis=(-2, -1))
    kre = jnp.zeros((K, kxp, kyp), jnp.float32).at[:, :knx, :kny].set(kr)
    kim = jnp.zeros((K, kxp, kyp), jnp.float32).at[:, :knx, :kny].set(ki)
    return kre, kim


def litho_pass(mask, kernels_c, scales, doses, *, steepness, target, row_tile=None):
    """One _convMask + sigmoid pass; emits one printed image per dose in `doses`
    (the aerial image is quadratic in the dose, so doses share one pass)."""
    H, W = mask.shape
    K, knx, kny = kernels_c.shape
    kxp = _round_up(knx, 8)
    kyp = _round_up(kny, 128)
    if row_tile is None:
        row_tile = H if H <= 256 else 256
    assert H % row_tile == 0 and row_tile % 8 == 0
    nt = H // row_tile

    fhri, fwa, fwb, iwri, ih_r, ih_i = _build_dft_operands(H, W, knx, kny, kxp, kyp)
    ihblk = _build_ih_tiles(ih_r, ih_i, row_tile)
    kre, kim = _reorder_kernels(kernels_c, kxp, kyp)

    kernel = _make_litho_kernel(tuple(float(d) for d in doses), float(steepness),
                                float(target), kxp, kyp, row_tile)

    def cspec(shape):                      # loop-invariant, fully-resident operand
        nd = len(shape)
        return pl.BlockSpec(shape, lambda i, k, _nd=nd: (0,) * _nd)

    def kspec():                           # lane-dense streamed kernel plane
        return pl.BlockSpec((1, kxp, kyp), lambda i, k: (k, 0, 0))

    def out_spec():
        return pl.BlockSpec((row_tile, W), lambda i, k: (i, 0))

    out_shape = tuple(jax.ShapeDtypeStruct((H, W), jnp.float32) for _ in doses)

    outs = pl.pallas_call(
        kernel,
        out_shape=out_shape,
        grid_spec=pltpu.PrefetchScalarGridSpec(
            num_scalar_prefetch=0,
            grid=(nt, K),
            in_specs=[
                pl.BlockSpec(memory_space=pltpu.MemorySpace.SMEM),   # scales (K,)
                cspec((H, W)),                                       # mask
                cspec((2 * kxp, H)),                                 # forward DFT rows
                cspec((W, 2 * kyp)),                                 # forward DFT cols (a)
                cspec((W, 2 * kyp)),                                 # forward DFT cols (b)
                cspec((2 * kyp, W)),                                 # inverse DFT cols (bf16)
                pl.BlockSpec((1, 2 * row_tile, 2 * kxp),             # inverse DFT row tile
                             lambda i, k: (i, 0, 0)),
                kspec(), kspec(),                                    # kernel re / im planes
            ],
            out_specs=tuple(out_spec() for _ in doses),
            scratch_shapes=[pltpu.VMEM((kxp, 2 * kyp), jnp.float32),        # [Mr | Mi]
                            pltpu.VMEM((2 * kxp, 2 * kyp), jnp.float32),    # T block
                            pltpu.VMEM((2 * row_tile, W), jnp.float32)],    # aerial acc
        ),
        compiler_params=pltpu.CompilerParams(
            dimension_semantics=("parallel", "arbitrary"),
            vmem_limit_bytes=64 * 1024 * 1024),
    )(scales.astype(jnp.float32), mask.astype(jnp.float32),
      fhri, fwa, fwb, iwri, ihblk, kre, kim)
    return outs


def lithosim_forward(mask, config, focus_k, focus_s, defocus_k, defocus_s,
                     *, row_tile=None):
    """LithoSim.forward: (printedNom, printedMax, printedMin)."""
    K = int(config['KernelNum'])
    common = dict(steepness=config['PrintSteepness'],
                  target=config['TargetDensity'], row_tile=row_tile)
    # DoseNom / DoseMax share the focus kernels: one fused pass emits both.
    printed_nom, printed_max = litho_pass(
        mask, focus_k[:K], focus_s[:K],
        doses=(config['DoseNom'], config['DoseMax']), **common)
    (printed_min,) = litho_pass(
        mask, defocus_k[:K], defocus_s[:K], doses=(config['DoseMin'],), **common)
    return printed_nom, printed_max, printed_min


# ------------------------- pure-JAX reference (torch semantics) -------------- #
def _ref_kernel_mult(kernel_c, mask_fft, K):
    knx, kny = kernel_c.shape[-2:]
    knxh, knyh = knx // 2, kny // 2
    H, W = mask_fft.shape
    out = jnp.zeros((K, H, W), mask_fft.dtype)
    out = out.at[:, :knxh + 1, :knyh + 1].set(
        mask_fft[None, :knxh + 1, :knyh + 1] * kernel_c[:K, -(knxh + 1):, -(knyh + 1):])
    out = out.at[:, :knxh + 1, W - knyh:].set(
        mask_fft[None, :knxh + 1, W - knyh:] * kernel_c[:K, -(knxh + 1):, :knyh])
    out = out.at[:, H - knxh:, :knyh + 1].set(
        mask_fft[None, H - knxh:, :knyh + 1] * kernel_c[:K, :knxh, -(knyh + 1):])
    out = out.at[:, H - knxh:, W - knyh:].set(
        mask_fft[None, H - knxh:, W - knyh:] * kernel_c[:K, :knxh, :knyh])
    return out


def _ref_printed(mask, kernel_c, scales, K, dose, steep, target):
    cmask = (dose * mask).astype(jnp.complex64)
    mask_fft = jnp.fft.fft2(cmask, norm='forward')
    tmp = jnp.fft.ifft2(_ref_kernel_mult(kernel_c, mask_fft, K), norm='forward')
    aerial = jnp.sum(scales[:K, None, None] * jnp.abs(tmp) ** 2, axis=0)
    return jax.nn.sigmoid(steep * (aerial - target))


# ----------------------------------- main ------------------------------------ #
if __name__ == "__main__":
    H = W = 128         # small litho clip (W multiple of 128 -> lane-dense blocks)
    K = 4               # config['KernelNum']
    knx = kny = 9       # optical kernel spatial size

    config = {
        'KernelNum': K, 'TargetDensity': 0.225, 'PrintThresh': 0.225,
        'PrintSteepness': 50.0, 'DoseMax': 1.02, 'DoseMin': 0.98, 'DoseNom': 1.0,
    }

    key = jax.random.PRNGKey(0)
    ks = jax.random.split(key, 7)
    mask = (jax.random.uniform(ks[0], (H, W)) > 0.5).astype(jnp.float32)

    def make_kernels(k1, k2, k3):
        kr = 0.3 * jax.random.normal(k1, (K, knx, kny), jnp.float32)
        ki = 0.3 * jax.random.normal(k2, (K, knx, kny), jnp.float32)
        sc = jax.random.uniform(k3, (K,), jnp.float32, 0.5, 1.0)
        return kr + 1j * ki, sc   # complex64 kernels, float32 scales

    focus_k, focus_s = make_kernels(ks[1], ks[2], ks[3])
    defocus_k, defocus_s = make_kernels(ks[4], ks[5], ks[6])

    outs = lithosim_forward(mask, config, focus_k, focus_s, defocus_k, defocus_s,
                            row_tile=64)   # 2 row tiles -> exercises the parallel axis
    outs = jax.block_until_ready(outs)

    refs = (
        _ref_printed(mask, focus_k, focus_s, K, config['DoseNom'],
                     config['PrintSteepness'], config['TargetDensity']),
        _ref_printed(mask, focus_k, focus_s, K, config['DoseMax'],
                     config['PrintSteepness'], config['TargetDensity']),
        _ref_printed(mask, defocus_k, defocus_s, K, config['DoseMin'],
                     config['PrintSteepness'], config['TargetDensity']),
    )
    for o, r in zip(outs, refs):
        assert o.shape == (H, W) and o.dtype == jnp.float32
        err = float(jnp.max(jnp.abs(o - r)))
        assert err < 2e-2, f"max abs err {err}"
    print("KERNEL_OK")
</pallas_src>

<mosaic_0001>
module attributes {stable_mosaic.version = 11 : i64} {
  func.func @kernel(%arg0: i32, %arg1: i32, %arg2: memref<4xf32, #tpu.memory_space<smem>>, %arg3: memref<128x128xf32, #tpu.memory_space<vmem>>, %arg4: memref<32x128xf32, #tpu.memory_space<vmem>>, %arg5: memref<128x256xf32, #tpu.memory_space<vmem>>, %arg6: memref<128x256xf32, #tpu.memory_space<vmem>>, %arg7: memref<256x128xbf16, #tpu.memory_space<vmem>>, %arg8: memref<1x128x32xbf16, #tpu.memory_space<vmem>>, %arg9: memref<1x16x128xf32, #tpu.memory_space<vmem>>, %arg10: memref<1x16x128xf32, #tpu.memory_space<vmem>>, %arg11: memref<64x128xf32, #tpu.memory_space<vmem>>, %arg12: memref<64x128xf32, #tpu.memory_space<vmem>>, %arg13: memref<16x256xf32, #tpu.memory_space<vmem>>, %arg14: memref<32x256xf32, #tpu.memory_space<vmem>>, %arg15: memref<128x128xf32, #tpu.memory_space<vmem>>) attributes {dimension_semantics = [#tpu.dimension_semantics<parallel>, #tpu.dimension_semantics<arbitrary>], iteration_bounds = array<i64: 2, 4>, scalar_prefetch = 0 : i64, scratch_operands = 3 : i64, tpu.core_type = #tpu.core_type<tc>, window_params = [{transform_indices = @transform_0, window_bounds = array<i64: 4>}, {pipeline_mode = #tpu.pipeline_mode<synchronous>, transform_indices = @transform_1, window_bounds = array<i64: 128, 128>}, {pipeline_mode = #tpu.pipeline_mode<synchronous>, transform_indices = @transform_2, window_bounds = array<i64: 32, 128>}, {pipeline_mode = #tpu.pipeline_mode<synchronous>, transform_indices = @transform_3, window_bounds = array<i64: 128, 256>}, {pipeline_mode = #tpu.pipeline_mode<synchronous>, transform_indices = @transform_4, window_bounds = array<i64: 128, 256>}, {pipeline_mode = #tpu.pipeline_mode<synchronous>, transform_indices = @transform_5, window_bounds = array<i64: 256, 128>}, {transform_indices = @transform_6, window_bounds = array<i64: 1, 128, 32>}, {transform_indices = @transform_7, window_bounds = array<i64: 1, 16, 128>}, {transform_indices = @transform_8, window_bounds = array<i64: 1, 16, 128>}, {transform_indices = @transform_9, window_bounds = array<i64: 64, 128>}, {transform_indices = @transform_10, window_bounds = array<i64: 64, 128>}]} {
    %c0_i32 = arith.constant 0 : i32
    %0 = arith.cmpi eq, %arg1, %c0_i32 : i32
    %1 = arith.extui %0 : i1 to i32
    %c0_i32_0 = arith.constant 0 : i32
    %2 = arith.cmpi ne, %1, %c0_i32_0 : i32
    scf.if %2 {
      %c0_30 = arith.constant 0 : index
      %c0_31 = arith.constant 0 : index
      %40 = vector.load %arg4[%c0_30, %c0_31] : memref<32x128xf32, #tpu.memory_space<vmem>>, vector<32x128xf32>
      %c0_32 = arith.constant 0 : index
      %c0_33 = arith.constant 0 : index
      %41 = vector.load %arg3[%c0_32, %c0_33] : memref<128x128xf32, #tpu.memory_space<vmem>>, vector<128x128xf32>
      %cst_34 = arith.constant dense<0.000000e+00> : vector<32x128xf32>
      %42 = tpu.matmul %40, %41, %cst_34 {dimension_numbers = #tpu.dot_dimension_numbers<[1], [0], [0], [1], [0, 0, 1, 1], [], []>, precision = #tpu.contract_precision<fp32>} : vector<32x128xf32>, vector<128x128xf32>, vector<32x128xf32> -> vector<32x128xf32>
      %43 = vector.extract_strided_slice %42 {offsets = [0, 0], sizes = [16, 128], strides = [1, 1]} : vector<32x128xf32> to vector<16x128xf32>
      %44 = vector.extract_strided_slice %42 {offsets = [16, 0], sizes = [16, 128], strides = [1, 1]} : vector<32x128xf32> to vector<16x128xf32>
      %c0_35 = arith.constant 0 : index
      %c0_36 = arith.constant 0 : index
      %45 = vector.load %arg5[%c0_35, %c0_36] : memref<128x256xf32, #tpu.memory_space<vmem>>, vector<128x256xf32>
      %cst_37 = arith.constant dense<0.000000e+00> : vector<16x256xf32>
      %46 = tpu.matmul %43, %45, %cst_37 {dimension_numbers = #tpu.dot_dimension_numbers<[1], [0], [0], [1], [0, 0, 1, 1], [], []>, precision = #tpu.contract_precision<fp32>} : vector<16x128xf32>, vector<128x256xf32>, vector<16x256xf32> -> vector<16x256xf32>
      %c0_38 = arith.constant 0 : index
      %c0_39 = arith.constant 0 : index
      %47 = vector.load %arg6[%c0_38, %c0_39] : memref<128x256xf32, #tpu.memory_space<vmem>>, vector<128x256xf32>
      %cst_40 = arith.constant dense<0.000000e+00> : vector<16x256xf32>
      %48 = tpu.matmul %44, %47, %cst_40 {dimension_numbers = #tpu.dot_dimension_numbers<[1], [0], [0], [1], [0, 0, 1, 1], [], []>, precision = #tpu.contract_precision<fp32>} : vector<16x128xf32>, vector<128x256xf32>, vector<16x256xf32> -> vector<16x256xf32>
      %49 = arith.addf %46, %48 : vector<16x256xf32>
      %c0_41 = arith.constant 0 : index
      %c0_42 = arith.constant 0 : index
      %50 = vector.load %arg13[%c0_41, %c0_42] : memref<16x256xf32, #tpu.memory_space<vmem>>, vector<16x256xf32>
      tpu.vector_store %arg13[%c0_41, %c0_42], %49 {strides = array<i32>} : memref<16x256xf32, #tpu.memory_space<vmem>>, vector<16x256xf32>,
      %cst_43 = arith.constant 0.000000e+00 : f32
      %51 = vector.broadcast %cst_43 : f32 to vector<128x128xf32>
      %c0_44 = arith.constant 0 : index
      %c0_45 = arith.constant 0 : index
      %52 = vector.load %arg15[%c0_44, %c0_45] : memref<128x128xf32, #tpu.memory_space<vmem>>, vector<128x128xf32>
      tpu.vector_store %arg15[%c0_44, %c0_45], %51 {strides = array<i32>} : memref<128x128xf32, #tpu.memory_space<vmem>>, vector<128x128xf32>,
    } else {
    }
    %c0 = arith.constant 0 : index
    %c0_1 = arith.constant 0 : index
    %3 = vector.load %arg13[%c0, %c0_1] : memref<16x256xf32, #tpu.memory_space<vmem>>, vector<16x128xf32>
    %c0_2 = arith.constant 0 : index
    %c128 = arith.constant 128 : index
    %4 = vector.load %arg13[%c0_2, %c128] : memref<16x256xf32, #tpu.memory_space<vmem>>, vector<16x128xf32>
    %c0_3 = arith.constant 0 : index
    %c0_4 = arith.constant 0 : index
    %c0_5 = arith.constant 0 : index
    %5 = vector.load %arg9[%c0_3, %c0_4, %c0_5] : memref<1x16x128xf32, #tpu.memory_space<vmem>>, vector<1x16x128xf32>
    %6 = vector.shape_cast %5 : vector<1x16x128xf32> to vector<16x128xf32>
    %c0_6 = arith.constant 0 : index
    %c0_7 = arith.constant 0 : index
    %c0_8 = arith.constant 0 : index
    %7 = vector.load %arg10[%c0_6, %c0_7, %c0_8] : memref<1x16x128xf32, #tpu.memory_space<vmem>>, vector<1x16x128xf32>
    %8 = vector.shape_cast %7 : vector<1x16x128xf32> to vector<16x128xf32>
    %9 = arith.mulf %3, %6 : vector<16x128xf32>
    %10 = arith.mulf %4, %8 : vector<16x128xf32>
    %11 = arith.subf %9, %10 : vector<16x128xf32>
    %12 = arith.mulf %3, %8 : vector<16x128xf32>
    %13 = arith.mulf %4, %6 : vector<16x128xf32>
    %14 = arith.addf %12, %13 : vector<16x128xf32>
    %c0_9 = arith.constant 0 : index
    %c0_10 = arith.constant 0 : index
    %15 = vector.load %arg14[%c0_9, %c0_10] : memref<32x256xf32, #tpu.memory_space<vmem>>, vector<16x128xf32>
    tpu.vector_store %arg14[%c0_9, %c0_10], %11 {strides = array<i32>} : memref<32x256xf32, #tpu.memory_space<vmem>>, vector<16x128xf32>,
    %cst = arith.constant 0.000000e+00 : f32
    %16 = vector.broadcast %cst : f32 to vector<16x128xf32>
    %17 = arith.subf %16, %14 : vector<16x128xf32>
    %c0_11 = arith.constant 0 : index
    %c128_12 = arith.constant 128 : index
    %18 = vector.load %arg14[%c0_11, %c128_12] : memref<32x256xf32, #tpu.memory_space<vmem>>, vector<16x128xf32>
    tpu.vector_store %arg14[%c0_11, %c128_12], %17 {strides = array<i32>} : memref<32x256xf32, #tpu.memory_space<vmem>>, vector<16x128xf32>,
    %c16 = arith.constant 16 : index
    %c0_13 = arith.constant 0 : index
    %19 = vector.load %arg14[%c16, %c0_13] : memref<32x256xf32, #tpu.memory_space<vmem>>, vector<16x128xf32>
    tpu.vector_store %arg14[%c16, %c0_13], %14 {strides = array<i32>} : memref<32x256xf32, #tpu.memory_space<vmem>>, vector<16x128xf32>,
    %c16_14 = arith.constant 16 : index
    %c128_15 = arith.constant 128 : index
    %20 = vector.load %arg14[%c16_14, %c128_15] : memref<32x256xf32, #tpu.memory_space<vmem>>, vector<16x128xf32>
    tpu.vector_store %arg14[%c16_14, %c128_15], %11 {strides = array<i32>} : memref<32x256xf32, #tpu.memory_space<vmem>>, vector<16x128xf32>,
    %c0_16 = arith.constant 0 : index
    %c0_17 = arith.constant 0 : index
    %21 = vector.load %arg14[%c0_16, %c0_17] : memref<32x256xf32, #tpu.memory_space<vmem>>, vector<32x256xf32>
    %22 = arith.truncf %21 : vector<32x256xf32> to vector<32x256xbf16>
    %c0_18 = arith.constant 0 : index
    %c0_19 = arith.constant 0 : index
    %23 = vector.load %arg7[%c0_18, %c0_19] : memref<256x128xbf16, #tpu.memory_space<vmem>>, vector<256x128xbf16>
    %cst_20 = arith.constant dense<0.000000e+00> : vector<32x128xf32>
    %24 = tpu.matmul %22, %23, %cst_20 {dimension_numbers = #tpu.dot_dimension_numbers<[1], [0], [0], [1], [0, 0, 1, 1], [], []>} : vector<32x256xbf16>, vector<256x128xbf16>, vector<32x128xf32> -> vector<32x128xf32>
    %c0_21 = arith.constant 0 : index
    %c0_22 = arith.constant 0 : index
    %c0_23 = arith.constant 0 : index
    %25 = vector.load %arg8[%c0_21, %c0_22, %c0_23] : memref<1x128x32xbf16, #tpu.memory_space<vmem>>, vector<1x128x32xbf16>
    %26 = vector.shape_cast %25 : vector<1x128x32xbf16> to vector<128x32xbf16>
    %27 = arith.truncf %24 : vector<32x128xf32> to vector<32x128xbf16>
    %cst_24 = arith.constant dense<0.000000e+00> : vector<128x128xf32>
    %28 = tpu.matmul %26, %27, %cst_24 {dimension_numbers = #tpu.dot_dimension_numbers<[1], [0], [0], [1], [0, 0, 1, 1], [], []>} : vector<128x32xbf16>, vector<32x128xbf16>, vector<128x128xf32> -> vector<128x128xf32>
    %c0_25 = arith.constant 0 : index
    %c0_26 = arith.constant 0 : index
    %29 = vector.load %arg15[%c0_25, %c0_26] : memref<128x128xf32, #tpu.memory_space<vmem>>, vector<128x128xf32>
    %30 = arith.index_cast %arg1 : i32 to index
    %31 = memref.load %arg2[%30] : memref<4xf32, #tpu.memory_space<smem>>
    %32 = arith.mulf %28, %28 : vector<128x128xf32>
    %33 = vector.broadcast %31 : f32 to vector<128x128xf32>
    %34 = arith.mulf %33, %32 : vector<128x128xf32>
    %35 = arith.addf %29, %34 : vector<128x128xf32>
    %c0_27 = arith.constant 0 : index
    %c0_28 = arith.constant 0 : index
    %36 = vector.load %arg15[%c0_27, %c0_28] : memref<128x128xf32, #tpu.memory_space<vmem>>, vector<128x128xf32>
    tpu.vector_store %arg15[%c0_27, %c0_28], %35 {strides = array<i32>} : memref<128x128xf32, #tpu.memory_space<vmem>>, vector<128x128xf32>,
    %c3_i32 = arith.constant 3 : i32
    %37 = arith.cmpi eq, %arg1, %c3_i32 : i32
    %38 = arith.extui %37 : i1 to i32
    %c0_i32_29 = arith.constant 0 : i32
    %39 = arith.cmpi ne, %38, %c0_i32_29 : i32
    scf.if %39 {
      %c0_30 = arith.constant 0 : index
      %c0_31 = arith.constant 0 : index
      %40 = vector.load %arg15[%c0_30, %c0_31] : memref<128x128xf32, #tpu.memory_space<vmem>>, vector<64x128xf32>
      %c64 = arith.constant 64 : index
      %c0_32 = arith.constant 0 : index
      %41 = vector.load %arg15[%c64, %c0_32] : memref<128x128xf32, #tpu.memory_space<vmem>>, vector<64x128xf32>
      %42 = arith.addf %40, %41 : vector<64x128xf32>
      %cst_33 = arith.constant 1.000000e+00 : f32
      %43 = vector.broadcast %cst_33 : f32 to vector<64x128xf32>
      %44 = arith.mulf %43, %42 : vector<64x128xf32>
      %cst_34 = arith.constant 2.250000e-01 : f32
      %45 = vector.broadcast %cst_34 : f32 to vector<64x128xf32>
      %46 = arith.subf %44, %45 : vector<64x128xf32>
      %cst_35 = arith.constant 5.000000e+01 : f32
      %47 = vector.broadcast %cst_35 : f32 to vector<64x128xf32>
      %48 = arith.mulf %47, %46 : vector<64x128xf32>
      %cst_36 = arith.constant 0.000000e+00 : f32
      %49 = vector.broadcast %cst_36 : f32 to vector<64x128xf32>
      %50 = arith.subf %49, %48 : vector<64x128xf32>
      %51 = math.exp %50 : vector<64x128xf32>
      %cst_37 = arith.constant 1.000000e+00 : f32
      %52 = vector.broadcast %cst_37 : f32 to vector<64x128xf32>
      %53 = arith.addf %52, %51 : vector<64x128xf32>
      %cst_38 = arith.constant 1.000000e+00 : f32
      %54 = vector.broadcast %cst_38 : f32 to vector<64x128xf32>
      %55 = arith.divf %54, %53 : vector<64x128xf32>
      %c0_39 = arith.constant 0 : index
      %c0_40 = arith.constant 0 : index
      %56 = vector.load %arg11[%c0_39, %c0_40] : memref<64x128xf32, #tpu.memory_space<vmem>>, vector<64x128xf32>
      tpu.vector_store %arg11[%c0_39, %c0_40], %55 {strides = array<i32>} : memref<64x128xf32, #tpu.memory_space<vmem>>, vector<64x128xf32>,
      %cst_41 = arith.constant 1.040400e+00 : f32
      %57 = vector.broadcast %cst_41 : f32 to vector<64x128xf32>
      %58 = arith.mulf %57, %42 : vector<64x128xf32>
      %cst_42 = arith.constant 2.250000e-01 : f32
      %59 = vector.broadcast %cst_42 : f32 to vector<64x128xf32>
      %60 = arith.subf %58, %59 : vector<64x128xf32>
      %cst_43 = arith.constant 5.000000e+01 : f32
      %61 = vector.broadcast %cst_43 : f32 to vector<64x128xf32>
      %62 = arith.mulf %61, %60 : vector<64x128xf32>
      %cst_44 = arith.constant 0.000000e+00 : f32
      %63 = vector.broadcast %cst_44 : f32 to vector<64x128xf32>
      %64 = arith.subf %63, %62 : vector<64x128xf32>
      %65 = math.exp %64 : vector<64x128xf32>
      %cst_45 = arith.constant 1.000000e+00 : f32
      %66 = vector.broadcast %cst_45 : f32 to vector<64x128xf32>
      %67 = arith.addf %66, %65 : vector<64x128xf32>
      %cst_46 = arith.constant 1.000000e+00 : f32
      %68 = vector.broadcast %cst_46 : f32 to vector<64x128xf32>
      %69 = arith.divf %68, %67 : vector<64x128xf32>
      %c0_47 = arith.constant 0 : index
      %c0_48 = arith.constant 0 : index
      %70 = vector.load %arg12[%c0_47, %c0_48] : memref<64x128xf32, #tpu.memory_space<vmem>>, vector<64x128xf32>
      tpu.vector_store %arg12[%c0_47, %c0_48], %69 {strides = array<i32>} : memref<64x128xf32, #tpu.memory_space<vmem>>, vector<64x128xf32>,
    } else {
    }
    return
  }
  func.func @transform_0(%arg0: i32, %arg1: i32) -> i32 {
    %c0_i32 = arith.constant 0 : i32
    %c0_i32_0 = arith.constant 0 : i32
    return %c0_i32 : i32
  }
  func.func @transform_1(%arg0: i32, %arg1: i32) -> (i32, i32) {
    %c0_i32 = arith.constant 0 : i32
    %c0_i32_0 = arith.constant 0 : i32
    %c0_i32_1 = arith.constant 0 : i32
    return %c0_i32, %c0_i32_0 : i32, i32
  }
  func.func @transform_2(%arg0: i32, %arg1: i32) -> (i32, i32) {
    %c0_i32 = arith.constant 0 : i32
    %c0_i32_0 = arith.constant 0 : i32
    %c0_i32_1 = arith.constant 0 : i32
    return %c0_i32, %c0_i32_0 : i32, i32
  }
  func.func @transform_3(%arg0: i32, %arg1: i32) -> (i32, i32) {
    %c0_i32 = arith.constant 0 : i32
    %c0_i32_0 = arith.constant 0 : i32
    %c0_i32_1 = arith.constant 0 : i32
    return %c0_i32, %c0_i32_0 : i32, i32
  }
  func.func @transform_4(%arg0: i32, %arg1: i32) -> (i32, i32) {
    %c0_i32 = arith.constant 0 : i32
    %c0_i32_0 = arith.constant 0 : i32
    %c0_i32_1 = arith.constant 0 : i32
    return %c0_i32, %c0_i32_0 : i32, i32
  }
  func.func @transform_5(%arg0: i32, %arg1: i32) -> (i32, i32) {
    %c0_i32 = arith.constant 0 : i32
    %c0_i32_0 = arith.constant 0 : i32
    %c0_i32_1 = arith.constant 0 : i32
    return %c0_i32, %c0_i32_0 : i32, i32
  }
  func.func @transform_6(%arg0: i32, %arg1: i32) -> (i32, i32, i32) {
    %c0_i32 = arith.constant 0 : i32
    %c0_i32_0 = arith.constant 0 : i32
    %c0_i32_1 = arith.constant 0 : i32
    return %arg0, %c0_i32, %c0_i32_0 : i32, i32, i32
  }
  func.func @transform_7(%arg0: i32, %arg1: i32) -> (i32, i32, i32) {
    %c0_i32 = arith.constant 0 : i32
    %c0_i32_0 = arith.constant 0 : i32
    %c0_i32_1 = arith.constant 0 : i32
    return %arg1, %c0_i32, %c0_i32_0 : i32, i32, i32
  }
  func.func @transform_8(%arg0: i32, %arg1: i32) -> (i32, i32, i32) {
    %c0_i32 = arith.constant 0 : i32
    %c0_i32_0 = arith.constant 0 : i32
    %c0_i32_1 = arith.constant 0 : i32
    return %arg1, %c0_i32, %c0_i32_0 : i32, i32, i32
  }
  func.func @transform_9(%arg0: i32, %arg1: i32) -> (i32, i32) {
    %c0_i32 = arith.constant 0 : i32
    %c0_i32_0 = arith.constant 0 : i32
    return %arg0, %c0_i32 : i32, i32
  }
  func.func @transform_10(%arg0: i32, %arg1: i32) -> (i32, i32) {
    %c0_i32 = arith.constant 0 : i32
    %c0_i32_0 = arith.constant 0 : i32
    return %arg0, %c0_i32 : i32, i32
  }
}

</mosaic_0001>

<bundles_post_ra>
// kernel: tpu_custom_call.1
= control target key start
LH: loop header
LB: loop body
LE: loop exit
PB: predicated region body
PF: predicated region fallthrough
CT: control target
= control target key end

     0   :  { %s7872_s0 = inlined_call_operand.hbm [shape: f32[4], index: 0, kind: input, shape index: {}]   ;;  %s7873_s1 = inlined_call_operand.hbm [shape: f32[128,128], index: 1, kind: input, shape index: {}]   ;;  %s7874_s2 = inlined_call_operand.hbm [shape: f32[32,128], index: 2, kind: input, shape index: {}]   ;;  %s7875_s3 = inlined_call_operand.hbm [shape: f32[128,256], index: 3, kind: input, shape index: {}]   ;;  %s7876_s4 = inlined_call_operand.hbm [shape: f32[128,256], index: 4, kind: input, shape index: {}]   ;;  %s7877_s5 = inlined_call_operand.hbm [shape: bf16[256,128], index: 5, kind: input, shape index: {}]   ;;  %s7878_s6 = inlined_call_operand.hbm [shape: bf16[2,128,32], index: 6, kind: input, shape index: {}]   ;;  %s7879_s7 = inlined_call_operand.hbm [shape: f32[4,16,128], index: 7, kind: input, shape index: {}]   ;;  %s7880_s8 = inlined_call_operand.hbm [shape: f32[4,16,128], index: 8, kind: input, shape index: {}]   ;;  %s7881_s9 = inlined_call_operand.hbm [shape: f32[128,128], index: 9, kind: output, shape index: {0}]   ;;  %s7882_s10 = inlined_call_operand.hbm [shape: f32[128,128], index: 10, kind: output, shape index: {1}]  }
   0x1   :  { %7988 = sst [smem:[#allocation72_spill]] %s7872_s0 }
   0x2   :  { %7989 = sst [smem:[#allocation73_spill]] %s7873_s1 }
   0x3   :  { %7990 = sst [smem:[#allocation74_spill]] %s7874_s2 }
   0x4   :  { %7991 = sst [smem:[#allocation75_spill]] %s7875_s3 }
   0x5   :  { %7992 = sst [smem:[#allocation76_spill]] %s7876_s4 }
   0x6   :  { %7993 = sst [smem:[#allocation77_spill]] %s7877_s5 }
   0x7   :  { %7994 = sst [smem:[#allocation78_spill]] %s7878_s6 }
   0x8   :  { %7995 = sst [smem:[#allocation79_spill]] %s7879_s7 }
   0x9   :  { %7996 = sst [smem:[#allocation80_spill]] %s7880_s8 }
   0xa   :  { %7997 = sst [smem:[#allocation81_spill]] %s7881_s9 }
   0xb   :  { %7998 = sst [smem:[#allocation82_spill]] %s7882_s10 }
   0xc   :  { %16 = vsyncpa [#allocation8], 0 }
   0xd   :  { %17 = vsyncpa [#allocation6], 0 }
   0xe   :  { %18 = vsyncpa [#allocation11], 0 }
   0xf   :  { %19 = vsyncpa [#allocation14], 0 }
  0x10   :  { %20 = vsyncpa [#allocation17], 0 }
  0x11   :  { %22 = vsyncpa [#allocation17 + $0x1], 0 }
  0x12   :  { %23 = vsyncpa [#allocation20], 0 }
  0x13   :  { %25 = vsyncpa [#allocation20 + $0x1], 0 }
  0x14   :  { %26 = vsyncpa [#allocation7], 0 }
  0x15   :  { %28 = vsyncpa [#allocation7 + $0x1], 0 }
  0x16   :  { %29 = vsyncpa [#allocation23], 0 }
  0x17   :  { %31 = vsyncpa [#allocation23 + $0x1], 0  ;;  %s6083_s13 = smov 0   ;;  %s6085_s14 = smov 0  }
  0x18   :  { %s6087_s15 = smov 0   ;;  %s6089_s16 = smov 0  }
  0x19   :  { %s6091_s17 = smov 0   ;;  %s6093_s18 = smov 0  }
  0x1a   :  { %s6095_s19 = smov 0   ;;  %s6097_s20 = smov 0  }
  0x1b   :  { %s6099_s21 = smov 0   ;;  %s6101_s22 = smov 0  }
  0x1c   :  { %s6103_s23 = smov 0  }
  0x1d LB: > { %7999 = sst [smem:[#allocation33_spill]] %s5966_s13  ;;  %s6139_s24 = sadd.s32 4294967295, %s6006_s23   ;;  %s6006_s23 = sphi %s6103_s23, %s37_s23   ;;  %s6002_s22 = sphi %s6101_s22, %s8249_s22   ;;  %s5998_s21 = sphi %s6099_s21, %s8258_s21   ;;  %s5994_s20 = sphi %s6097_s20, %s8257_s20   ;;  %s5990_s19 = sphi %s6095_s19, %s8256_s19   ;;  %s5986_s18 = sphi %s6093_s18, %s8255_s18   ;;  %s5982_s17 = sphi %s6091_s17, %s8254_s17   ;;  %s5978_s16 = sphi %s6089_s16, %s8253_s16   ;;  %s5974_s15 = sphi %s6087_s15, %s8252_s15   ;;  %s5970_s14 = sphi %s6085_s14, %s8251_s14   ;;  %s5966_s13 = sphi %s6083_s13, %s8250_s13  }
  0x1e   : > { %8000 = sst [smem:[#allocation34_spill]] %s5978_s16  ;;  %p4171_p0 = scmp.ge.s32.totalorder %s6006_s23, 1 }
  0x1f   : > { %8001 = sst [smem:[#allocation35_spill]] %s5990_s19  ;;  %p7887_p1 = scmp.eq.s32.totalorder %s6139_s24, 0 }
  0x20   : > { %8002 = sst [smem:[#allocation36_spill]] %s5994_s20  ;;  %p310_p2 = scmp.lt.s32.totalorder %s6006_s23, 9 }
  0x21   : > { %8003 = sst [smem:[#allocation37_spill]] %s6002_s22  ;;  %s6008_s26 = smov [#allocation10]  }
  0x22   : > { %p6144_p3 = pnand %p4171_p0, %p310_p2  ;;  %s344_s27 = sshll.u32 %s6008_s26, 4  ;;  %s345_s27 = int_to_ptr.vmem [resolvable:$true] %s344_s27 }
  0x23   : > { %s6009_s29 = smov [#allocation13]   ;;  %s8007_s2 = sld [smem:[#allocation74_spill]] }
  0x24   : > { %s8004_s25 = scalar_select %p6144_p3, 1, 0 }
  0x25   : > { %p5343_p4 = pneg %p6144_p3  ;;  %s370_s30 = sshll.u32 %s6009_s29, 4  ;;  %s6156_s30 = int_to_ptr.vmem [resolvable:$true] %s370_s30 }
  0x26   : > { %8005 = sst [smem:[#allocation38_spill]] %s8004_s25 }
  0x27   : > { %p6152_p5 = pnand %p5343_p4, %p7887_p1 }
  0x29   : > { %s8006_s28 = scalar_select %p6152_p5, 1, 0 }
  0x2a   : > { %s5585_s10 = scalar_lea.hbm %s8007_s2, 512  ;;  %p6166_p7 = pneg %p6152_p5 }
  0x2b   : > { %p5586_p6 = scmp.ne.s32.totalorder %s8007_s2, %s5585_s10  ;;  %p5592_p10 = scmp.lt.u32.totalorder %s5585_s10, %s8007_s2 }
  0x2d   : > { %p5588_p8 = pnand %p6166_p7, %p5586_p6 }
  0x2f   : > { %p5589_p9 = pneg %p5588_p8 }
  0x31   : > { %p5594_p11 = pnand %p5592_p10, %p5589_p9 }
  0x33   : > { %5597 = shalt.err (!%p5594_p11)
}
  0x34   : > { %s5598_s11 = scalar_lea.vmem %s345_s27, 512  ;;  %p5606_p2 = scmp.lt.s32.totalorder %s345_s27, %s345_s27 }
  0x35   : > { %p5599_p12 = scmp.ne.s32.totalorder %s345_s27, %s5598_s11  ;;  %p5607_p4 = scmp.lt.s32.totalorder %s5598_s11, %s5598_s11 }
  0x37   : > { %p5601_p13 = pnand %p5599_p12, %p6166_p7  ;;  %p5608_p1 = por %p5607_p4, %p5606_p2 }
  0x39   : > { %p5602_p0 = pneg %p5601_p13 }
  0x3b   : > { %p5609_p3 = pnand %p5608_p1, %p5602_p0 }
  0x3d   : > { %5612 = shalt.err (!%p5609_p3)
}
  0x3e   : > { %s7894_s9 = smov 128   ;;  %s7896_s20 = smov 8  }
  0x3f   : > { %5352 = dma.hbm_to_vmem [thread:$0]  (!%p6152_p5), %s8007_s2, 512, %s345_s27, [#allocation11], %s7894_s9, %s7894_s9, %s7896_s20  }
  0x40   : > { %s8009_s4 = sld [smem:[#allocation76_spill]] }
  0x46   : > { %s5613_s25 = scalar_lea.hbm %s8009_s4, 4096 }
  0x47   : > { %p5614_p1 = scmp.ne.s32.totalorder %s8009_s4, %s5613_s25  ;;  %p5620_p8 = scmp.lt.u32.totalorder %s5613_s25, %s8009_s4 }
  0x49   : > { %p5616_p3 = pnand %p5614_p1, %p6166_p7 }
  0x4b   : > { %p5617_p6 = pneg %p5616_p3 }
  0x4d   : > { %p5622_p9 = pnand %p5620_p8, %p5617_p6 }
  0x4f   : > { %5625 = shalt.err (!%p5622_p9)
}
  0x50   : > { %s5626_s27 = scalar_lea.vmem %s6156_s30, 4096  ;;  %p5634_p13 = scmp.lt.s32.totalorder %s6156_s30, %s6156_s30 }
  0x51   : > { %p5627_p10 = scmp.ne.s32.totalorder %s6156_s30, %s5626_s27  ;;  %p5635_p0 = scmp.lt.s32.totalorder %s5626_s27, %s5626_s27 }
  0x53   : > { %p5629_p11 = pnand %p5627_p10, %p6166_p7  ;;  %p5636_p2 = por %p5635_p0, %p5634_p13 }
  0x55   : > { %p5630_p12 = pneg %p5629_p11 }
  0x57   : > { %p5637_p4 = pnand %p5636_p2, %p5630_p12 }
  0x59   : > { %5640 = shalt.err (!%p5637_p4)
}
  0x5a   : > { %s7892_s8 = smov 256   ;;  %s7893_s7 = smov 16  }
  0x5b   : > { %5358 = dma.hbm_to_vmem [thread:$0]  (!%p6152_p5), %s8009_s4, 4096, %s6156_s30, [#allocation14], %s7892_s8, %s7892_s8, %s7893_s7  }
  0x5c   : > { %s4170_s10 = sadd.s32 4294967294, %s6006_s23   ;;  %p189_p1 = scmp.ne.s32.totalorder %s5986_s18, %s5982_s17 }
  0x5d   : > { %p7899_p3 = scmp.eq.s32.totalorder %s6006_s23, 0  ;;  %p195_p6 = scmp.ne.s32.totalorder %s5982_s17, %s5978_s16 }
  0x5e   : > { %p271_p8 = scmp.eq.s32.totalorder %s6139_s24, 7  ;;  %p277_p9 = scmp.eq.s32.totalorder %s4170_s10, 7 }
  0x5f   : > { %p191_p10 = por %p7899_p3, %p189_p1  ;;  %p8010_p11 = scmp.eq.s32.totalorder %s6139_s24, 0 }
  0x60   : > { %p6228_p13 = por %p271_p8, %p189_p1  ;;  %p6232_p0 = por %p277_p9, %p195_p6 }
  0x61   : > { %p6224_p12 = por %p8010_p11, %p195_p6  ;;  %p7898_p2 = scmp.lt.s32.totalorder %s6006_s23, 8 }
  0x62   : > { %s8012_s11 = scalar_select %p6228_p13, 1, 0 }
  0x63   : > { %s8011_s29 = scalar_select %p6224_p12, 1, 0 }
  0x64   : > { %s8013_s30 = scalar_select %p6232_p0, 1, 0 }
  0x65   : > { %s397_s27 = sand.u32 1, %s6006_s23   ;;  %s399_s13 = sand.u32 1, %s5986_s18  }
  0x66   : > { %8014 = sst [smem:[#allocation39_spill]] %s8013_s30  ;;  %s4179_s25 = sshll.u32 %s399_s13, 6 }
  0x67   : > { %s4258_s10 = sshll.u32 %s6002_s22, 10  ;;  %s8015_s6 = sld [smem:[#allocation78_spill]] }
  0x68   : > { %s401_s7 = scalar_lea.vmem [#allocation16], %s4179_s25  ;;  %p6247_p4 = pnand %p7898_p2, %p191_p10 }
  0x69   : > { %s408_s9 = sshll.u32 %s401_s7, 4  ;;  %s6253_s13 = scalar_lea.sflag [#allocation17], %s397_s27  ;;  %s6251_s9 = int_to_ptr.vmem [resolvable:$true] %s408_s9 }
  0x6a   : > { %p5643_p6 = pneg %p6247_p4 }
  0x6d   : > { %s6243_s8 = scalar_lea.hbm %s8015_s6, %s4258_s10  ;;  %s5646_s25 = scalar_lea.hbm %s8015_s6, 2048 }
  0x6e   : > { %s5641_s19 = scalar_lea.hbm %s6243_s8, 1024  ;;  %p5647_p10 = scmp.lt.u32.totalorder %s6243_s8, %s8015_s6 }
  0x6f   : > { %p5642_p1 = scmp.ne.s32.totalorder %s6243_s8, %s5641_s19  ;;  %p5648_p11 = scmp.lt.u32.totalorder %s5646_s25, %s5641_s19 }
  0x70   : > { %p5650_p3 = scmp.lt.u32.totalorder %s5641_s19, %s6243_s8 }
  0x71   : > { %p5644_p8 = pnand %p5643_p6, %p5642_p1  ;;  %p5649_p2 = por %p5648_p11, %p5647_p10 }
  0x73   : > { %p5645_p9 = pneg %p5644_p8  ;;  %p5651_p0 = por %p5650_p3, %p5649_p2 }
  0x75   : > { %p5652_p13 = pnand %p5651_p0, %p5645_p9 }
  0x77   : > { %5655 = shalt.err (!%p5652_p13)
}
  0x78   : > { %s5656_s27 = scalar_lea.vmem %s6251_s9, 1024  ;;  %s6014_s7 = smov [#allocation16]  }
  0x79   : > { %p5657_p1 = scmp.ne.s32.totalorder %s6251_s9, %s5656_s27  ;;  %s5661_s12 = sshll.u32 %s6014_s7, 4  ;;  %s5662_s12 = int_to_ptr.vmem [resolvable:$false] %s5661_s12 }
  0x7a   : > { %s5663_s2 = scalar_lea.vmem %s5662_s12, 2048  ;;  %p5664_p5 = scmp.lt.s32.totalorder %s6251_s9, %s5662_s12 }
  0x7b   : > { %p5659_p8 = pnand %p5657_p1, %p5643_p6  ;;  %p5665_p10 = scmp.lt.s32.totalorder %s5663_s2, %s5656_s27 }
  0x7d   : > { %p5660_p12 = pneg %p5659_p8  ;;  %p5666_p11 = por %p5665_p10, %p5664_p5 }
  0x7f   : > { %p5667_p3 = pnand %p5666_p11, %p5660_p12 }
  0x81   : > { %5670 = shalt.err (!%p5667_p3)
}
  0x82   : > { %s7904_s19 = smov 64   ;;  %s7905_s25 = smov 4  }
  0x83   : > { %5365 = dma.hbm_to_vmem [thread:$0]  (!%p6247_p4), %s6243_s8, 1024, %s6251_s9, %s6253_s13, %s7904_s19, %s7904_s19, %s7905_s25  }
  0x84   : > { %s8017_s0 = sld [smem:[#allocation72_spill]] }
  0x8a   : > { %s5671_s12 = scalar_lea.hbm %s8017_s0, 16 }
  0x8b   : > { %p5672_p5 = scmp.ne.s32.totalorder %s8017_s0, %s5671_s12  ;;  %p5678_p0 = scmp.lt.u32.totalorder %s5671_s12, %s8017_s0 }
  0x8d   : > { %p5674_p12 = pnand %p5672_p5, %p6166_p7 }
  0x8f   : > { %p5675_p13 = pneg %p5674_p12 }
  0x91   : > { %p5680_p2 = pnand %p5678_p0, %p5675_p13 }
  0x93   : > { %5683 = shalt.err (!%p5680_p2)
}
  0x94   : > { %s6017_s20 = smov [#allocation5]   ;;  %p8018_p4 = scmp.ne.s32.totalorder %s8006_s28, 0 }
  0x95   : > { %s6018_s10 = smov [#allocation9]   ;;  %s6019_s27 = smov [#allocation12]  }
  0x96   : > { %5346 = dma.hbm_to_smem (!%p8018_p4), %s8017_s0, 16, %s6017_s20, [#allocation8]  }
  0x97   : > { %s331_s7 = sshll.u32 %s6018_s10, 4  ;;  %s357_s2 = sshll.u32 %s6019_s27, 4  ;;  %s332_s7 = int_to_ptr.vmem [resolvable:$true] %s331_s7  ;;  %s358_s2 = int_to_ptr.vmem [resolvable:$true] %s357_s2 }
  0x98   : > { %s8019_s1 = sld [smem:[#allocation73_spill]] }
  0x9e   : > { %s5684_s4 = scalar_lea.hbm %s8019_s1, 2048 }
  0x9f   : > { %p5685_p6 = scmp.ne.s32.totalorder %s8019_s1, %s5684_s4  ;;  %p5691_p8 = scmp.lt.u32.totalorder %s5684_s4, %s8019_s1 }
  0xa1   : > { %p5687_p9 = pnand %p5685_p6, %p6166_p7 }
  0xa3   : > { %p5688_p1 = pneg %p5687_p9 }
  0xa5   : > { %p5693_p10 = pnand %p5691_p8, %p5688_p1 }
  0xa7   : > { %5696 = shalt.err (!%p5693_p10)
}
  0xa8   : > { %s5697_s20 = scalar_lea.vmem %s332_s7, 2048  ;;  %p5705_p12 = scmp.lt.s32.totalorder %s332_s7, %s332_s7 }
  0xa9   : > { %p5698_p11 = scmp.ne.s32.totalorder %s332_s7, %s5697_s20  ;;  %p5706_p13 = scmp.lt.s32.totalorder %s5697_s20, %s5697_s20 }
  0xab   : > { %p5700_p3 = pnand %p5698_p11, %p6166_p7  ;;  %p5707_p0 = por %p5706_p13, %p5705_p12 }
  0xad   : > { %p5701_p5 = pneg %p5700_p3 }
  0xaf   : > { %p5708_p2 = pnand %p5707_p0, %p5701_p5 }
  0xb1   : > { %5711 = shalt.err (!%p5708_p2)
}
  0xb2   : > { %s8020_s19 = smov 8   ;;  %s8021_s25 = smov 128  }
  0xb3   : > { %5349 = dma.hbm_to_vmem [thread:$0]  (!%p8018_p4), %s8019_s1, 2048, %s332_s7, [#allocation6], %s8021_s25, %s8021_s25, %s8020_s19  }
  0xb4   : > { %s8022_s3 = sld [smem:[#allocation75_spill]] }
  0xba   : > { %s5712_s4 = scalar_lea.hbm %s8022_s3, 4096 }
  0xbb   : > { %p5713_p6 = scmp.ne.s32.totalorder %s8022_s3, %s5712_s4  ;;  %p5719_p8 = scmp.lt.u32.totalorder %s5712_s4, %s8022_s3 }
  0xbd   : > { %p5715_p9 = pnand %p5713_p6, %p6166_p7 }
  0xbf   : > { %p5716_p1 = pneg %p5715_p9 }
  0xc1   : > { %p5721_p10 = pnand %p5719_p8, %p5716_p1 }
  0xc3   : > { %5724 = shalt.err (!%p5721_p10)
}
  0xc4   : > { %s5725_s30 = scalar_lea.vmem %s358_s2, 4096  ;;  %p5733_p12 = scmp.lt.s32.totalorder %s358_s2, %s358_s2 }
  0xc5   : > { %p5726_p11 = scmp.ne.s32.totalorder %s358_s2, %s5725_s30  ;;  %p5734_p13 = scmp.lt.s32.totalorder %s5725_s30, %s5725_s30 }
  0xc7   : > { %p5728_p3 = pnand %p5726_p11, %p6166_p7  ;;  %p5735_p0 = por %p5734_p13, %p5733_p12 }
  0xc9   : > { %p5729_p5 = pneg %p5728_p3 }
  0xcb   : > { %p5736_p2 = pnand %p5735_p0, %p5729_p5 }
  0xcd   : > { %5739 = shalt.err (!%p5736_p2)
}
  0xce   : > { %s8023_s7 = smov 16   ;;  %s8024_s8 = smov 256  }
  0xcf   : > { %5355 = dma.hbm_to_vmem [thread:$0]  (!%p8018_p4), %s8022_s3, 4096, %s358_s2, [#allocation11], %s8024_s8, %s8024_s8, %s8023_s7  }
  0xd0   : > { %s6020_s4 = smov [#allocation15]   ;;  %s8025_s5 = sld [smem:[#allocation77_spill]] }
  0xd1   : > { %s383_s6 = sshll.u32 %s6020_s4, 4  ;;  %s384_s6 = int_to_ptr.vmem [resolvable:$true] %s383_s6 }
  0xd6   : > { %s5740_s20 = scalar_lea.hbm %s8025_s5, 2048 }
  0xd7   : > { %p5741_p6 = scmp.ne.s32.totalorder %s8025_s5, %s5740_s20  ;;  %p5747_p8 = scmp.lt.u32.totalorder %s5740_s20, %s8025_s5 }
  0xd9   : > { %p5743_p9 = pnand %p5741_p6, %p6166_p7 }
  0xdb   : > { %p5744_p1 = pneg %p5743_p9 }
  0xdd   : > { %p5749_p10 = pnand %p5747_p8, %p5744_p1 }
  0xdf   : > { %5752 = shalt.err (!%p5749_p10)
}
  0xe0   : > { %s5753_s2 = scalar_lea.vmem %s384_s6, 2048  ;;  %p5761_p12 = scmp.lt.s32.totalorder %s384_s6, %s384_s6 }
  0xe1   : > { %p5754_p11 = scmp.ne.s32.totalorder %s384_s6, %s5753_s2  ;;  %p5762_p13 = scmp.lt.s32.totalorder %s5753_s2, %s5753_s2 }
  0xe3   : > { %p5756_p3 = pnand %p5754_p11, %p6166_p7  ;;  %p5763_p0 = por %p5762_p13, %p5761_p12 }
  0xe5   : > { %p5757_p5 = pneg %p5756_p3 }
  0xe7   : > { %p5764_p2 = pnand %p5763_p0, %p5757_p5 }
  0xe9   : > { %5767 = shalt.err (!%p5764_p2)
}
  0xea   : > { %s8026_s0 = smov 4   ;;  %s8027_s7 = smov 64  }
  0xeb   : > { %s8028_s26 = sld [smem:[#allocation33_spill]]  ;;  %s46_s28 = sadd.s32 1, %s5998_s21 }
  0xec   : > { %5361 = dma.hbm_to_vmem [thread:$0]  (!%p8018_p4), %s8025_s5, 2048, %s384_s6, [#allocation14], %s8027_s7, %s8027_s7, %s8026_s0  }
  0xed   : > { %s208_s8 = sadd.s32 1, %s5974_s15  ;;  %p47_p7 = scmp.ge.s32.totalorder %s46_s28, 4 }
  0xee   : > { %p215_p6 = scmp.ne.s32.totalorder %s5974_s15, %s5970_s14  ;;  %s7908_s10 = sand.u32 1, %s5974_s15  }
  0xef   : > { %s8260_s28 = smov (%p47_p7, %s46_s28), 0  ;;  %s8030_s27 = sadd.s32 1, %s6002_s22 }
  0xf0   : > { %8029 = sst [smem:[#allocation40_spill]] %s8260_s28  ;;  %s8262_s27 = smov (!%p47_p7, %s8030_s27), %s6002_s22 }
  0xf1   : > { %p221_p9 = scmp.ne.s32.totalorder %s5970_s14, %s8028_s26  ;;  %s205_s4 = ssub.s32 %s5998_s21, %s8260_s28 }
  0xf2   : > { %p8031_p1 = scmp.eq.s32.totalorder %s6006_s23, 0  ;;  %p51_p8 = scmp.ge.s32.totalorder %s8262_s27, 2 }
  0xf3   : > { %p206_p10 = scmp.eq.s32.totalorder %s205_s4, 0  ;;  %p8033_p11 = scmp.eq.s32.totalorder %s6139_s24, 0 }
  0xf4   : > { %p6379_p4 = por %p215_p6, %p8031_p1  ;;  %s6391_s9 = sshll.u32 %s7908_s10, 4 }
  0xf5   : > { %p6385_p3 = por %p221_p9, %p8033_p11  ;;  %s8264_s27 = smov (%p51_p8, %s8262_s27), 0 }
  0xf6   : > { %8035 = sst [smem:[#allocation41_spill]] %s8264_s27  ;;  %s179_s30 = ssub.s32 %s6002_s22, %s8264_s27 }
  0xf7   : > { %s6396_s20 = scalar_select %p206_p10, %s5974_s15, %s208_s8  }
  0xf8   : > { %p180_p5 = scmp.eq.s32.totalorder %s179_s30, 0  ;;  %s4259_s2 = sshll.u32 %s5998_s21, 8 }
  0xf9   : > { %s8036_s1 = sld [smem:[#allocation79_spill]]  ;;  %s422_s26 = scalar_lea.vmem [#allocation18], %s6391_s9 }
  0xfa   : > { %s429_s4 = sshll.u32 %s422_s26, 4  ;;  %s8037_s10 = sadd.s32 1, %s5986_s18  ;;  %s6412_s4 = int_to_ptr.vmem [resolvable:$true] %s429_s4 }
  0xfb   : > { %s6410_s3 = scalar_select %p180_p5, %s5986_s18, %s8037_s10  }
  0xfc   : > { %p8038_p12 = scmp.lt.s32.totalorder %s6006_s23, 8  ;;  %s8040_s7 = sld [smem:[#allocation80_spill]] }
  0xfe   : > { %p6418_p13 = pnand %p8038_p12, %p6379_p4 }
  0xff   : > { %s6404_s16 = scalar_lea.hbm %s8036_s1, %s4259_s2  ;;  %s5773_s26 = scalar_lea.hbm %s8036_s1, 1024 }
 0x100   : > { %s5768_s27 = scalar_lea.hbm %s6404_s16, 256  ;;  %p5770_p2 = pneg %p6418_p13 }
 0x101   : > { %p5769_p0 = scmp.ne.s32.totalorder %s6404_s16, %s5768_s27  ;;  %p5774_p9 = scmp.lt.u32.totalorder %s6404_s16, %s8036_s1 }
 0x102   : > { %s6425_s5 = scalar_lea.hbm %s8040_s7, %s4259_s2  ;;  %p5775_p1 = scmp.lt.u32.totalorder %s5773_s26, %s5768_s27 }
 0x103   : > { %p5771_p7 = pnand %p5770_p2, %p5769_p0  ;;  %p5777_p8 = scmp.lt.u32.totalorder %s5768_s27, %s6404_s16 }
 0x104   : > { %p5776_p4 = por %p5775_p1, %p5774_p9 }
 0x105   : > { %p5772_p6 = pneg %p5771_p7 }
 0x106   : > { %p5778_p10 = por %p5777_p8, %p5776_p4 }
 0x108   : > { %p5779_p11 = pnand %p5778_p10, %p5772_p6 }
 0x10a   : > { %5782 = shalt.err (!%p5779_p11)
}
 0x10b   : > { %s5783_s2 = scalar_lea.vmem %s6412_s4, 256  ;;  %s6021_s30 = smov [#allocation18]  }
 0x10c   : > { %p5784_p5 = scmp.ne.s32.totalorder %s6412_s4, %s5783_s2  ;;  %s5788_s0 = sshll.u32 %s6021_s30, 4  ;;  %s5789_s0 = int_to_ptr.vmem [resolvable:$false] %s5788_s0 }
 0x10d   : > { %s5790_s22 = scalar_lea.vmem %s5789_s0, 512  ;;  %p5791_p7 = scmp.lt.s32.totalorder %s6412_s4, %s5789_s0 }
 0x10e   : > { %p5786_p12 = pnand %p5784_p5, %p5770_p2  ;;  %p5792_p9 = scmp.lt.s32.totalorder %s5790_s22, %s5783_s2 }
 0x110   : > { %p5787_p0 = pneg %p5786_p12  ;;  %p5793_p1 = por %p5792_p9, %p5791_p7 }
 0x112   : > { %p5794_p4 = pnand %p5793_p1, %p5787_p0 }
 0x114   : > { %5797 = shalt.err (!%p5794_p4)
}
 0x115   : > { %5368 = dma.hbm_to_vmem [thread:$0]  (!%p6418_p13), %s6404_s16, 256, %s6412_s4, %s6253_s13, %s8021_s25, %s8021_s25, %s8020_s19  }
 0x116   : > { %s443_s28 = scalar_lea.vmem [#allocation19], %s6391_s9  ;;  %s8041_s10 = sand.u32 1, %s5974_s15  }
 0x117   : > { %s450_s27 = sshll.u32 %s443_s28, 4  ;;  %s6461_s6 = scalar_lea.sflag [#allocation20], %s8041_s10  ;;  %s6457_s27 = int_to_ptr.vmem [resolvable:$true] %s450_s27 }
 0x118   : > { %s5798_s26 = scalar_lea.hbm %s6425_s5, 256  ;;  %s5803_s0 = scalar_lea.hbm %s8040_s7, 1024 }
 0x119   : > { %p5799_p6 = scmp.ne.s32.totalorder %s6425_s5, %s5798_s26  ;;  %p5804_p11 = scmp.lt.u32.totalorder %s6425_s5, %s8040_s7 }
 0x11a   : > { %p5805_p5 = scmp.lt.u32.totalorder %s5803_s0, %s5798_s26  ;;  %p5807_p0 = scmp.lt.u32.totalorder %s5798_s26, %s6425_s5 }
 0x11b   : > { %p5801_p8 = pnand %p5799_p6, %p5770_p2 }
 0x11c   : > { %p5806_p12 = por %p5805_p5, %p5804_p11 }
 0x11d   : > { %p5802_p10 = pneg %p5801_p8 }
 0x11e   : > { %p5808_p7 = por %p5807_p0, %p5806_p12 }
 0x120   : > { %p5809_p9 = pnand %p5808_p7, %p5802_p10 }
 0x122   : > { %5812 = shalt.err (!%p5809_p9)
}
 0x123   : > { %s5813_s13 = scalar_lea.vmem %s6457_s27, 256  ;;  %s6022_s9 = smov [#allocation19]  }
 0x124   : > { %p5814_p1 = scmp.ne.s32.totalorder %s6457_s27, %s5813_s13  ;;  %s5818_s16 = sshll.u32 %s6022_s9, 4  ;;  %s5819_s16 = int_to_ptr.vmem [resolvable:$false] %s5818_s16 }
 0x125   : > { %s5820_s1 = scalar_lea.vmem %s5819_s16, 512  ;;  %p5821_p8 = scmp.lt.s32.totalorder %s6457_s27, %s5819_s16 }
 0x126   : > { %p5816_p4 = pnand %p5814_p1, %p5770_p2  ;;  %p5822_p11 = scmp.lt.s32.totalorder %s5820_s1, %s5813_s13 }
 0x128   : > { %p5817_p6 = pneg %p5816_p4  ;;  %p5823_p5 = por %p5822_p11, %p5821_p8 }
 0x12a   : > { %p5824_p12 = pnand %p5823_p5, %p5817_p6 }
 0x12c   : > { %5827 = shalt.err (!%p5824_p12)
}
 0x12d   : > { %5371 = dma.hbm_to_vmem [thread:$0]  (!%p6418_p13), %s6425_s5, 256, %s6457_s27, %s6461_s6, %s8021_s25, %s8021_s25, %s8020_s19  }
 0x12e   : > { %s8042_s4 = sld [smem:[#allocation38_spill]] }
 0x134   : > { %p8043_p2 = scmp.ne.s32.totalorder %s8042_s4, 0 }
 0x135   : > { %p8044_p10 = scmp.eq.s32.totalorder (!%p8043_p2), %s6139_s24, 0 }
 0x136   : > { %462 = sbr.rel (%p8043_p2) target bundleno = 1880 (0x758), region = 56 }
 0x13d   : > { %5929 = dma.done.wait (%p8044_p10), [#allocation8], 16   ;;  %p8045_p0 = pmov %p8044_p10 }
 0x13f   : > { %5931 = vsyncadd (%p8045_p0), [#allocation8], 4294967280  ;;  %p8046_p7 = pmov %p8045_p0 }
 0x140   : > { %p8047_p9 = pmov %p8045_p0 }
 0x141   : > { %5933 = dma.done.wait (%p8046_p7), [#allocation6], 2048  }
 0x142   : > { %5935 = vsyncadd (%p8047_p9), [#allocation6], 4294965248  ;;  %p8048_p1 = pmov %p8045_p0 }
 0x143   : > { %p8049_p13 = pmov %p8045_p0 }
 0x144   : > { %5937 = dma.done.wait (%p8048_p1), [#allocation11], 4608  }
 0x145   : > { %5939 = vsyncadd (%p8049_p13), [#allocation11], 4294962688  ;;  %p8050_p4 = pmov %p8045_p0 }
 0x146   : > { %p8051_p6 = pmov %p8045_p0 }
 0x147   : > { %5941 = dma.done.wait (%p8050_p4), [#allocation14], 6144  }
 0x148   : > { %5943 = vsyncadd (%p8051_p6), [#allocation14], 4294961152  ;;  %s488_s5 = sand.u32 1, %s6139_s24   ;;  %s6510_s19 = sand.u32 1, %s5982_s17  }
 0x149   : > { %s4195_s25 = sshll.u32 %s6510_s19, 6  ;;  %s489_s8 = scalar_lea.sflag [#allocation17], %s488_s5 }
 0x14a   : > { %s6513_s28 = scalar_lea.vmem [#allocation16], %s4195_s25  ;;  %p8052_p8 = scmp.ne.s32.totalorder %s8011_s29, 0 }
 0x14c   : > { %5945 = dma.done.wait (%p8052_p8), %s489_s8, 1024  }
 0x14d   : > { %5947 = vsyncadd (%p8052_p8), %s489_s8, 4294966272  ;;  %s499_s27 = sand.u32 1, %s5970_s14  }
 0x14e   : > { %s6520_s10 = sshll.u32 %s499_s27, 4 }
 0x14f   : > { %s501_s6 = scalar_lea.vmem [#allocation18], %s6520_s10 }
 0x150   : > { %5949 = dma.done.wait (%p6385_p3), %s489_s8, 256  }
 0x151   : > { %5951 = vsyncadd (%p6385_p3), %s489_s8, 4294967040  ;;  %s507_s24 = scalar_lea.sflag [#allocation20], %s499_s27  ;;  %s510_s26 = scalar_lea.vmem [#allocation19], %s6520_s10 }
 0x152   : > { %5953 = dma.done.wait (%p6385_p3), %s507_s24, 256  }
 0x153   : > { %5955 = vsyncadd (%p6385_p3), %s507_s24, 4294967040 }
 0x154   : > { %515 = sfence }
 0x155   : > { %s6532_s29 = scalar_lea.vmem [#allocation21], %s4195_s25  ;;  %s6534_s2 = scalar_lea.vmem [#allocation22], %s4195_s25 }
 0x156   : > { %s8053_s30 = sld [smem:[#allocation35_spill]] }
 0x15c   : > { %p4200_p11 = scmp.ne.s32.totalorder %s8053_s30, 0 }
 0x15e   : > { %569 = sbr.rel (%p4200_p11) target bundleno = 1253 (0x4e5), region = 96 }
 0x165   : > { %v574_v0 = vld [vmem:[#allocation9] sm:$0xff]  ;;  %v575_v1 = vld [vmem:[#allocation9 + $0x8] sm:$0xff]  ;;  %v576_v2 = vld [vmem:[#allocation9 + $0x10] sm:$0xff] }
 0x166   : > { %v591_v3 = vand.u32 4294901760, %v574_v0  ;;  %v594_v4 = vand.u32 4294901760, %v575_v1  ;;  %v577_v5 = vld [vmem:[#allocation9 + $0x18] sm:$0xff]  ;;  %v597_v6 = vand.u32 4294901760, %v576_v2  ;;  %v578_v7 = vld [vmem:[#allocation9 + $0x20] sm:$0xff]  ;;  %v579_v8 = vld [vmem:[#allocation9 + $0x28] sm:$0xff] }
 0x167   : > { %v600_v9 = vand.u32 4294901760, %v577_v5  ;;  %v603_v11 = vand.u32 4294901760, %v578_v7  ;;  %v606_v12 = vand.u32 4294901760, %v579_v8  ;;  %v6541_v14 = vld [vmem:[#allocation9 + $0x30] sm:$0xff]  ;;  %v6543_v15 = vld [vmem:[#allocation9 + $0x38] sm:$0xff]  ;;  %v570_v16 = vld [vmem:[#allocation10] sm:$0xff] }
 0x168   : > { %v6537_v10 = vpack.c.bf16 %v594_v4, %v591_v3  ;;  %v6547_v17 = vand.u32 4294901760, %v570_v16  ;;  %v609_v19 = vand.u32 4294901760, %v6541_v14  ;;  %v612_v20 = vand.u32 4294901760, %v6543_v15  ;;  %v6554_v21 = vld [vmem:[#allocation9 + $0x40] sm:$0xff]  ;;  %v6556_v22 = vld [vmem:[#allocation9 + $0x48] sm:$0xff]  ;;  %v584_v31 = vld [vmem:[#allocation9 + $0x50] sm:$0xff] }
 0x169   : > { %v6539_v13 = vpack.c.bf16 %v600_v9, %v597_v6  ;;  %v6550_v18 = vpack.c.bf16 %v606_v12, %v603_v11  ;;  %v571_v24 = vld [vmem:[#allocation10 + $0x8] sm:$0xff]  ;;  %v6563_v26 = vsub.f32 %v574_v0, %v591_v3  ;;  %v6565_v27 = vsub.f32 %v575_v1, %v594_v4  ;;  %v585_v32 = vld [vmem:[#allocation9 + $0x58] sm:$0xff]  ;;  %v586_v37 = vld [vmem:[#allocation9 + $0x60] sm:$0xff] }
 0x16a   : > { %4670 = vmatprep.subr.bf16.mxu0 %v6537_v10  ;;  %v6559_v23 = vsub.f32 %v570_v16, %v6547_v17  ;;  %v6572_v28 = vpack.c.bf16 %v612_v20, %v609_v19  ;;  %v615_v29 = vand.u32 4294901760, %v6554_v21  ;;  %v618_v30 = vand.u32 4294901760, %v6556_v22  ;;  %v587_v43 = vld [vmem:[#allocation9 + $0x68] sm:$0xff]  ;;  %v588_v44 = vld [vmem:[#allocation9 + $0x70] sm:$0xff]  ;;  %v589_v47 = vld [vmem:[#allocation9 + $0x78] sm:$0xff] }
 0x16b   : > { %4672 = vmatpush3.bf16.msra.mxu0 %v6537_v10  ;;  %v6579_v34 = vand.u32 4294901760, %v571_v24  ;;  %v6581_v35 = vsub.f32 %v576_v2, %v597_v6  ;;  %v621_v36 = vand.u32 4294901760, %v584_v31  ;;  %v714_v39 = vand.u32 4294901760, %v6563_v26  ;;  %v572_v63 = vld [vmem:[#allocation10 + $0x10] sm:$0xff] }
 0x16c   : > { %4674 = vmatprep.subr.bf16.mxu0 %v6539_v13  ;;  %v7915_v25 = vand.u32 4294901760, %v6559_v23  ;;  %v721_v40 = vand.u32 4294901760, %v6565_v27  ;;  %v6587_v41 = vpack.c.bf16 %v618_v30, %v615_v29  ;;  %v624_v42 = vand.u32 4294901760, %v585_v32 }
 0x16d   : > { %v6589_v45 = vsub.f32 %v577_v5, %v600_v9  ;;  %v6591_v46 = vsub.f32 %v578_v7, %v603_v11  ;;  %v6594_v48 = vsub.f32 %v571_v24, %v6579_v34  ;;  %v728_v49 = vand.u32 4294901760, %v6581_v35  ;;  %v573_v7 = vld [vmem:[#allocation10 + $0x18] sm:$0xff] }
 0x16e   : > { %v674_v33 = vsub.f32 %v6559_v23, %v7915_v25  ;;  %v6597_v50 = vsub.f32 %v579_v8, %v606_v12  ;;  %v627_v51 = vand.u32 4294901760, %v586_v37  ;;  %v630_v52 = vand.u32 4294901760, %v587_v43 }
 0x16f   : > { %4676 = vmatpush3.bf16.msra.mxu0 %v6539_v13  ;;  %v633_v53 = vand.u32 4294901760, %v588_v44  ;;  %v715_v54 = vsub.f32 %v6563_v26, %v714_v39  ;;  %v722_v55 = vsub.f32 %v6565_v27, %v721_v40  ;;  %v6607_v56 = vpack.c.bf16 %v624_v42, %v621_v36 }
 0x170   : > { %4678 = vmatprep.subr.bf16.mxu0 %v6550_v18  ;;  %v675_v38 = vand.u32 4294901760, %v674_v33  ;;  %v636_v57 = vand.u32 4294901760, %v589_v47  ;;  %v735_v58 = vand.u32 4294901760, %v6589_v45  ;;  %v742_v59 = vand.u32 4294901760, %v6591_v46 }
 0x171   : > { %v7914_v60 = vand.u32 4294901760, %v6594_v48  ;;  %v6615_v61 = vsub.f32 %v6581_v35, %v728_v49  ;;  %v749_v62 = vand.u32 4294901760, %v6597_v50  ;;  %v6619_v0 = vpack.c.bf16 %v630_v52, %v627_v51 }
 0x172   : > { %4453 = vmatprep.mubr.f32.mxu0 %v675_v38  ;;  %v716_v1 = vand.u32 4294901760, %v715_v54  ;;  %v723_v2 = vand.u32 4294901760, %v722_v55  ;;  %v6622_v3 = vpack.c.bf16 %v636_v57, %v633_v53  ;;  %v736_v4 = vsub.f32 %v6589_v45, %v735_v58 }
 0x173   : > { %4680 = vmatpush3.bf16.msra.mxu0 %v6550_v18  ;;  %v743_v5 = vsub.f32 %v6591_v46, %v742_v59  ;;  %v6626_v6 = vand.u32 4294901760, %v572_v63  ;;  %v684_v8 = vsub.f32 %v6594_v48, %v7914_v60  ;;  %v730_v9 = vand.u32 4294901760, %v6615_v61 }
 0x174   : > { %4682 = vmatprep.subr.bf16.mxu0 %v6572_v28  ;;  %v750_v11 = vsub.f32 %v6597_v50, %v749_v62  ;;  %v6636_v12 = vsub.f32 %v6541_v14, %v609_v19  ;;  %v6641_v16 = vsub.f32 %v6543_v15, %v612_v20  ;;  %v6644_v24 = vsub.f32 %v6554_v21, %v615_v29 }
 0x175   : > { %v6647_v33 = vsub.f32 %v6556_v22, %v618_v30  ;;  %v6650_v38 = vsub.f32 %v572_v63, %v6626_v6  ;;  %v4701_v54 = vpack.c.bf16 %v723_v2, %v716_v1  ;;  %v6653_v55 = vsub.f32 %v584_v31, %v621_v36 }
 0x176   : > { %v6655_v14 = vsub.f32 %v585_v32, %v624_v42  ;;  %v6657_v19 = vand.u32 4294901760, %v573_v7  ;;  %v6660_v15 = vsub.f32 %v586_v37, %v627_v51  ;;  %v6662_v20 = vsub.f32 %v587_v43, %v630_v52 }
 0x177   : > { %4684 = vmatpush3.bf16.msra.mxu0 %v6572_v28  ;;  %v7913_v21 = vand.u32 4294901760, %v6650_v38  ;;  %v6665_v22 = vsub.f32 %v588_v44, %v633_v53  ;;  %v685_v29 = vand.u32 4294901760, %v684_v8  ;;  %v737_v30 = vand.u32 4294901760, %v736_v4 }
 0x178   : > { %4686 = vmatprep.subr.bf16.mxu0 %v6587_v41  ;;  %v6667_v61 = vsub.f32 %v589_v47, %v636_v57  ;;  %v6670_v31 = vsub.f32 %v573_v7, %v6657_v19  ;;  %v756_v32 = vand.u32 4294901760, %v6636_v12  ;;  %v763_v36 = vand.u32 4294901760, %v6641_v16 }
 0x179   : > { %v770_v37 = vand.u32 4294901760, %v6644_v24  ;;  %v777_v42 = vand.u32 4294901760, %v6647_v33  ;;  %v784_v43 = vand.u32 4294901760, %v6653_v55  ;;  %v791_v44 = vand.u32 4294901760, %v6655_v14 }
 0x17a   : > { %v694_v47 = vsub.f32 %v6650_v38, %v7913_v21  ;;  %v7917_v51 = vand.u32 4294901760, %v6670_v31  ;;  %v798_v52 = vand.u32 4294901760, %v6660_v15  ;;  %v805_v53 = vand.u32 4294901760, %v6662_v20 }
 0x17b   : > { %4688 = vmatpush3.bf16.msra.mxu0 %v6587_v41  ;;  %v812_v57 = vand.u32 4294901760, %v6665_v22  ;;  %v6691_v63 = vpack.c.bf16 %v721_v40, %v714_v39  ;;  %v819_v1 = vand.u32 4294901760, %v6667_v61  ;;  %v6696_v2 = vpack.c.bf16 %v735_v58, %v728_v49 }
 0x17c   : > { %4690 = vmatprep.subr.bf16.mxu0 %v6607_v56  ;;  %v6698_v4 = vpack.c.bf16 %v749_v62, %v742_v59  ;;  %v6700_v7 = vpack.c.bf16 %v763_v36, %v756_v32  ;;  %v704_v8 = vsub.f32 %v6670_v31, %v7917_v51  ;;  %v6705_v21 = vpack.c.bf16 %v777_v42, %v770_v37 }
 0x17d   : > { %v6707_v60 = vpack.c.bf16 %v791_v44, %v784_v43  ;;  %v6709_v39 = vpack.c.bf16 %v805_v53, %v798_v52  ;;  %v744_v40 = vand.u32 4294901760, %v743_v5  ;;  %v751_v25 = vand.u32 4294901760, %v750_v11 }
 0x17e   : > { %8054 = vst [vmem:[#allocation42_spill] sm:$0xff] %v6700_v7  ;;  %8055 = vst [vmem:[#allocation43_spill] sm:$0xff] %v6705_v21  ;;  %v695_v49 = vand.u32 4294901760, %v694_v47  ;;  %v6712_v58 = vpack.c.bf16 %v819_v1, %v812_v57  ;;  %v4705_v59 = vpack.c.bf16 %v737_v30, %v730_v9  ;;  %v757_v62 = vsub.f32 %v6636_v12, %v756_v32 }
 0x17f   : > { %4692 = vmatpush3.bf16.msra.mxu0 %v6607_v56  ;;  %8056 = vst [vmem:[#allocation44_spill] sm:$0xff] %v6707_v60  ;;  %8057 = vst [vmem:[#allocation45_spill] sm:$0xff] %v6709_v39  ;;  %v764_v7 = vsub.f32 %v6641_v16, %v763_v36  ;;  %v705_v51 = vand.u32 4294901760, %v704_v8  ;;  %v4709_v21 = vpack.c.bf16 %v751_v25, %v744_v40 }
 0x180   : > { %4694 = vmatprep.subr.bf16.mxu0 %v6619_v0  ;;  %v758_v39 = vand.u32 4294901760, %v757_v62  ;;  %v771_v5 = vsub.f32 %v6644_v24, %v770_v37  ;;  %v778_v11 = vsub.f32 %v6647_v33, %v777_v42  ;;  %v785_v9 = vsub.f32 %v6653_v55, %v784_v43  ;;  %v1394_v62 = vld [vmem:[#allocation13 + $0x10] sm:$0xff] }
 0x181   : > { %v765_v60 = vand.u32 4294901760, %v764_v7  ;;  %v792_v25 = vsub.f32 %v6655_v14, %v791_v44  ;;  %v806_v42 = vsub.f32 %v6662_v20, %v805_v53  ;;  %v820_v8 = vsub.f32 %v6667_v61, %v819_v1 }
 0x182   : > { %v779_v32 = vand.u32 4294901760, %v778_v11  ;;  %v786_v37 = vand.u32 4294901760, %v785_v9  ;;  %v4733_v53 = vpack.c.bf16 %v6565_v27, %v6563_v26  ;;  %v4741_v1 = vpack.c.bf16 %v6597_v50, %v6591_v46  ;;  %v1393_v26 = vld [vmem:[#allocation13 + $0x8] sm:$0xff]  ;;  %v1395_v27 = vld [vmem:[#allocation13 + $0x18] sm:$0xff] }
 0x183   : > { %4696 = vmatpush3.bf16.msra.mxu0 %v6619_v0  ;;  %v4713_v30 = vpack.c.bf16 %v765_v60, %v758_v39  ;;  %v793_v47 = vand.u32 4294901760, %v792_v25  ;;  %v807_v7 = vand.u32 4294901760, %v806_v42  ;;  %v813_v60 = vsub.f32 %v6665_v22, %v812_v57  ;;  %v1397_v46 = vld [vmem:[#allocation13 + $0x28] sm:$0xff]  ;;  %v1399_v50 = vld [vmem:[#allocation13 + $0x38] sm:$0xff] }
 0x184   : > { %4698 = vmatprep.subr.bf16.mxu0 %v6622_v3  ;;  %v4737_v57 = vpack.c.bf16 %v6589_v45, %v6581_v35  ;;  %v4745_v40 = vpack.c.bf16 %v6641_v16, %v6636_v12  ;;  %v6738_v35 = vpack.c.bf16 %v6647_v33, %v6644_v24  ;;  %v1424_v45 = vand.u32 4294901760, %v1393_v26  ;;  %v1401_v24 = vld [vmem:[#allocation13 + $0x48] sm:$0xff] }
 0x185   : > { %v4721_v43 = vpack.c.bf16 %v793_v47, %v786_v37  ;;  %v814_v44 = vand.u32 4294901760, %v813_v60  ;;  %v6743_v12 = vpack.c.bf16 %v6655_v14, %v6653_v55  ;;  %v1430_v16 = vand.u32 4294901760, %v1394_v62  ;;  %v1400_v37 = vld [vmem:[#allocation13 + $0x40] sm:$0xff]  ;;  %v1402_v47 = vld [vmem:[#allocation13 + $0x50] sm:$0xff] }
 0x186   : > { %v1432_v11 = vand.u32 4294901760, %v1397_v46  ;;  %v1436_v9 = vand.u32 4294901760, %v1399_v50 }
 0x187   : > { %4700 = vmatpush3.bf16.msra.mxu0 %v6622_v3  ;;  %v6755_v55 = vsub.f32 %v1394_v62, %v1430_v16  ;;  %v1409_v62 = vld [vmem:[#allocation13 + $0x88] sm:$0xff] }
 0x188   : > { %4702 = vmatprep.subr.bf16.mxu0 %v4701_v54  ;;  %v6757_v14 = vpack.c.bf16 %v1436_v9, %v1432_v11 }
 0x18a   : > { %4454 = vmatmul.mubr.f32.vlgmr.msra.gmra.mrb[0].mxu0 %v685_v29  ;;  %v772_v29 = vand.u32 4294901760, %v771_v5  ;;  %8060 = vst [vmem:[#allocation48_spill] sm:$0xff] %v6757_v14 }
 0x18b   : > { %4704 = vmatpush3.bf16.msra.mxu0 %v4701_v54  ;;  %4456 = vmatprep.mubr.f32.mxu0 %v695_v49  ;;  %v799_v54 = vsub.f32 %v6660_v15, %v798_v52  ;;  %v821_v52 = vand.u32 4294901760, %v820_v8  ;;  %v1392_v49 = vld [vmem:[#allocation13] sm:$0xff] }
 0x18c   : > { %4706 = vmatprep.subr.bf16.mxu0 %v4705_v59  ;;  %v4717_v36 = vpack.c.bf16 %v779_v32, %v772_v29  ;;  %v1426_v5 = vand.u32 4294901760, %v1392_v49  ;;  %v1398_v29 = vld [vmem:[#allocation13 + $0x30] sm:$0xff]  ;;  %v6747_v32 = vsub.f32 %v1393_v26, %v1424_v45  ;;  %v1404_v26 = vld [vmem:[#allocation13 + $0x60] sm:$0xff] }
 0x18d   : > { %v4729_v39 = vpack.c.bf16 %v821_v52, %v814_v44  ;;  %v1438_v8 = vand.u32 4294901760, %v1398_v29  ;;  %v1442_v52 = vand.u32 4294901760, %v1400_v37 }
 0x18e   : > { %4457 = vmatmul.mubr.f32.gmra.mrb[2].mxu0 %v705_v51  ;;  %v800_v51 = vand.u32 4294901760, %v799_v54  ;;  %v6751_v54 = vsub.f32 %v1392_v49, %v1426_v5  ;;  %v6753_v42 = vpack.c.bf16 %v1430_v16, %v1426_v5  ;;  %v1411_v5 = vld [vmem:[#allocation13 + $0x98] sm:$0xff] }
 0x18f   : > { %4708 = vmatpush3.bf16.msra.mxu0 %v4705_v59  ;;  %4491 = vmatprep.mubr.f32.mxu0 %v6547_v17  ;;  %v1428_v59 = vand.u32 4294901760, %v1395_v27  ;;  %v6770_v49 = vsub.f32 %v1398_v29, %v1438_v8  ;;  %v1450_v29 = vand.u32 4294901760, %v1404_v26 }
 0x190   : > { %4710 = vmatprep.subr.bf16.mxu0 %v4709_v21  ;;  %8059 = vst [vmem:[#allocation47_spill] sm:$0xff] %v6753_v42 }
 0x191   : > { %v6745_v33 = vpack.c.bf16 %v1428_v59, %v1424_v45  ;;  %v6749_v25 = vsub.f32 %v1395_v27, %v1428_v59  ;;  %8062 = vst [vmem:[#allocation50_spill] sm:$0xff] %v6770_v49  ;;  %v1406_v59 = vld [vmem:[#allocation13 + $0x70] sm:$0xff] }
 0x193   : > { %4712 = vmatpush3.bf16.msra.mxu0 %v4709_v21  ;;  %v4725_v21 = vpack.c.bf16 %v807_v7, %v800_v51  ;;  %8058 = vst [vmem:[#allocation46_spill] sm:$0xff] %v6745_v33  ;;  %v6759_v51 = vsub.f32 %v1397_v46, %v1432_v11  ;;  %4958 = vmatprep.subr.bf16.mxu1 %v6745_v33 }
 0x194   : > { %4714 = vmatprep.subr.bf16.mxu0 %v4713_v30  ;;  %v6762_v7 = vsub.f32 %v1399_v50, %v1436_v9  ;;  %4960 = vmatpush1.bf16.msra.mxu1 %v6753_v42  ;;  %v6780_v11 = vsub.f32 %v1400_v37, %v1442_v52 }
 0x195   : > { %4962 = vmatprep.subr.bf16.mxu1 %v6757_v14 }
 0x196   : > { %8067 = vst [vmem:[#allocation55_spill] sm:$0xff] %v6780_v11 }
 0x197   : > { %4716 = vmatpush3.bf16.msra.mxu0 %v4713_v30  ;;  %v1396_v30 = vld [vmem:[#allocation13 + $0x20] sm:$0xff] }
 0x198   : > { %4718 = vmatprep.subr.bf16.mxu0 %v4717_v36  ;;  %v1434_v60 = vand.u32 4294901760, %v1396_v30 }
 0x19a   : > { %v6766_v27 = vpack.c.bf16 %v1438_v8, %v1434_v60  ;;  %v1410_v8 = vld [vmem:[#allocation13 + $0x90] sm:$0xff] }
 0x19b   : > { %4720 = vmatpush3.bf16.msra.mxu0 %v4717_v36  ;;  %v1403_v36 = vld [vmem:[#allocation13 + $0x58] sm:$0xff] }
 0x19c   : > { %4722 = vmatprep.subr.bf16.mxu0 %v4721_v43  ;;  %v1444_v44 = vand.u32 4294901760, %v1403_v36  ;;  %8061 = vst [vmem:[#allocation49_spill] sm:$0xff] %v6766_v27  ;;  %4964 = vmatpush1.bf16.msra.mxu1 %v6766_v27 }
 0x19e   : > { %v6776_v50 = vsub.f32 %v1403_v36, %v1444_v44  ;;  %v1456_v36 = vand.u32 4294901760, %v1409_v62 }
 0x19f   : > { %4724 = vmatpush3.bf16.msra.mxu0 %v4721_v43  ;;  %v1405_v43 = vld [vmem:[#allocation13 + $0x68] sm:$0xff] }
 0x1a0   : > { %4726 = vmatprep.subr.bf16.mxu0 %v4725_v21  ;;  %8065 = vst [vmem:[#allocation53_spill] sm:$0xff] %v6776_v50 }
 0x1a3   : > { %4728 = vmatpush3.bf16.msra.mxu0 %v4725_v21  ;;  %v1440_v21 = vand.u32 4294901760, %v1401_v24 }
 0x1a4   : > { %4730 = vmatprep.subr.bf16.mxu0 %v4729_v39 }
 0x1a5   : > { %v6772_v45 = vsub.f32 %v1401_v24, %v1440_v21  ;;  %v6774_v46 = vpack.c.bf16 %v1444_v44, %v1440_v21  ;;  %v1408_v24 = vld [vmem:[#allocation13 + $0x80] sm:$0xff]  ;;  %v1454_v21 = vand.u32 4294901760, %v1406_v59  ;;  %v1460_v44 = vand.u32 4294901760, %v1411_v5 }
 0x1a6   : > { %v1458_v50 = vand.u32 4294901760, %v1408_v24 }
 0x1a7   : > { %4732 = vmatpush3.bf16.msra.mxu0 %v4729_v39  ;;  %v1446_v39 = vand.u32 4294901760, %v1402_v47  ;;  %8063 = vst [vmem:[#allocation51_spill] sm:$0xff] %v6772_v45  ;;  %8064 = vst [vmem:[#allocation52_spill] sm:$0xff] %v6774_v46  ;;  %4966 = vmatprep.subr.bf16.mxu1 %v6774_v46  ;;  %v6800_v11 = vsub.f32 %v1411_v5, %v1460_v44 }
 0x1a8   : > { %4734 = vmatprep.subr.bf16.mxu0 %v4733_v53  ;;  %v6802_v45 = vsub.f32 %v1408_v24, %v1458_v50 }
 0x1a9   : > { %v6778_v16 = vpack.c.bf16 %v1446_v39, %v1442_v52  ;;  %v6782_v9 = vsub.f32 %v1402_v47, %v1446_v39  ;;  %v6793_v47 = vsub.f32 %v1404_v26, %v1450_v29  ;;  %v1413_v52 = vld [vmem:[#allocation13 + $0xa8] sm:$0xff]  ;;  %v1415_v39 = vld [vmem:[#allocation13 + $0xb8] sm:$0xff] }
 0x1aa   : > { %4492 = vmatmul.mubr.f32.vlgmr.msra.gmra.mrb[0].mxu0 %v6579_v34  ;;  %v1464_v26 = vand.u32 4294901760, %v1413_v52 }
 0x1ab   : > { %4736 = vmatpush3.bf16.msra.mxu0 %v4733_v53  ;;  %4494 = vmatprep.mubr.f32.mxu0 %v6626_v6  ;;  %v1407_v53 = vld [vmem:[#allocation13 + $0x78] sm:$0xff]  ;;  %8066 = vst [vmem:[#allocation54_spill] sm:$0xff] %v6778_v16  ;;  %8068 = vst [vmem:[#allocation56_spill] sm:$0xff] %v6782_v9  ;;  %v6797_v9 = vsub.f32 %v1409_v62, %v1456_v36 }
 0x1ac   : > { %4738 = vmatprep.subr.bf16.mxu0 %v4737_v57  ;;  %4968 = vmatpush1.bf16.msra.mxu1 %v6778_v16  ;;  %v6815_v62 = vsub.f32 %v1413_v52, %v1464_v26 }
 0x1ae   : > { %4495 = vmatmul.mubr.f32.gmra.mrb[2].mxu0 %v6657_v19 }
 0x1af   : > { %4740 = vmatpush3.bf16.msra.mxu0 %v4737_v57  ;;  %4529 = vmatprep.mubr.f32.mxu0 %v6559_v23  ;;  %v1448_v57 = vand.u32 4294901760, %v1405_v43 }
 0x1b0   : > { %4742 = vmatprep.subr.bf16.mxu0 %v4741_v1 }
 0x1b3   : > { %4744 = vmatpush3.bf16.msra.mxu0 %v4741_v1  ;;  %v6768_v1 = vsub.f32 %v1396_v30, %v1434_v60  ;;  %v1452_v30 = vand.u32 4294901760, %v1407_v53  ;;  %v6784_v60 = vsub.f32 %v1405_v43, %v1448_v57  ;;  %v1462_v43 = vand.u32 4294901760, %v1410_v8 }
 0x1b4   : > { %4746 = vmatprep.subr.bf16.mxu0 %v4745_v40 }
 0x1b5   : > { %8069 = vst [vmem:[#allocation57_spill] sm:$0xff] %v6784_v60  ;;  %v6789_v37 = vpack.c.bf16 %v1452_v30, %v1448_v57  ;;  %v6795_v60 = vsub.f32 %v1406_v59, %v1454_v21  ;;  %v6804_v49 = vsub.f32 %v1410_v8, %v1462_v43  ;;  %v6810_v57 = vpack.c.bf16 %v1454_v21, %v1450_v29  ;;  %v1423_v29 = vld [vmem:[#allocation13 + $0xf8] sm:$0xff]  ;;  %v1420_v21 = vld [vmem:[#allocation13 + $0xe0] sm:$0xff] }
 0x1b6   : > { %v1468_v59 = vand.u32 4294901760, %v1415_v39  ;;  %v1484_v8 = vand.u32 4294901760, %v1423_v29 }
 0x1b7   : > { %4748 = vmatpush3.bf16.msra.mxu0 %v4745_v40  ;;  %8070 = vst [vmem:[#allocation58_spill] sm:$0xff] %v6789_v37  ;;  %v6791_v40 = vsub.f32 %v1407_v53, %v1452_v30  ;;  %v4757_v53 = vpack.c.bf16 %v6662_v20, %v6660_v15  ;;  %8071 = vst [vmem:[#allocation59_spill] sm:$0xff] %v6810_v57  ;;  %4970 = vmatprep.subr.bf16.mxu1 %v6789_v37 }
 0x1b8   : > { %4750 = vmatprep.subr.bf16.mxu0 %v6738_v35  ;;  %v6817_v5 = vsub.f32 %v1415_v39, %v1468_v59  ;;  %v4761_v15 = vpack.c.bf16 %v6667_v61, %v6665_v22  ;;  %4972 = vmatpush1.bf16.msra.mxu1 %v6810_v57  ;;  %v6823_v20 = vpack.c.bf16 %v1462_v43, %v1458_v50  ;;  %v8075_v22 = vand.u32 4294901760, %v6559_v23  ;;  %v1421_v50 = vld [vmem:[#allocation13 + $0xe8] sm:$0xff] }
 0x1b9   : > { %v6826_v30 = vpack.c.bf16 %v1468_v59, %v1464_v26  ;;  %v8076_v23 = vand.u32 4294901760, %v6594_v48  ;;  %v8077_v61 = vand.u32 4294901760, %v6650_v38  ;;  %v1480_v24 = vand.u32 4294901760, %v1421_v50 }
 0x1ba   : > { %8073 = vst [vmem:[#allocation61_spill] sm:$0xff] %v6823_v20  ;;  %v1545_v59 = vand.u32 4294901760, %v6747_v32 }
 0x1bb   : > { %4752 = vmatpush3.bf16.msra.mxu0 %v6738_v35  ;;  %v6813_v35 = vpack.c.bf16 %v1460_v44, %v1456_v36  ;;  %8074 = vst [vmem:[#allocation62_spill] sm:$0xff] %v6826_v30  ;;  %v1422_v36 = vld [vmem:[#allocation13 + $0xf0] sm:$0xff]  ;;  %v1482_v44 = vand.u32 4294901760, %v1420_v21 }
 0x1bc   : > { %4754 = vmatprep.subr.bf16.mxu0 %v6743_v12  ;;  %v1486_v43 = vand.u32 4294901760, %v1422_v36 }
 0x1bd   : > { %8072 = vst [vmem:[#allocation60_spill] sm:$0xff] %v6813_v35  ;;  %4974 = vmatprep.subr.bf16.mxu1 %v6813_v35 }
 0x1be   : > { %4976 = vmatpush1.bf16.msra.mxu1 %v6823_v20  ;;  %v6926_v26 = vpack.c.bf16 %v1486_v43, %v1482_v44 }
 0x1bf   : > { %4756 = vmatpush3.bf16.msra.mxu0 %v6743_v12  ;;  %4978 = vmatprep.subr.bf16.mxu1 %v6826_v30  ;;  %v8078_v12 = vand.u32 4294901760, %v6670_v31 }
 0x1c0   : > { %4758 = vmatprep.subr.bf16.mxu0 %v4757_v53  ;;  %8087 = vst [vmem:[#allocation63_spill] sm:$0xff] %v6926_v26 }
 0x1c3   : > { %4760 = vmatpush3.bf16.msra.mxu0 %v4757_v53  ;;  %v6924_v53 = vpack.c.bf16 %v1484_v8, %v1480_v24 }
 0x1c4   : > { %4762 = vmatprep.subr.bf16.mxu0 %v4761_v15 }
 0x1c7   : > { %4764 = vmatpush3.bf16.msra.mxu0 %v4761_v15  ;;  %v1557_v15 = vand.u32 4294901760, %v6749_v25 }
 0x1c8   : > { %4766 = vmatprep.subr.bf16.mxu0 %v6537_v10 }
 0x1ca   : > { %4530 = vmatmul.mubr.f32.vlgmr.msra.gmra.mrb[0].mxu0 %v6594_v48  ;;  %v8079_v48 = vld [vmem:[#allocation42_spill] sm:$0xff] }
 0x1cb   : > { %4768 = vmatpush3.bf16.msra.mxu0 %v6537_v10  ;;  %4532 = vmatprep.mubr.f32.mxu0 %v6650_v38  ;;  %v8081_v38 = vld [vmem:[#allocation44_spill] sm:$0xff] }
 0x1cc   : > { %4770 = vmatprep.subr.bf16.mxu0 %v6539_v13 }
 0x1ce   : > { %4533 = vmatmul.mubr.f32.gmra.mrb[2].mxu0 %v6670_v31  ;;  %v8082_v31 = vld [vmem:[#allocation45_spill] sm:$0xff] }
 0x1cf   : > { %4772 = vmatpush3.bf16.msra.mxu0 %v6539_v13  ;;  %4567 = vmatprep.mubr.f32.mxu0 %v8075_v22  ;;  %8086 = vst [vmem:[#allocation45_spill] sm:$0xff] %v6924_v53  ;;  %v1551_v22 = vand.u32 4294901760, %v6751_v54 }
 0x1d0   : > { %4774 = vmatprep.subr.bf16.mxu0 %v6550_v18 }
 0x1d3   : > { %4776 = vmatpush3.bf16.msra.mxu0 %v6550_v18 }
 0x1d4   : > { %4778 = vmatprep.subr.bf16.mxu0 %v6572_v28 }
 0x1d7   : > { %4780 = vmatpush3.bf16.msra.mxu0 %v6572_v28 }
 0x1d8   : > { %4782 = vmatprep.subr.bf16.mxu0 %v6587_v41 }
 0x1db   : > { %4784 = vmatpush3.bf16.msra.mxu0 %v6587_v41 }
 0x1dc   : > { %4786 = vmatprep.subr.bf16.mxu0 %v6607_v56 }
 0x1df   : > { %4788 = vmatpush3.bf16.msra.mxu0 %v6607_v56 }
 0x1e0   : > { %4790 = vmatprep.subr.bf16.mxu0 %v6619_v0 }
 0x1e3   : > { %4792 = vmatpush3.bf16.msra.mxu0 %v6619_v0 }
 0x1e4   : > { %4794 = vmatprep.subr.bf16.mxu0 %v6622_v3 }
 0x1e7   : > { %4796 = vmatpush3.bf16.msra.mxu0 %v6622_v3 }
 0x1e8   : > { %4798 = vmatprep.subr.bf16.mxu0 %v6691_v63 }
 0x1ea   : > { %4568 = vmatmul.mubr.f32.vlgmr.msra.gmra.mrb[0].mxu0 %v8076_v23  ;;  %v1563_v23 = vand.u32 4294901760, %v6755_v55 }
 0x1eb   : > { %4800 = vmatpush3.bf16.msra.mxu0 %v6691_v63  ;;  %4570 = vmatprep.mubr.f32.mxu0 %v8077_v61  ;;  %v8080_v63 = vld [vmem:[#allocation43_spill] sm:$0xff]  ;;  %v4989_v61 = vpack.c.bf16 %v1557_v15, %v1545_v59 }
 0x1ec   : > { %4802 = vmatprep.subr.bf16.mxu0 %v6696_v2 }
 0x1ee   : > { %4571 = vmatmul.mubr.f32.gmra.mrb[2].mxu0 %v8078_v12 }
 0x1ef   : > { %4804 = vmatpush3.bf16.msra.mxu0 %v6696_v2  ;;  %4605 = vmatprep.mubr.f32.mxu0 %v6547_v17 }
 0x1f0   : > { %4806 = vmatprep.subr.bf16.mxu0 %v6698_v4 }
 0x1f3   : > { %4808 = vmatpush3.bf16.msra.mxu0 %v6698_v4 }
 0x1f4   : > { %4810 = vmatprep.subr.bf16.mxu0 %v8079_v48 }
 0x1f7   : > { %4812 = vmatpush3.bf16.msra.mxu0 %v8079_v48 }
 0x1f8   : > { %4814 = vmatprep.subr.bf16.mxu0 %v8080_v63 }
 0x1fb   : > { %4816 = vmatpush3.bf16.msra.mxu0 %v8080_v63 }
 0x1fc   : > { %4818 = vmatprep.subr.bf16.mxu0 %v8081_v38 }
 0x1ff   : > { %4820 = vmatpush3.bf16.msra.mxu0 %v8081_v38 }
 0x200   : > { %4822 = vmatprep.subr.bf16.mxu0 %v8082_v31 }
 0x203   : > { %4824 = vmatpush3.bf16.msra.mxu0 %v8082_v31  ;;  %v6944_v31 = vsub.f32 %v1421_v50, %v1480_v24  ;;  %v8088_v24 = vld [vmem:[#allocation50_spill] sm:$0xff] }
 0x204   : > { %4826 = vmatprep.subr.bf16.mxu0 %v6712_v58 }
 0x207   : > { %4828 = vmatpush3.bf16.msra.mxu0 %v6712_v58 }
 0x208   : > { %4830 = vmatprep.subr.bf16.mxu0 %v6537_v10 }
 0x20a   : > { %4606 = vmatmul.mubr.f32.vlgmr.msra.gmra.mrb[0].mxu0 %v6579_v34 }
 0x20b   : > { %4832 = vmatpush3.bf16.msra.mxu0 %v6537_v10  ;;  %4608 = vmatprep.mubr.f32.mxu0 %v6626_v6  ;;  %v1412_v10 = vld [vmem:[#allocation13 + $0xa0] sm:$0xff] }
 0x20c   : > { %4834 = vmatprep.subr.bf16.mxu0 %v6539_v13 }
 0x20e   : > { %4609 = vmatmul.mubr.f32.gmra.mrb[2].mxu0 %v6657_v19 }
 0x20f   : > { %4836 = vmatpush3.bf16.msra.mxu0 %v6539_v13  ;;  %4643 = vmatprep.mubr.f32.mxu0 %v6547_v17  ;;  %v1414_v13 = vld [vmem:[#allocation13 + $0xb0] sm:$0xff]  ;;  %v1466_v17 = vand.u32 4294901760, %v1412_v10 }
 0x210   : > { %4838 = vmatprep.subr.bf16.mxu0 %v6550_v18 }
 0x211   : > { %v6920_v52 = vsub.f32 %v1412_v10, %v1466_v17  ;;  %v6946_v10 = vsub.f32 %v1423_v29, %v1484_v8  ;;  %v1575_v29 = vand.u32 4294901760, %v6768_v1  ;;  %v1587_v8 = vand.u32 4294901760, %v8088_v24 }
 0x213   : > { %4840 = vmatpush3.bf16.msra.mxu0 %v6550_v18  ;;  %v1470_v18 = vand.u32 4294901760, %v1414_v13 }
 0x214   : > { %4842 = vmatprep.subr.bf16.mxu0 %v6572_v28 }
 0x215   : > { %v6922_v39 = vsub.f32 %v1414_v13, %v1470_v18  ;;  %v6948_v13 = vsub.f32 %v1420_v21, %v1482_v44 }
 0x217   : > { %4844 = vmatpush3.bf16.msra.mxu0 %v6572_v28  ;;  %v6908_v28 = vpack.c.bf16 %v1470_v18, %v1466_v17  ;;  %v6950_v17 = vsub.f32 %v1422_v36, %v1486_v43  ;;  %v6952_v18 = vpack.c.bf16 %v1563_v23, %v1551_v22 }
 0x218   : > { %4846 = vmatprep.subr.bf16.mxu0 %v6587_v41 }
 0x219   : > { %8083 = vst [vmem:[#allocation42_spill] sm:$0xff] %v6908_v28  ;;  %4980 = vmatpush1.bf16.msra.mxu1 %v6908_v28 }
 0x21b   : > { %4848 = vmatpush3.bf16.msra.mxu0 %v6587_v41  ;;  %v1419_v41 = vld [vmem:[#allocation13 + $0xd8] sm:$0xff] }
 0x21c   : > { %4850 = vmatprep.subr.bf16.mxu0 %v6607_v56 }
 0x21f   : > { %4852 = vmatpush3.bf16.msra.mxu0 %v6607_v56 }
 0x220   : > { %4854 = vmatprep.subr.bf16.mxu0 %v6619_v0 }
 0x223   : > { %4856 = vmatpush3.bf16.msra.mxu0 %v6619_v0  ;;  %v1476_v0 = vand.u32 4294901760, %v1419_v41 }
 0x224   : > { %4858 = vmatprep.subr.bf16.mxu0 %v6622_v3 }
 0x225   : > { %v6938_v48 = vsub.f32 %v1419_v41, %v1476_v0  ;;  %v1558_v41 = vsub.f32 %v6749_v25, %v1557_v15  ;;  %v6983_v15 = vpack.c.bf16 %v1587_v8, %v1575_v29 }
 0x227   : > { %4860 = vmatpush3.bf16.msra.mxu0 %v6622_v3  ;;  %v1416_v3 = vld [vmem:[#allocation13 + $0xc0] sm:$0xff]  ;;  %v1559_v50 = vand.u32 4294901760, %v1558_v41  ;;  %v8090_v41 = vld [vmem:[#allocation53_spill] sm:$0xff] }
 0x228   : > { %4862 = vmatprep.subr.bf16.mxu0 %v6745_v33 }
 0x22a   : > { %4644 = vmatmul.mubr.f32.vlgmr.msra.gmra.mrb[0].mxu0 %v6579_v34  ;;  %v1417_v34 = vld [vmem:[#allocation13 + $0xc8] sm:$0xff] }
 0x22b   : > { %4646 = vmatprep.mubr.f32.mxu0 %v6626_v6  ;;  %4864 = vmatpush1.bf16.msra.mxu0 %v6753_v42  ;;  %v1472_v56 = vand.u32 4294901760, %v1417_v34  ;;  %v1418_v6 = vld [vmem:[#allocation13 + $0xd0] sm:$0xff] }
 0x22c   : > { %4866 = vmatprep.subr.bf16.mxu0 %v6757_v14  ;;  %v1478_v2 = vand.u32 4294901760, %v1418_v6 }
 0x22d   : > { %v6912_v4 = vpack.c.bf16 %v1476_v0, %v1472_v56  ;;  %v6936_v12 = vsub.f32 %v1417_v34, %v1472_v56  ;;  %v1546_v34 = vsub.f32 %v6747_v32, %v1545_v59  ;;  %v7927_v56 = vmov 0.0  }
 0x22e   : > { %4647 = vmatmul.mubr.f32.gmra.mrb[2].mxu0 %v6657_v19  ;;  %v1474_v19 = vand.u32 4294901760, %v1416_v3  ;;  %v6942_v38 = vsub.f32 %v1418_v6, %v1478_v2  ;;  %2023 = vmatprep.mubr.f32.mxu1 %v7927_v56  ;;  %3236 = vst [vmem:[#allocation4] sm:$0xff] %v7927_v56  ;;  %3237 = vst [vmem:[#allocation4 + $0x8] sm:$0xff] %v7927_v56  ;;  %v1569_v0 = vand.u32 4294901760, %v6759_v51 }
 0x22f   : > { %4868 = vmatpush1.bf16.msra.mxu0 %v6766_v27  ;;  %8084 = vst [vmem:[#allocation43_spill] sm:$0xff] %v6912_v4  ;;  %4982 = vmatprep.subr.bf16.mxu1 %v6912_v4  ;;  %3238 = vst [vmem:[#allocation4 + $0x10] sm:$0xff] %v7927_v56  ;;  %v1552_v6 = vsub.f32 %v6751_v54, %v1551_v22  ;;  %v8089_v22 = vld [vmem:[#allocation51_spill] sm:$0xff] }
 0x230   : > { %4870 = vmatprep.subr.bf16.mxu0 %v6774_v46  ;;  %v6914_v58 = vpack.c.bf16 %v1478_v2, %v1474_v19  ;;  %v6940_v63 = vsub.f32 %v1416_v3, %v1474_v19  ;;  %3239 = vst [vmem:[#allocation4 + $0x18] sm:$0xff] %v7927_v56  ;;  %3240 = vst [vmem:[#allocation4 + $0x20] sm:$0xff] %v7927_v56  ;;  %1520 = vmatprep.mubr.f32.mxu0 %v7927_v56  ;;  %v1581_v3 = vand.u32 4294901760, %v6762_v7 }
 0x231   : > { %3241 = vst [vmem:[#allocation4 + $0x28] sm:$0xff] %v7927_v56  ;;  %3242 = vst [vmem:[#allocation4 + $0x30] sm:$0xff] %v7927_v56  ;;  %v1564_v19 = vsub.f32 %v6755_v55, %v1563_v23  ;;  %v1547_v2 = vand.u32 4294901760, %v1546_v34  ;;  %v1553_v36 = vand.u32 4294901760, %v1552_v6  ;;  %v1570_v43 = vsub.f32 %v6759_v51, %v1569_v0 }
 0x232   : > { %8085 = vst [vmem:[#allocation44_spill] sm:$0xff] %v6914_v58  ;;  %4984 = vmatpush1.bf16.msra.mxu1 %v6914_v58  ;;  %3243 = vst [vmem:[#allocation4 + $0x38] sm:$0xff] %v7927_v56  ;;  %v6980_v21 = vpack.c.bf16 %v1581_v3, %v1569_v0  ;;  %v1588_v6 = vsub.f32 %v8088_v24, %v1587_v8 }
 0x233   : > { %4872 = vmatpush1.bf16.msra.mxu0 %v6778_v16  ;;  %4986 = vmatprep.subr.bf16.mxu1 %v6924_v53  ;;  %3244 = vst [vmem:[#allocation4 + $0x40] sm:$0xff] %v7927_v56  ;;  %3245 = vst [vmem:[#allocation4 + $0x48] sm:$0xff] %v7927_v56  ;;  %v1565_v44 = vand.u32 4294901760, %v1564_v19  ;;  %v4893_v59 = vpack.c.bf16 %v1559_v50, %v1547_v2  ;;  %v1571_v34 = vand.u32 4294901760, %v1570_v43  ;;  %v8091_v19 = vld [vmem:[#allocation55_spill] sm:$0xff]  ;;  %v8092_v2 = vld [vmem:[#allocation56_spill] sm:$0xff] }
 0x234   : > { %4874 = vmatprep.subr.bf16.mxu0 %v6789_v37  ;;  %3246 = vst [vmem:[#allocation4 + $0x50] sm:$0xff] %v7927_v56  ;;  %3247 = vst [vmem:[#allocation4 + $0x58] sm:$0xff] %v7927_v56  ;;  %v1599_v0 = vand.u32 4294901760, %v8091_v19  ;;  %v1611_v50 = vand.u32 4294901760, %v8092_v2  ;;  %v1589_v43 = vand.u32 4294901760, %v1588_v6 }
 0x235   : > { %3248 = vst [vmem:[#allocation4 + $0x60] sm:$0xff] %v7927_v56  ;;  %3249 = vst [vmem:[#allocation4 + $0x68] sm:$0xff] %v7927_v56  ;;  %v6987_v23 = vpack.c.bf16 %v1565_v44, %v1553_v36 }
 0x236   : > { %4988 = vmatpush1.bf16.msra.mxu1 %v6926_v26  ;;  %3250 = vst [vmem:[#allocation4 + $0x70] sm:$0xff] %v7927_v56  ;;  %3251 = vst [vmem:[#allocation4 + $0x78] sm:$0xff] %v7927_v56  ;;  %v1593_v56 = vand.u32 4294901760, %v8089_v22 }
 0x237   : > { %4876 = vmatpush1.bf16.msra.mxu0 %v6810_v57  ;;  %4990 = vmatprep.subr.bf16.mxu1 %v4989_v61  ;;  %v1582_v61 = vsub.f32 %v6762_v7, %v1581_v3 }
 0x238   : > { %4878 = vmatprep.subr.bf16.mxu0 %v6813_v35  ;;  %v1600_v35 = vsub.f32 %v8091_v19, %v1599_v0 }
 0x23a   : > { %v1601_v6 = vand.u32 4294901760, %v1600_v35  ;;  %v1647_v35 = vand.u32 4294901760, %v6802_v45 }
 0x23b   : > { %4880 = vmatpush1.bf16.msra.mxu0 %v6823_v20  ;;  %v1629_v20 = vand.u32 4294901760, %v6791_v40 }
 0x23c   : > { %4882 = vmatprep.subr.bf16.mxu0 %v6826_v30  ;;  %v7000_v30 = vpack.c.bf16 %v1611_v50, %v1599_v0  ;;  %v1648_v33 = vsub.f32 %v6802_v45, %v1647_v35 }
 0x23d   : > { %v1630_v0 = vsub.f32 %v6791_v40, %v1629_v20 }
 0x23f   : > { %4884 = vmatpush1.bf16.msra.mxu0 %v6908_v28  ;;  %v1594_v28 = vsub.f32 %v8089_v22, %v1593_v56  ;;  %v1631_v46 = vand.u32 4294901760, %v1630_v0  ;;  %v1677_v0 = vand.u32 4294901760, %v6817_v5 }
 0x240   : > { %4886 = vmatprep.subr.bf16.mxu0 %v6912_v4 }
 0x243   : > { %4888 = vmatpush1.bf16.msra.mxu0 %v6914_v58  ;;  %v1583_v58 = vand.u32 4294901760, %v1582_v61  ;;  %v1595_v61 = vand.u32 4294901760, %v1594_v28 }
 0x244   : > { %4890 = vmatprep.subr.bf16.mxu0 %v6924_v53  ;;  %v1576_v53 = vsub.f32 %v6768_v1, %v1575_v29  ;;  %v8093_v29 = vld [vmem:[#allocation57_spill] sm:$0xff] }
 0x245   : > { %v6998_v44 = vpack.c.bf16 %v1583_v58, %v1571_v34  ;;  %v1635_v58 = vand.u32 4294901760, %v6795_v60 }
 0x246   : > { %v1577_v3 = vand.u32 4294901760, %v1576_v53  ;;  %v1612_v53 = vsub.f32 %v8092_v2, %v1611_v50  ;;  %v1653_v50 = vand.u32 4294901760, %v6800_v11 }
 0x247   : > { %4892 = vmatpush1.bf16.msra.mxu0 %v6926_v26  ;;  %v1605_v26 = vand.u32 4294901760, %v8090_v41 }
 0x248   : > { %4894 = vmatprep.subr.bf16.mxu0 %v4893_v59  ;;  %v1617_v59 = vand.u32 4294901760, %v8093_v29  ;;  %v7005_v57 = vpack.c.bf16 %v1589_v43, %v1577_v3  ;;  %v1641_v3 = vand.u32 4294901760, %v6797_v9 }
 0x249   : > { %v6994_v4 = vpack.c.bf16 %v1605_v26, %v1593_v56  ;;  %v1606_v36 = vsub.f32 %v8090_v41, %v1605_v26  ;;  %v1623_v56 = vand.u32 4294901760, %v6793_v47 }
 0x24a   : > { %v7012_v34 = vpack.c.bf16 %v1629_v20, %v1617_v59  ;;  %v1618_v28 = vsub.f32 %v8093_v29, %v1617_v59  ;;  %v1659_v59 = vand.u32 4294901760, %v6804_v49  ;;  %v1642_v14 = vsub.f32 %v6797_v9, %v1641_v3 }
 0x24b   : > { %v1607_v8 = vand.u32 4294901760, %v1606_v36  ;;  %v1613_v36 = vand.u32 4294901760, %v1612_v53  ;;  %v7015_v37 = vpack.c.bf16 %v1635_v58, %v1623_v56  ;;  %v1624_v16 = vsub.f32 %v6793_v47, %v1623_v56 }
 0x24c   : > { %v1619_v43 = vand.u32 4294901760, %v1618_v28  ;;  %v7026_v53 = vpack.c.bf16 %v1653_v50, %v1641_v3  ;;  %v7031_v42 = vpack.c.bf16 %v1659_v59, %v1647_v35  ;;  %v1654_v56 = vsub.f32 %v6800_v11, %v1653_v50 }
 0x24d   : > { %v7010_v26 = vpack.c.bf16 %v1607_v8, %v1595_v61  ;;  %8094 = vst [vmem:[#allocation50_spill] sm:$0xff] %v7015_v37  ;;  %v1636_v61 = vsub.f32 %v6795_v60, %v1635_v58  ;;  %v7022_v8 = vpack.c.bf16 %v1613_v36, %v1601_v6  ;;  %v1625_v27 = vand.u32 4294901760, %v1624_v16 }
 0x24e   : > { %8095 = vst [vmem:[#allocation51_spill] sm:$0xff] %v7026_v53  ;;  %v7029_v28 = vpack.c.bf16 %v1631_v46, %v1619_v43  ;;  %8097 = vst [vmem:[#allocation55_spill] sm:$0xff] %v7031_v42  ;;  %v1665_v58 = vand.u32 4294901760, %v6815_v62  ;;  %v1643_v36 = vand.u32 4294901760, %v1642_v14  ;;  %v1655_v53 = vand.u32 4294901760, %v1654_v56 }
 0x24f   : > { %v1637_v20 = vand.u32 4294901760, %v1636_v61  ;;  %v1660_v16 = vsub.f32 %v6804_v49, %v1659_v59  ;;  %v1671_v3 = vand.u32 4294901760, %v6920_v52  ;;  %v1683_v46 = vand.u32 4294901760, %v6922_v39 }
 0x250   : > { %8096 = vst [vmem:[#allocation53_spill] sm:$0xff] %v7029_v28  ;;  %v7042_v43 = vpack.c.bf16 %v1677_v0, %v1665_v58  ;;  %v1649_v61 = vand.u32 4294901760, %v1648_v33  ;;  %v1666_v50 = vsub.f32 %v6815_v62, %v1665_v58  ;;  %v1689_v35 = vand.u32 4294901760, %v6936_v12 }
 0x251   : > { %v7035_v6 = vpack.c.bf16 %v1637_v20, %v1625_v27  ;;  %v1678_v27 = vsub.f32 %v6817_v5, %v1677_v0  ;;  %v7046_v20 = vpack.c.bf16 %v1655_v53, %v1643_v36  ;;  %v1661_v14 = vand.u32 4294901760, %v1660_v16 }
 0x252   : > { %8099 = vst [vmem:[#allocation57_spill] sm:$0xff] %v7042_v43  ;;  %v7048_v42 = vpack.c.bf16 %v1683_v46, %v1671_v3  ;;  %v1667_v56 = vand.u32 4294901760, %v1666_v50  ;;  %v1672_v28 = vsub.f32 %v6920_v52, %v1671_v3  ;;  %v1684_v33 = vsub.f32 %v6922_v39, %v1683_v46 }
 0x253   : > { %8098 = vst [vmem:[#allocation56_spill] sm:$0xff] %v7035_v6  ;;  %8100 = vst [vmem:[#allocation64_spill] sm:$0xff] %v7046_v20  ;;  %v1679_v59 = vand.u32 4294901760, %v1678_v27  ;;  %v1701_v6 = vand.u32 4294901760, %v6938_v48  ;;  %v7053_v37 = vpack.c.bf16 %v1661_v14, %v1649_v61  ;;  %v1695_v58 = vand.u32 4294901760, %v6940_v63 }
 0x254   : > { %8101 = vst [vmem:[#allocation65_spill] sm:$0xff] %v7048_v42  ;;  %v1707_v53 = vand.u32 4294901760, %v6942_v38  ;;  %v1673_v16 = vand.u32 4294901760, %v1672_v28  ;;  %v1690_v50 = vsub.f32 %v6936_v12, %v1689_v35  ;;  %v1685_v27 = vand.u32 4294901760, %v1684_v33 }
 0x255   : > { %8102 = vst [vmem:[#allocation66_spill] sm:$0xff] %v7053_v37  ;;  %v7058_v36 = vpack.c.bf16 %v1679_v59, %v1667_v56  ;;  %v7060_v0 = vpack.c.bf16 %v1701_v6, %v1689_v35  ;;  %v1702_v3 = vsub.f32 %v6938_v48, %v1701_v6  ;;  %v1713_v61 = vand.u32 4294901760, %v6944_v31 }
 0x256   : > { %v7063_v42 = vpack.c.bf16 %v1707_v53, %v1695_v58  ;;  %v1691_v14 = vand.u32 4294901760, %v1690_v50  ;;  %v1725_v46 = vand.u32 4294901760, %v6946_v10  ;;  %v1696_v37 = vsub.f32 %v6940_v63, %v1695_v58 }
 0x257   : > { %8103 = vst [vmem:[#allocation67_spill] sm:$0xff] %v7058_v36  ;;  %8104 = vst [vmem:[#allocation68_spill] sm:$0xff] %v7060_v0  ;;  %v1708_v56 = vsub.f32 %v6942_v38, %v1707_v53  ;;  %v7070_v59 = vpack.c.bf16 %v1685_v27, %v1673_v16  ;;  %v1703_v0 = vand.u32 4294901760, %v1702_v3  ;;  %v1719_v28 = vand.u32 4294901760, %v6948_v13 }
 0x258   : > { %8105 = vst [vmem:[#allocation69_spill] sm:$0xff] %v7063_v42  ;;  %v1731_v35 = vand.u32 4294901760, %v6950_v17  ;;  %v7074_v33 = vpack.c.bf16 %v1725_v46, %v1713_v61  ;;  %v1697_v42 = vand.u32 4294901760, %v1696_v37  ;;  %v1714_v36 = vsub.f32 %v6944_v31, %v1713_v61 }
 0x259   : > { %8106 = vst [vmem:[#allocation70_spill] sm:$0xff] %v7070_v59  ;;  %v1709_v6 = vand.u32 4294901760, %v1708_v56  ;;  %v7077_v50 = vpack.c.bf16 %v1703_v0, %v1691_v14  ;;  %v1726_v58 = vsub.f32 %v6946_v10, %v1725_v46  ;;  %v1720_v53 = vsub.f32 %v6948_v13, %v1719_v28 }
 0x25a   : > { %8107 = vst [vmem:[#allocation71_spill] sm:$0xff] %v7074_v33  ;;  %v7079_v43 = vpack.c.bf16 %v1731_v35, %v1719_v28  ;;  %v1715_v27 = vand.u32 4294901760, %v1714_v36  ;;  %v1732_v3 = vsub.f32 %v6950_v17, %v1731_v35  ;;  %v4925_v0 = vpack.c.bf16 %v6749_v25, %v6747_v32  ;;  %v8127_v32 = vld [vmem:[#allocation52_spill] sm:$0xff] }
 0x25b   : > { %v7083_v16 = vpack.c.bf16 %v1709_v6, %v1697_v42  ;;  %v1727_v59 = vand.u32 4294901760, %v1726_v58  ;;  %v1721_v20 = vand.u32 4294901760, %v1720_v53  ;;  %v4927_v61 = vpack.c.bf16 %v6755_v55, %v6751_v54  ;;  %v8129_v54 = vld [vmem:[#allocation54_spill] sm:$0xff] }
 0x25c   : > { %v1733_v33 = vand.u32 4294901760, %v1732_v3  ;;  %v4929_v42 = vpack.c.bf16 %v6762_v7, %v6759_v51  ;;  %v8108_v14 = vmov 0.0   ;;  %v8128_v25 = vpack.c.bf16 %v8088_v24, %v6768_v1  ;;  %v8133_v7 = vld [vmem:[#allocation59_spill] sm:$0xff]  ;;  %v8135_v24 = vld [vmem:[#allocation60_spill] sm:$0xff] }
 0x25d   : > { %v7086_v37 = vpack.c.bf16 %v1727_v59, %v1715_v27  ;;  %v8130_v55 = vpack.c.bf16 %v8090_v41, %v8089_v22  ;;  %v8132_v51 = vpack.c.bf16 %v8092_v2, %v8091_v19  ;;  %v8134_v1 = vpack.c.bf16 %v6791_v40, %v8093_v29  ;;  %v8137_v41 = vld [vmem:[#allocation61_spill] sm:$0xff]  ;;  %v8139_v19 = vld [vmem:[#allocation62_spill] sm:$0xff]  ;;  %v1361_v2 = vld [vmem:[#allocation12 + $0x8] sm:$0xff] }
 0x25e   : > { %v7088_v56 = vpack.c.bf16 %v1733_v33, %v1721_v20  ;;  %v8136_v22 = vpack.c.bf16 %v6795_v60, %v6793_v47  ;;  %v8140_v40 = vpack.c.bf16 %v6804_v49, %v6802_v45  ;;  %v8141_v29 = vld [vmem:[#allocation42_spill] sm:$0xff]  ;;  %v8142_v60 = vpack.c.bf16 %v6817_v5, %v6815_v62  ;;  %v8143_v47 = vld [vmem:[#allocation43_spill] sm:$0xff]  ;;  %v8145_v49 = vld [vmem:[#allocation44_spill] sm:$0xff] }
 0x25f   : > { %v8146_v62 = vpack.c.bf16 %v6938_v48, %v6936_v12  ;;  %v8147_v5 = vld [vmem:[#allocation45_spill] sm:$0xff] }
 0x2fd   : > { %v7122_v28 = vpop.f32.mrb[0].mxu0 }
 0x2fe   : > { %v7124_v35 = vpop.f32.mrb[1].mxu0 }
 0x301   : > { %v4648_v33 = vpop.f32.mrb[2].mxu0 }
 0x302   : > { %v7126_v59 = vand.u32 4294901760, %v4648_v33  ;;  %v1350_v6 = vpop.f32.mrb[3].mxu0 }
 0x303   : > { %v7128_v20 = vand.u32 4294901760, %v1350_v6 }
 0x304   : > { %v7131_v58 = vsub.f32 %v4648_v33, %v7126_v59 }
 0x305   : > { %v7134_v53 = vsub.f32 %v1350_v6, %v7128_v20 }
 0x306   : > { %v1534_v3 = vand.u32 4294901760, %v7131_v58 }
 0x307   : > { %v1523_v27 = vand.u32 4294901760, %v7134_v53 }
 0x308   : > { %v1535_v33 = vsub.f32 %v7131_v58, %v1534_v3 }
 0x309   : > { %v1524_v46 = vsub.f32 %v7134_v53, %v1523_v27  ;;  %2027 = vmatmul.mubr.f32.vlgmr.msra.gmra.mrb[0].mxu1 %v1523_v27  ;;  %v8122_v27 = vld [vmem:[#allocation71_spill] sm:$0xff] }
 0x30a   : > { %4992 = vmatpush1.bf16.msra.mxu1 %v6952_v18  ;;  %2032 = vmatprep.mubr.f32.mxu1 %v8108_v14  ;;  %v1536_v6 = vand.u32 4294901760, %v1535_v33  ;;  %v8109_v18 = vld [vmem:[#allocation50_spill] sm:$0xff]  ;;  %v8124_v33 = vld [vmem:[#allocation47_spill] sm:$0xff] }
 0x30b   : > { %v1525_v36 = vand.u32 4294901760, %v1524_v46  ;;  %4994 = vmatprep.subr.bf16.mxu1 %v6980_v21  ;;  %v8110_v21 = vld [vmem:[#allocation53_spill] sm:$0xff] }
 0x30c   : > { %v8121_v46 = vld [vmem:[#allocation69_spill] sm:$0xff] }
 0x30d   : > { %1526 = vmatmul.mubr.f32.vlgmr.msra.gmra.mrb[4].mxu0 %v1525_v36  ;;  %2036 = vmatmul.mubr.f32.gmra.mrb[2].mxu1 %v1534_v3  ;;  %v8120_v36 = vld [vmem:[#allocation70_spill] sm:$0xff] }
 0x30e   : > { %4896 = vmatpush1.bf16.msra.mxu0 %v6987_v23  ;;  %4996 = vmatpush1.bf16.msra.mxu1 %v6983_v15  ;;  %v8112_v15 = vld [vmem:[#allocation56_spill] sm:$0xff]  ;;  %v8113_v23 = vld [vmem:[#allocation55_spill] sm:$0xff]  ;;  %v8123_v3 = vld [vmem:[#allocation46_spill] sm:$0xff] }
 0x30f   : > { %1531 = vmatprep.mubr.f32.mxu0 %v8108_v14  ;;  %4898 = vmatprep.subr.bf16.mxu0 %v6998_v44  ;;  %v8116_v44 = vld [vmem:[#allocation66_spill] sm:$0xff] }
 0x310   : > { %4998 = vmatprep.subr.bf16.mxu1 %v6994_v4  ;;  %2202 = vmatprep.mubr.f32.mxu1 %v8108_v14  ;;  %v8111_v4 = vld [vmem:[#allocation51_spill] sm:$0xff] }
 0x311   : > { %1537 = vmatmul.mubr.f32.gmra.mrb[6].mxu0 %v1536_v6  ;;  %v1367_v6 = vld [vmem:[#allocation12 + $0x38] sm:$0xff] }
 0x312   : > { %4900 = vmatpush1.bf16.msra.mxu0 %v7005_v57  ;;  %5000 = vmatpush1.bf16.msra.mxu1 %v7000_v30  ;;  %v8114_v57 = vld [vmem:[#allocation64_spill] sm:$0xff]  ;;  %v8115_v30 = vld [vmem:[#allocation57_spill] sm:$0xff] }
 0x313   : > { %4902 = vmatprep.subr.bf16.mxu0 %v7010_v26  ;;  %5002 = vmatprep.subr.bf16.mxu1 %v7012_v34  ;;  %v8117_v26 = vld [vmem:[#allocation65_spill] sm:$0xff]  ;;  %v8118_v34 = vld [vmem:[#allocation67_spill] sm:$0xff] }
 0x314   : > { %1767 = vmatprep.mubr.f32.mxu0 %v8108_v14 }
 0x316   : > { %4904 = vmatpush1.bf16.msra.mxu0 %v7022_v8  ;;  %5004 = vmatpush1.bf16.msra.mxu1 %v8109_v18  ;;  %v8119_v8 = vld [vmem:[#allocation68_spill] sm:$0xff]  ;;  %v8144_v18 = vpack.c.bf16 %v6922_v39, %v6920_v52  ;;  %v8148_v52 = vpack.c.bf16 %v6942_v38, %v6940_v63  ;;  %v8149_v39 = vld [vmem:[#allocation63_spill] sm:$0xff]  ;;  %v1375_v38 = vld [vmem:[#allocation12 + $0x78] sm:$0xff] }
 0x317   : > { %4906 = vmatprep.subr.bf16.mxu0 %v8110_v21  ;;  %5006 = vmatprep.subr.bf16.mxu1 %v8111_v4  ;;  %v1373_v63 = vld [vmem:[#allocation12 + $0x68] sm:$0xff] }
 0x31a   : > { %4908 = vmatpush1.bf16.msra.mxu0 %v8112_v15  ;;  %5008 = vmatpush1.bf16.msra.mxu1 %v8113_v23  ;;  %v2340_v23 = vand.u32 4294901760, %v1367_v6 }
 0x31b   : > { %4910 = vmatprep.subr.bf16.mxu0 %v8114_v57  ;;  %5010 = vmatprep.subr.bf16.mxu1 %v8115_v30  ;;  %v1364_v57 = vld [vmem:[#allocation12 + $0x20] sm:$0xff]  ;;  %v1366_v30 = vld [vmem:[#allocation12 + $0x30] sm:$0xff] }
 0x31c   : > { %v2338_v12 = vand.u32 4294901760, %v1364_v57  ;;  %v2342_v48 = vand.u32 4294901760, %v1366_v30 }
 0x31e   : > { %4912 = vmatpush1.bf16.msra.mxu0 %v8116_v44  ;;  %5012 = vmatpush1.bf16.msra.mxu1 %v8117_v26  ;;  %v1369_v44 = vld [vmem:[#allocation12 + $0x48] sm:$0xff]  ;;  %v1371_v26 = vld [vmem:[#allocation12 + $0x58] sm:$0xff] }
 0x31f   : > { %4914 = vmatprep.subr.bf16.mxu0 %v8118_v34  ;;  %5014 = vmatprep.subr.bf16.mxu1 %v8119_v8  ;;  %v8150_v8 = vpack.c.bf16 %v6946_v10, %v6944_v31  ;;  %v7255_v31 = vpack.c.bf16 %v2342_v48, %v2338_v12 }
 0x321   : > { %8152 = vst [vmem:[#allocation50_spill] sm:$0xff] %v7255_v31 }
 0x322   : > { %4916 = vmatpush1.bf16.msra.mxu0 %v8120_v36  ;;  %5016 = vmatpush1.bf16.msra.mxu1 %v8121_v46  ;;  %v2344_v46 = vand.u32 4294901760, %v1369_v44 }
 0x323   : > { %4918 = vmatprep.subr.bf16.mxu0 %v7077_v50  ;;  %5018 = vmatprep.subr.bf16.mxu1 %v8122_v27  ;;  %v8125_v50 = vld [vmem:[#allocation48_spill] sm:$0xff]  ;;  %v2348_v27 = vand.u32 4294901760, %v1371_v26 }
 0x326   : > { %4920 = vmatpush1.bf16.msra.mxu0 %v7083_v16  ;;  %5020 = vmatpush1.bf16.msra.mxu1 %v7079_v43  ;;  %v8126_v43 = vld [vmem:[#allocation49_spill] sm:$0xff]  ;;  %v8131_v16 = vld [vmem:[#allocation58_spill] sm:$0xff] }
 0x327   : > { %4922 = vmatprep.subr.bf16.mxu0 %v7086_v37  ;;  %5022 = vmatprep.subr.bf16.mxu1 %v8123_v3  ;;  %v8138_v37 = vpack.c.bf16 %v6800_v11, %v6797_v9  ;;  %v1360_v11 = vld [vmem:[#allocation12] sm:$0xff]  ;;  %v1362_v9 = vld [vmem:[#allocation12 + $0x10] sm:$0xff] }
 0x328   : > { %v2330_v45 = vand.u32 4294901760, %v1360_v11  ;;  %v2334_v21 = vand.u32 4294901760, %v1362_v9  ;;  %v1368_v3 = vld [vmem:[#allocation12 + $0x40] sm:$0xff] }
 0x329   : > { %2204 = vmatmul.mubr.f32.vlgmr.msra.gmra.mrb[0].mxu1 %v7128_v20  ;;  %v2346_v10 = vand.u32 4294901760, %v1368_v3 }
 0x32a   : > { %4924 = vmatpush1.bf16.msra.mxu0 %v7088_v56  ;;  %5024 = vmatpush1.bf16.msra.mxu1 %v8124_v33  ;;  %v1363_v56 = vld [vmem:[#allocation12 + $0x18] sm:$0xff]  ;;  %v7242_v34 = vpack.c.bf16 %v2334_v21, %v2330_v45  ;;  %v1370_v33 = vld [vmem:[#allocation12 + $0x50] sm:$0xff] }
 0x32b   : > { %2209 = vmatprep.mubr.f32.mxu1 %v8108_v14  ;;  %4926 = vmatprep.subr.bf16.mxu0 %v4925_v0  ;;  %v2328_v0 = vand.u32 4294901760, %v1361_v2 }
 0x32c   : > { %5026 = vmatprep.subr.bf16.mxu1 %v8125_v50  ;;  %v8151_v50 = vpack.c.bf16 %v6950_v17, %v6948_v13  ;;  %v7265_v17 = vsub.f32 %v1360_v11, %v2330_v45  ;;  %v1380_v11 = vld [vmem:[#allocation12 + $0xa0] sm:$0xff] }
 0x32d   : > { %1769 = vmatmul.mubr.f32.vlgmr.msra.gmra.mrb[4].mxu0 %v7128_v20  ;;  %2211 = vmatmul.mubr.f32.gmra.mrb[2].mxu1 %v7126_v59 }
 0x32e   : > { %4928 = vmatpush1.bf16.msra.mxu0 %v4927_v61  ;;  %5028 = vmatpush1.bf16.msra.mxu1 %v8126_v43  ;;  %v2332_v61 = vand.u32 4294901760, %v1363_v56  ;;  %v2350_v43 = vand.u32 4294901760, %v1370_v33 }
 0x32f   : > { %1774 = vmatprep.mubr.f32.mxu0 %v8108_v14  ;;  %4930 = vmatprep.subr.bf16.mxu0 %v4929_v42  ;;  %v1365_v42 = vld [vmem:[#allocation12 + $0x28] sm:$0xff] }
 0x330   : > { %5030 = vmatprep.subr.bf16.mxu1 %v8127_v32  ;;  %2313 = vmatprep.mubr.f32.mxu1 %v8108_v14  ;;  %v7236_v4 = vpack.c.bf16 %v2332_v61, %v2328_v0  ;;  %v2336_v15 = vand.u32 4294901760, %v1365_v42  ;;  %v7259_v32 = vpack.c.bf16 %v2348_v27, %v2344_v46  ;;  %v7263_v13 = vsub.f32 %v1363_v56, %v2332_v61 }
 0x331   : > { %1776 = vmatmul.mubr.f32.gmra.mrb[6].mxu0 %v7126_v59  ;;  %v7281_v56 = vpack.c.bf16 %v2350_v43, %v2346_v10  ;;  %v7294_v45 = vsub.f32 %v1370_v33, %v2350_v43 }
 0x332   : > { %4932 = vmatpush1.bf16.msra.mxu0 %v8128_v25  ;;  %5032 = vmatpush1.bf16.msra.mxu1 %v8129_v54  ;;  %v7248_v36 = vpack.c.bf16 %v2340_v23, %v2336_v15  ;;  %8153 = vst [vmem:[#allocation53_spill] sm:$0xff] %v7259_v32  ;;  %v2352_v25 = vand.u32 4294901760, %v1373_v63  ;;  %v2356_v54 = vand.u32 4294901760, %v1375_v38 }
 0x333   : > { %4934 = vmatprep.subr.bf16.mxu0 %v8130_v55  ;;  %5034 = vmatprep.subr.bf16.mxu1 %v8131_v16  ;;  %v1372_v55 = vld [vmem:[#allocation12 + $0x60] sm:$0xff]  ;;  %v7261_v16 = vsub.f32 %v1361_v2, %v2328_v0  ;;  %v7278_v2 = vsub.f32 %v1366_v30, %v2342_v48  ;;  %8154 = vst [vmem:[#allocation51_spill] sm:$0xff] %v7281_v56 }
 0x334   : > { %1910 = vmatprep.mubr.f32.mxu0 %v8108_v14 }
 0x336   : > { %4936 = vmatpush1.bf16.msra.mxu0 %v8132_v51  ;;  %5036 = vmatpush1.bf16.msra.mxu1 %v8133_v7  ;;  %v7267_v51 = vsub.f32 %v1362_v9, %v2334_v21  ;;  %v1377_v7 = vld [vmem:[#allocation12 + $0x88] sm:$0xff]  ;;  %v1382_v9 = vld [vmem:[#allocation12 + $0xb0] sm:$0xff]  ;;  %v7296_v21 = vsub.f32 %v1373_v63, %v2352_v25 }
 0x337   : > { %4938 = vmatprep.subr.bf16.mxu0 %v8134_v1  ;;  %5038 = vmatprep.subr.bf16.mxu1 %v8135_v24  ;;  %v1379_v1 = vld [vmem:[#allocation12 + $0x98] sm:$0xff]  ;;  %v7271_v24 = vsub.f32 %v1365_v42, %v2336_v15  ;;  %v2360_v0 = vand.u32 4294901760, %v1377_v7  ;;  %v7289_v42 = vsub.f32 %v1371_v26, %v2348_v27  ;;  %v7299_v15 = vsub.f32 %v1375_v38, %v2356_v54 }
 0x338   : > { %v2364_v61 = vand.u32 4294901760, %v1379_v1  ;;  %v2374_v30 = vand.u32 4294901760, %v1382_v9  ;;  %v1387_v26 = vld [vmem:[#allocation12 + $0xd8] sm:$0xff] }
 0x339   : > { %v2380_v38 = vand.u32 4294901760, %v1387_v26 }
 0x33a   : > { %4940 = vmatpush1.bf16.msra.mxu0 %v8136_v22  ;;  %5040 = vmatpush1.bf16.msra.mxu1 %v8137_v41  ;;  %v7273_v22 = vsub.f32 %v1367_v6, %v2340_v23  ;;  %v7275_v41 = vsub.f32 %v1364_v57, %v2338_v12  ;;  %v7291_v6 = vsub.f32 %v1368_v3, %v2346_v10  ;;  %v2370_v57 = vand.u32 4294901760, %v1380_v11  ;;  %v1386_v10 = vld [vmem:[#allocation12 + $0xd0] sm:$0xff] }
 0x33b   : > { %4942 = vmatprep.subr.bf16.mxu0 %v8138_v37  ;;  %5042 = vmatprep.subr.bf16.mxu1 %v8139_v19  ;;  %v1376_v37 = vld [vmem:[#allocation12 + $0x80] sm:$0xff]  ;;  %v1378_v19 = vld [vmem:[#allocation12 + $0x90] sm:$0xff]  ;;  %v7310_v12 = vsub.f32 %v1377_v7, %v2360_v0  ;;  %v7312_v48 = vsub.f32 %v1379_v1, %v2364_v61  ;;  %v7337_v1 = vld [vmem:[#allocation12 + $0xe8] sm:$0xff] }
 0x33c   : > { %v7335_v7 = vsub.f32 %v1380_v11, %v2370_v57 }
 0x33e   : > { %4944 = vmatpush1.bf16.msra.mxu0 %v8140_v40  ;;  %5044 = vmatpush1.bf16.msra.mxu1 %v8141_v29  ;;  %v2354_v40 = vand.u32 4294901760, %v1372_v55  ;;  %v1381_v29 = vld [vmem:[#allocation12 + $0xa8] sm:$0xff] }
 0x33f   : > { %4946 = vmatprep.subr.bf16.mxu0 %v8142_v60  ;;  %5046 = vmatprep.subr.bf16.mxu1 %v8143_v47  ;;  %v7284_v60 = vsub.f32 %v1369_v44, %v2344_v46  ;;  %v7286_v47 = vpack.c.bf16 %v2356_v54, %v2352_v25  ;;  %v1385_v44 = vld [vmem:[#allocation12 + $0xc8] sm:$0xff]  ;;  %v7327_v25 = vpack.c.bf16 %v2374_v30, %v2370_v57  ;;  %v7945_v54 = vand.u32 4294901760, %v7261_v16 }
 0x340   : > { %v2376_v63 = vand.u32 4294901760, %v1385_v44 }
 0x341   : > { %8155 = vst [vmem:[#allocation56_spill] sm:$0xff] %v7286_v47  ;;  %8160 = vst [vmem:[#allocation65_spill] sm:$0xff] %v7327_v25 }
 0x342   : > { %4948 = vmatpush1.bf16.msra.mxu0 %v8144_v18  ;;  %5048 = vmatpush1.bf16.msra.mxu1 %v8145_v49  ;;  %v2362_v18 = vand.u32 4294901760, %v1376_v37  ;;  %v2366_v49 = vand.u32 4294901760, %v1378_v19  ;;  %v7349_v11 = vsub.f32 %v1385_v44, %v2376_v63  ;;  %v7367_v44 = vand.u32 4294901760, %v7122_v28 }
 0x343   : > { %4950 = vmatprep.subr.bf16.mxu0 %v8146_v62  ;;  %5050 = vmatprep.subr.bf16.mxu1 %v8147_v5  ;;  %v2368_v62 = vand.u32 4294901760, %v1381_v29 }
 0x344   : > { %v7316_v46 = vsub.f32 %v1376_v37, %v2362_v18  ;;  %v7318_v27 = vsub.f32 %v1378_v19, %v2366_v49  ;;  %v7339_v37 = vld [vmem:[#allocation12 + $0xf8] sm:$0xff]  ;;  %v7949_v19 = vand.u32 4294901760, %v7265_v17 }
 0x345   : > { %v7322_v33 = vsub.f32 %v1381_v29, %v2368_v62  ;;  %v2382_v29 = vand.u32 4294901760, %v1386_v10 }
 0x346   : > { %4952 = vmatpush1.bf16.msra.mxu0 %v8148_v52  ;;  %5052 = vmatpush1.bf16.msra.mxu1 %v8149_v39  ;;  %v7304_v52 = vsub.f32 %v1372_v55, %v2354_v40  ;;  %v7308_v39 = vpack.c.bf16 %v2364_v61, %v2360_v0  ;;  %v7946_v55 = vand.u32 4294901760, %v7263_v13  ;;  %v7959_v0 = vand.u32 4294901760, %v7273_v22 }
 0x347   : > { %4954 = vmatprep.subr.bf16.mxu0 %v8150_v8  ;;  %5054 = vmatprep.subr.bf16.mxu1 %v7236_v4  ;;  %v7314_v8 = vpack.c.bf16 %v2366_v49, %v2362_v18  ;;  %v7345_v61 = vsub.f32 %v1382_v9, %v2374_v30  ;;  %v7347_v18 = vpack.c.bf16 %v2380_v38, %v2376_v63 }
 0x348   : > { %8157 = vst [vmem:[#allocation64_spill] sm:$0xff] %v7308_v39  ;;  %v7351_v49 = vsub.f32 %v1387_v26, %v2380_v38  ;;  %v2450_v9 = vsub.f32 %v7261_v16, %v7945_v54  ;;  %v2462_v30 = vsub.f32 %v7263_v13, %v7946_v55  ;;  %v2456_v63 = vsub.f32 %v7265_v17, %v7949_v19 }
 0x349   : > { %2315 = vmatmul.mubr.f32.vlgmr.msra.gmra.mrb[0].mxu1 %v7128_v20  ;;  %v1374_v20 = vld [vmem:[#allocation12 + $0x70] sm:$0xff]  ;;  %8158 = vst [vmem:[#allocation57_spill] sm:$0xff] %v7314_v8  ;;  %8161 = vst [vmem:[#allocation67_spill] sm:$0xff] %v7347_v18  ;;  %v8162_v38 = vand.u32 4294901760, %v7267_v51  ;;  %v8164_v55 = vand.u32 4294901760, %v7337_v1 }
 0x34a   : > { %4956 = vmatpush1.bf16.msra.mxu0 %v8151_v50  ;;  %5056 = vmatpush1.bf16.msra.mxu1 %v7242_v34  ;;  %v1384_v50 = vld [vmem:[#allocation12 + $0xc0] sm:$0xff] }
 0x34b   : > { %2320 = vmatprep.mubr.f32.mxu1 %v8108_v14  ;;  %5058 = vmatprep.subr.bf16.mxu1 %v7248_v36  ;;  %v2468_v54 = vsub.f32 %v7267_v51, %v8162_v38  ;;  %v2457_v38 = vand.u32 4294901760, %v2456_v63 }
 0x34d   : > { %1913 = vmatmul.mubr.f32.vlgmr.msra.gmra.mrb[4].mxu0 %v7134_v53  ;;  %2322 = vmatmul.mubr.f32.gmra.mrb[2].mxu1 %v7126_v59  ;;  %v2358_v53 = vand.u32 4294901760, %v1374_v20  ;;  %v1383_v59 = vld [vmem:[#allocation12 + $0xb8] sm:$0xff]  ;;  %v2469_v19 = vand.u32 4294901760, %v2468_v54 }
 0x34e   : > { %5060 = vmatpush1.bf16.msra.mxu1 %v7255_v31  ;;  %1918 = vmatprep.mubr.f32.mxu0 %v8108_v14  ;;  %v2372_v5 = vand.u32 4294901760, %v1383_v59 }
 0x34f   : > { %5062 = vmatprep.subr.bf16.mxu1 %v7259_v32  ;;  %2424 = vmatprep.mubr.f32.mxu1 %v8108_v14  ;;  %v7301_v23 = vpack.c.bf16 %v2358_v53, %v2354_v40  ;;  %v7358_v40 = vld [vmem:[#allocation12 + $0xf0] sm:$0xff] }
 0x350   : > { %v7320_v3 = vpack.c.bf16 %v2372_v5, %v2368_v62  ;;  %v7325_v43 = vsub.f32 %v1383_v59, %v2372_v5  ;;  %v7956_v59 = vand.u32 4294901760, %v7271_v24  ;;  %v7353_v62 = vld [vmem:[#allocation12 + $0xe0] sm:$0xff] }
 0x351   : > { %1921 = vmatmul.mubr.f32.gmra.mrb[6].mxu0 %v7131_v58  ;;  %8156 = vst [vmem:[#allocation55_spill] sm:$0xff] %v7301_v23  ;;  %v7306_v58 = vsub.f32 %v1374_v20, %v2358_v53  ;;  %v7332_v20 = vand.u32 4294901760, %v7124_v35  ;;  %v2378_v53 = vand.u32 4294901760, %v1384_v50  ;;  %v8171_v63 = vand.u32 4294901760, %v7353_v62 }
 0x352   : > { %5064 = vmatpush1.bf16.msra.mxu1 %v7281_v56  ;;  %8159 = vst [vmem:[#allocation66_spill] sm:$0xff] %v7320_v3  ;;  %v2474_v5 = vsub.f32 %v7271_v24, %v7956_v59  ;;  %v2451_v59 = vand.u32 4294901760, %v2450_v9  ;;  %v8168_v9 = vand.u32 4294901760, %v7275_v41 }
 0x353   : > { %5066 = vmatprep.subr.bf16.mxu1 %v7286_v47  ;;  %v7371_v26 = vsub.f32 %v7124_v35, %v7332_v20  ;;  %v7380_v57 = vpack.c.bf16 %v2382_v29, %v2378_v53  ;;  %v2486_v35 = vsub.f32 %v7273_v22, %v7959_v0  ;;  %v2463_v47 = vand.u32 4294901760, %v2462_v30 }
 0x354   : > { %v2480_v30 = vsub.f32 %v7275_v41, %v8168_v9  ;;  %v8170_v0 = vand.u32 4294901760, %v7284_v60  ;;  %v8174_v9 = vand.u32 4294901760, %v7289_v42 }
 0x355   : > { %8163 = vst [vmem:[#allocation68_spill] sm:$0xff] %v7380_v57  ;;  %v2487_v56 = vand.u32 4294901760, %v2486_v35  ;;  %v5085_v35 = vpack.c.bf16 %v2463_v47, %v2451_v59  ;;  %v8175_v32 = vand.u32 4294901760, %v7371_v26  ;;  %v8176_v47 = vand.u32 4294901760, %v7291_v6 }
 0x356   : > { %5068 = vmatpush1.bf16.msra.mxu1 %v7301_v23  ;;  %v2498_v54 = vsub.f32 %v7284_v60, %v8170_v0 }
 0x357   : > { %5070 = vmatprep.subr.bf16.mxu1 %v7308_v39  ;;  %v8165_v39 = vand.u32 4294901760, %v7339_v37  ;;  %v2428_v0 = vsub.f32 %v7371_v26, %v8175_v32  ;;  %v2504_v59 = vsub.f32 %v7291_v6, %v8176_v47  ;;  %v7972_v32 = vand.u32 4294901760, %v7304_v52 }
 0x358   : > { %v2499_v31 = vand.u32 4294901760, %v2498_v54  ;;  %v8180_v54 = vand.u32 4294901760, %v7299_v15 }
 0x359   : > { %v7398_v23 = vpack.c.bf16 %v8165_v39, %v8164_v55  ;;  %v7409_v55 = vsub.f32 %v1384_v50, %v2378_v53  ;;  %v8172_v50 = vand.u32 4294901760, %v7358_v40  ;;  %v2510_v39 = vsub.f32 %v7289_v42, %v8174_v9 }
 0x35a   : > { %5072 = vmatpush1.bf16.msra.mxu1 %v7314_v8 }
 0x35b   : > { %5074 = vmatprep.subr.bf16.mxu1 %v7320_v3  ;;  %8166 = vst [vmem:[#allocation70_spill] sm:$0xff] %v7398_v23  ;;  %v7403_v3 = vsub.f32 %v7122_v28, %v7367_v44  ;;  %v8169_v28 = vand.u32 4294901760, %v7278_v2  ;;  %v7427_v53 = vpack.c.bf16 %v8172_v50, %v8171_v63  ;;  %v8177_v50 = vand.u32 4294901760, %v7294_v45 }
 0x35d   : > { %8167 = vst [vmem:[#allocation69_spill] sm:$0xff] %v7403_v3  ;;  %v2492_v8 = vsub.f32 %v7278_v2, %v8169_v28  ;;  %8173 = vst [vmem:[#allocation71_spill] sm:$0xff] %v7427_v53  ;;  %v2516_v9 = vsub.f32 %v7294_v45, %v8177_v50  ;;  %v2481_v28 = vand.u32 4294901760, %v2480_v30  ;;  %v2505_v50 = vand.u32 4294901760, %v2504_v59 }
 0x35e   : > { %5076 = vmatpush1.bf16.msra.mxu1 %v7327_v25  ;;  %v2475_v25 = vand.u32 4294901760, %v2474_v5  ;;  %v7421_v5 = vsub.f32 %v1386_v10, %v2382_v29  ;;  %v2511_v10 = vand.u32 4294901760, %v2510_v39  ;;  %v2534_v39 = vsub.f32 %v7299_v15, %v8180_v54 }
 0x35f   : > { %5078 = vmatprep.subr.bf16.mxu1 %v7347_v18  ;;  %v2493_v18 = vand.u32 4294901760, %v2492_v8  ;;  %v8179_v8 = vand.u32 4294901760, %v7296_v21  ;;  %v2517_v29 = vand.u32 4294901760, %v2516_v9  ;;  %v8181_v59 = vand.u32 4294901760, %v7306_v58 }
 0x360   : > { %v5089_v63 = vpack.c.bf16 %v2487_v56, %v2475_v25  ;;  %v8182_v54 = vand.u32 4294901760, %v7310_v12 }
 0x361   : > { %v2522_v30 = vsub.f32 %v7296_v21, %v8179_v8  ;;  %v2540_v9 = vsub.f32 %v7306_v58, %v8181_v59  ;;  %v2535_v8 = vand.u32 4294901760, %v2534_v39  ;;  %v8185_v59 = vand.u32 4294901760, %v7316_v46 }
 0x362   : > { %5080 = vmatpush1.bf16.msra.mxu1 %v7380_v57  ;;  %v5087_v57 = vpack.c.bf16 %v2469_v19, %v2457_v38  ;;  %v2429_v19 = vand.u32 4294901760, %v2428_v0  ;;  %v8178_v38 = vand.u32 4294901760, %v7403_v3  ;;  %v2528_v0 = vsub.f32 %v7304_v52, %v7972_v32 }
 0x363   : > { %5082 = vmatprep.subr.bf16.mxu1 %v7398_v23  ;;  %v2523_v25 = vand.u32 4294901760, %v2522_v30  ;;  %v2552_v23 = vsub.f32 %v7316_v46, %v8185_v59  ;;  %v2541_v39 = vand.u32 4294901760, %v2540_v9 }
 0x364   : > { %v2439_v47 = vsub.f32 %v7403_v3, %v8178_v38  ;;  %v5093_v38 = vpack.c.bf16 %v2511_v10, %v2499_v31  ;;  %v8188_v10 = vand.u32 4294901760, %v7325_v43  ;;  %v2529_v30 = vand.u32 4294901760, %v2528_v0 }
 0x365   : > { %v5097_v59 = vpack.c.bf16 %v2535_v8, %v2523_v25  ;;  %v8191_v0 = vand.u32 4294901760, %v7358_v40  ;;  %v2553_v9 = vand.u32 4294901760, %v2552_v23 }
 0x366   : > { %5084 = vmatpush1.bf16.msra.mxu1 %v7427_v53  ;;  %v2440_v32 = vand.u32 4294901760, %v2439_v47  ;;  %v5095_v53 = vpack.c.bf16 %v2517_v29, %v2505_v50  ;;  %v2582_v47 = vsub.f32 %v7325_v43, %v8188_v10  ;;  %v7987_v29 = vand.u32 4294901760, %v7345_v61 }
 0x367   : > { %5086 = vmatprep.subr.bf16.mxu1 %v5085_v35  ;;  %v5091_v35 = vpack.c.bf16 %v2493_v18, %v2481_v28  ;;  %v8183_v18 = vand.u32 4294901760, %v7312_v48  ;;  %v8190_v10 = vand.u32 4294901760, %v7353_v62 }
 0x369   : > { %2430 = vmatmul.mubr.f32.vlgmr.msra.gmra.mrb[0].mxu1 %v2429_v19  ;;  %v2546_v19 = vsub.f32 %v7310_v12, %v8182_v54  ;;  %v2558_v28 = vsub.f32 %v7312_v48, %v8183_v18  ;;  %v8186_v54 = vand.u32 4294901760, %v7318_v27 }
 0x36a   : > { %5088 = vmatpush1.bf16.msra.mxu1 %v5087_v57  ;;  %2435 = vmatprep.mubr.f32.mxu1 %v8108_v14  ;;  %v8184_v57 = vand.u32 4294901760, %v7337_v1 }
 0x36b   : > { %5090 = vmatprep.subr.bf16.mxu1 %v5089_v63  ;;  %v2564_v3 = vsub.f32 %v7318_v27, %v8186_v54  ;;  %v8187_v63 = vand.u32 4294901760, %v7322_v33  ;;  %v2547_v50 = vand.u32 4294901760, %v2546_v19  ;;  %v2559_v18 = vand.u32 4294901760, %v2558_v28 }
 0x36c   : > { %v7479_v56 = vsub.f32 %v7337_v1, %v8184_v57  ;;  %v2575_v1 = vand.u32 4294901760, %v7335_v7  ;;  %v7980_v54 = vand.u32 4294901760, %v7349_v11  ;;  %v2583_v28 = vand.u32 4294901760, %v2582_v47 }
 0x36d   : > { %2441 = vmatmul.mubr.f32.gmra.mrb[2].mxu1 %v2440_v32  ;;  %v2570_v31 = vsub.f32 %v7322_v33, %v8187_v63  ;;  %v8189_v32 = vand.u32 4294901760, %v7339_v37  ;;  %v7979_v63 = vand.u32 4294901760, %v7351_v49  ;;  %v2565_v19 = vand.u32 4294901760, %v2564_v3 }
 0x36e   : > { %5092 = vmatpush1.bf16.msra.mxu1 %v5091_v35  ;;  %2671 = vmatprep.mubr.f32.mxu1 %v8108_v14  ;;  %v7506_v35 = vsub.f32 %v7353_v62, %v8190_v10  ;;  %v7511_v14 = vsub.f32 %v7358_v40, %v8191_v0  ;;  %v2576_v25 = vsub.f32 %v7335_v7, %v2575_v1  ;;  %v7982_v40 = vand.u32 4294901760, %v7421_v5 }
 0x36f   : > { %v7499_v57 = vsub.f32 %v7339_v37, %v8189_v32  ;;  %5094 = vmatprep.subr.bf16.mxu1 %v5093_v38  ;;  %v2571_v37 = vand.u32 4294901760, %v2570_v31  ;;  %v2588_v38 = vsub.f32 %v7345_v61, %v7987_v29  ;;  %v5099_v62 = vpack.c.bf16 %v2541_v39, %v2529_v30 }
 0x370   : > { %v5101_v8 = vpack.c.bf16 %v2559_v18, %v2547_v50  ;;  %v7986_v32 = vand.u32 4294901760, %v7409_v55  ;;  %v2594_v23 = vsub.f32 %v7349_v11, %v7980_v54  ;;  %v2606_v3 = vsub.f32 %v7351_v49, %v7979_v63 }
 0x371   : > { %v7981_v31 = vand.u32 4294901760, %v7479_v56  ;;  %v7983_v47 = vand.u32 4294901760, %v7499_v57  ;;  %v5105_v30 = vpack.c.bf16 %v2583_v28, %v2571_v37  ;;  %v2577_v39 = vand.u32 4294901760, %v2576_v25 }
 0x372   : > { %5096 = vmatpush1.bf16.msra.mxu1 %v5095_v53  ;;  %v5103_v53 = vpack.c.bf16 %v2565_v19, %v2553_v9  ;;  %v2589_v50 = vand.u32 4294901760, %v2588_v38  ;;  %v2600_v18 = vsub.f32 %v7409_v55, %v7986_v32  ;;  %v7985_v10 = vand.u32 4294901760, %v7506_v35 }
 0x373   : > { %5098 = vmatprep.subr.bf16.mxu1 %v5097_v59  ;;  %v2612_v59 = vsub.f32 %v7421_v5, %v7982_v40  ;;  %v7984_v0 = vand.u32 4294901760, %v7511_v14  ;;  %v2595_v63 = vand.u32 4294901760, %v2594_v23  ;;  %v2607_v54 = vand.u32 4294901760, %v2606_v3 }
 0x374   : > { %v2618_v9 = vsub.f32 %v7479_v56, %v7981_v31  ;;  %v2630_v19 = vsub.f32 %v7499_v57, %v7983_v47  ;;  %v5107_v37 = vpack.c.bf16 %v2589_v50, %v2577_v39  ;;  %v2601_v28 = vand.u32 4294901760, %v2600_v18 }
 0x375   : > { %v2613_v25 = vand.u32 4294901760, %v2612_v59  ;;  %v2624_v38 = vsub.f32 %v7506_v35, %v7985_v10  ;;  %v5117_v50 = vpack.c.bf16 %v7263_v13, %v7261_v16  ;;  %v5119_v18 = vpack.c.bf16 %v7267_v51, %v7265_v17 }
 0x376   : > { %5100 = vmatpush1.bf16.msra.mxu1 %v5099_v62  ;;  %v2636_v62 = vsub.f32 %v7511_v14, %v7984_v0  ;;  %v2619_v23 = vand.u32 4294901760, %v2618_v9  ;;  %v2631_v3 = vand.u32 4294901760, %v2630_v19  ;;  %v5131_v59 = vpack.c.bf16 %v7306_v58, %v7304_v52 }
 0x377   : > { %5102 = vmatprep.subr.bf16.mxu1 %v5101_v8  ;;  %v5109_v8 = vpack.c.bf16 %v2607_v54, %v2595_v63  ;;  %v5111_v31 = vpack.c.bf16 %v2613_v25, %v2601_v28  ;;  %v2625_v40 = vand.u32 4294901760, %v2624_v38  ;;  %v5121_v54 = vpack.c.bf16 %v7273_v22, %v7271_v24  ;;  %v7556_v63 = vld [vmem:[#allocation4] sm:$0xff] }
 0x378   : > { %v2637_v47 = vand.u32 4294901760, %v2636_v62  ;;  %v5133_v9 = vpack.c.bf16 %v7312_v48, %v7310_v12  ;;  %v5135_v19 = vpack.c.bf16 %v7318_v27, %v7316_v46  ;;  %v5139_v28 = vpack.c.bf16 %v7345_v61, %v7335_v7 }
 0x379   : > { %v5141_v25 = vpack.c.bf16 %v7351_v49, %v7349_v11  ;;  %v5143_v38 = vpack.c.bf16 %v7421_v5, %v7409_v55  ;;  %v5145_v62 = vpack.c.bf16 %v7499_v57, %v7479_v56  ;;  %v8210_v0 = vand.u32 4294901760, %v7271_v24 }
 0x37a   : > { %5104 = vmatpush1.bf16.msra.mxu1 %v5103_v53  ;;  %v5113_v53 = vpack.c.bf16 %v2631_v3, %v2619_v23  ;;  %v5115_v39 = vpack.c.bf16 %v2637_v47, %v2625_v40  ;;  %v5123_v40 = vpack.c.bf16 %v7278_v2, %v7275_v41  ;;  %v5127_v47 = vpack.c.bf16 %v7294_v45, %v7291_v6  ;;  %v8192_v23 = vld [vmem:[#allocation69_spill] sm:$0xff]  ;;  %v8193_v3 = vld [vmem:[#allocation50_spill] sm:$0xff] }
 0x37b   : > { %5106 = vmatprep.subr.bf16.mxu1 %v5105_v30  ;;  %v5129_v30 = vpack.c.bf16 %v7299_v15, %v7296_v21  ;;  %v8211_v10 = vand.u32 4294901760, %v7273_v22  ;;  %v8212_v29 = vand.u32 4294901760, %v7371_v26  ;;  %v8217_v22 = vand.u32 4294901760, %v8192_v23 }
 0x37c   : > { %v8236_v7 = vand.u32 4294901760, %v7499_v57 }
 0x37d   : > { %v5185_v32 = vpack.c.bf16 %v8211_v10, %v8210_v0 }
 0x37e   : > { %5108 = vmatpush1.bf16.msra.mxu1 %v5107_v37  ;;  %v5137_v37 = vpack.c.bf16 %v7325_v43, %v7322_v33 }
 0x37f   : > { %5110 = vmatprep.subr.bf16.mxu1 %v5109_v8  ;;  %v5147_v8 = vpack.c.bf16 %v7511_v14, %v7506_v35 }
 0x382   : > { %5112 = vmatpush1.bf16.msra.mxu1 %v5111_v31  ;;  %v5125_v31 = vpack.c.bf16 %v7289_v42, %v7284_v60 }
 0x383   : > { %5114 = vmatprep.subr.bf16.mxu1 %v5113_v53  ;;  %v8194_v53 = vld [vmem:[#allocation53_spill] sm:$0xff] }
 0x386   : > { %5116 = vmatpush1.bf16.msra.mxu1 %v5115_v39  ;;  %v8195_v39 = vld [vmem:[#allocation51_spill] sm:$0xff] }
 0x387   : > { %5118 = vmatprep.subr.bf16.mxu1 %v5117_v50  ;;  %v8196_v50 = vld [vmem:[#allocation56_spill] sm:$0xff] }
 0x389   : > { %2673 = vmatmul.mubr.f32.vlgmr.msra.gmra.mrb[0].mxu1 %v7332_v20 }
 0x38a   : > { %5120 = vmatpush1.bf16.msra.mxu1 %v5119_v18  ;;  %2678 = vmatprep.mubr.f32.mxu1 %v7556_v63  ;;  %v8197_v18 = vld [vmem:[#allocation55_spill] sm:$0xff] }
 0x38b   : > { %5122 = vmatprep.subr.bf16.mxu1 %v5121_v54  ;;  %v8198_v54 = vld [vmem:[#allocation64_spill] sm:$0xff] }
 0x38d   : > { %2680 = vmatmul.mubr.f32.gmra.mrb[2].mxu1 %v7367_v44 }
 0x38e   : > { %5124 = vmatpush1.bf16.msra.mxu1 %v5123_v40  ;;  %2814 = vmatprep.mubr.f32.mxu1 %v7556_v63  ;;  %v8199_v40 = vld [vmem:[#allocation57_spill] sm:$0xff] }
 0x38f   : > { %5126 = vmatprep.subr.bf16.mxu1 %v5125_v31  ;;  %v8200_v31 = vld [vmem:[#allocation66_spill] sm:$0xff] }
 0x392   : > { %5128 = vmatpush1.bf16.msra.mxu1 %v5127_v47  ;;  %v8201_v47 = vld [vmem:[#allocation65_spill] sm:$0xff] }
 0x393   : > { %5130 = vmatprep.subr.bf16.mxu1 %v5129_v30  ;;  %v8202_v30 = vld [vmem:[#allocation67_spill] sm:$0xff] }
 0x396   : > { %5132 = vmatpush1.bf16.msra.mxu1 %v5131_v59  ;;  %v8203_v59 = vld [vmem:[#allocation68_spill] sm:$0xff] }
 0x397   : > { %5134 = vmatprep.subr.bf16.mxu1 %v5133_v9  ;;  %v8204_v9 = vld [vmem:[#allocation70_spill] sm:$0xff] }
 0x39a   : > { %5136 = vmatpush1.bf16.msra.mxu1 %v5135_v19  ;;  %v8205_v19 = vand.u32 4294901760, %v7261_v16  ;;  %v8213_v16 = vand.u32 4294901760, %v7275_v41  ;;  %v8220_v41 = vand.u32 4294901760, %v7296_v21  ;;  %v8227_v21 = vand.u32 4294901760, %v7318_v27 }
 0x39b   : > { %5138 = vmatprep.subr.bf16.mxu1 %v5137_v37  ;;  %v8206_v37 = vand.u32 4294901760, %v7263_v13  ;;  %v8214_v13 = vand.u32 4294901760, %v7278_v2  ;;  %v8221_v2 = vand.u32 4294901760, %v7299_v15  ;;  %v8228_v15 = vand.u32 4294901760, %v7322_v33 }
 0x39c   : > { %v8233_v27 = vand.u32 4294901760, %v7409_v55  ;;  %v8234_v33 = vand.u32 4294901760, %v7421_v5 }
 0x39e   : > { %5140 = vmatpush1.bf16.msra.mxu1 %v5139_v28  ;;  %v5181_v28 = vpack.c.bf16 %v8206_v37, %v8205_v19  ;;  %v8216_v19 = vand.u32 4294901760, %v7289_v42  ;;  %v8222_v42 = vand.u32 4294901760, %v7304_v52  ;;  %v8226_v37 = vand.u32 4294901760, %v7316_v46 }
 0x39f   : > { %5142 = vmatprep.subr.bf16.mxu1 %v5141_v25  ;;  %v8207_v25 = vld [vmem:[#allocation71_spill] sm:$0xff]  ;;  %v8229_v52 = vand.u32 4294901760, %v7325_v43  ;;  %v8232_v46 = vand.u32 4294901760, %v7351_v49  ;;  %v8235_v43 = vand.u32 4294901760, %v7479_v56 }
 0x3a2   : > { %5144 = vmatpush1.bf16.msra.mxu1 %v5143_v38  ;;  %v8208_v38 = vand.u32 4294901760, %v7265_v17  ;;  %v5187_v17 = vpack.c.bf16 %v8214_v13, %v8213_v16  ;;  %v5209_v16 = vpack.c.bf16 %v8236_v7, %v8235_v43 }
 0x3a3   : > { %5146 = vmatprep.subr.bf16.mxu1 %v5145_v62  ;;  %v8209_v62 = vand.u32 4294901760, %v7267_v51  ;;  %v8215_v51 = vand.u32 4294901760, %v7284_v60  ;;  %v5193_v60 = vpack.c.bf16 %v8221_v2, %v8220_v41 }
 0x3a5   : > { %v5189_v24 = vpack.c.bf16 %v8216_v19, %v8215_v51 }
 0x3a6   : > { %5148 = vmatpush1.bf16.msra.mxu1 %v5147_v8  ;;  %v5183_v8 = vpack.c.bf16 %v8209_v62, %v8208_v38  ;;  %v5201_v38 = vpack.c.bf16 %v8229_v52, %v8228_v15 }
 0x3a7   : > { %5150 = vmatprep.subr.bf16.mxu1 %v7236_v4 }
 0x3a9   : > { %2817 = vmatmul.mubr.f32.vlgmr.msra.gmra.mrb[0].mxu1 %v7371_v26  ;;  %v8218_v26 = vand.u32 4294901760, %v7291_v6  ;;  %v8224_v6 = vand.u32 4294901760, %v7310_v12 }
 0x3aa   : > { %5152 = vmatpush1.bf16.msra.mxu1 %v7242_v34  ;;  %2822 = vmatprep.mubr.f32.mxu1 %v7556_v63 }
 0x3ab   : > { %5154 = vmatprep.subr.bf16.mxu1 %v7248_v36 }
 0x3ad   : > { %2825 = vmatmul.mubr.f32.gmra.mrb[2].mxu1 %v8192_v23 }
 0x3ae   : > { %5156 = vmatpush1.bf16.msra.mxu1 %v8193_v3  ;;  %2927 = vmatprep.mubr.f32.mxu1 %v7556_v63 }
 0x3af   : > { %5158 = vmatprep.subr.bf16.mxu1 %v8194_v53 }
 0x3b2   : > { %5160 = vmatpush1.bf16.msra.mxu1 %v8195_v39 }
 0x3b3   : > { %5162 = vmatprep.subr.bf16.mxu1 %v8196_v50 }
 0x3b6   : > { %5164 = vmatpush1.bf16.msra.mxu1 %v8197_v18 }
 0x3b7   : > { %5166 = vmatprep.subr.bf16.mxu1 %v8198_v54 }
 0x3ba   : > { %5168 = vmatpush1.bf16.msra.mxu1 %v8199_v40 }
 0x3bb   : > { %5170 = vmatprep.subr.bf16.mxu1 %v8200_v31 }
 0x3be   : > { %5172 = vmatpush1.bf16.msra.mxu1 %v8201_v47 }
 0x3bf   : > { %5174 = vmatprep.subr.bf16.mxu1 %v8202_v30 }
 0x3c2   : > { %5176 = vmatpush1.bf16.msra.mxu1 %v8203_v59 }
 0x3c3   : > { %5178 = vmatprep.subr.bf16.mxu1 %v8204_v9 }
 0x3c6   : > { %5180 = vmatpush1.bf16.msra.mxu1 %v8207_v25 }
 0x3c7   : > { %5182 = vmatprep.subr.bf16.mxu1 %v5181_v28  ;;  %v5199_v28 = vpack.c.bf16 %v8227_v21, %v8226_v37 }
 0x3c9   : > { %2931 = vmatmul.mubr.f32.vlgmr.msra.gmra.mrb[0].mxu1 %v8212_v29  ;;  %v8219_v29 = vand.u32 4294901760, %v7294_v45  ;;  %v8225_v45 = vand.u32 4294901760, %v7312_v48  ;;  %v8231_v48 = vand.u32 4294901760, %v7349_v11  ;;  %v8238_v11 = vand.u32 4294901760, %v7511_v14 }
 0x3ca   : > { %5184 = vmatpush1.bf16.msra.mxu1 %v5183_v8  ;;  %2936 = vmatprep.mubr.f32.mxu1 %v7556_v63  ;;  %v5207_v8 = vpack.c.bf16 %v8234_v33, %v8233_v27 }
 0x3cb   : > { %5186 = vmatprep.subr.bf16.mxu1 %v5185_v32  ;;  %v5191_v10 = vpack.c.bf16 %v8219_v29, %v8218_v26  ;;  %v8223_v32 = vand.u32 4294901760, %v7306_v58  ;;  %v5197_v23 = vpack.c.bf16 %v8225_v45, %v8224_v6  ;;  %v8230_v58 = vand.u32 4294901760, %v7345_v61 }
 0x3cc   : > { %v5205_v62 = vpack.c.bf16 %v8232_v46, %v8231_v48  ;;  %v8237_v61 = vand.u32 4294901760, %v7506_v35 }
 0x3cd   : > { %2940 = vmatmul.mubr.f32.gmra.mrb[2].mxu1 %v8217_v22  ;;  %v5195_v0 = vpack.c.bf16 %v8223_v32, %v8222_v42  ;;  %v5203_v12 = vpack.c.bf16 %v8230_v58, %v2575_v1 }
 0x3ce   : > { %5188 = vmatpush1.bf16.msra.mxu1 %v5187_v17  ;;  %3106 = vmatprep.mubr.f32.mxu1 %v7556_v63  ;;  %v5211_v1 = vpack.c.bf16 %v8238_v11, %v8237_v61 }
 0x3cf   : > { %5190 = vmatprep.subr.bf16.mxu1 %v5189_v24 }
 0x3d2   : > { %5192 = vmatpush1.bf16.msra.mxu1 %v5191_v10 }
 0x3d3   : > { %5194 = vmatprep.subr.bf16.mxu1 %v5193_v60 }
 0x3d6   : > { %5196 = vmatpush1.bf16.msra.mxu1 %v5195_v0 }
 0x3d7   : > { %5198 = vmatprep.subr.bf16.mxu1 %v5197_v23 }
 0x3da   : > { %5200 = vmatpush1.bf16.msra.mxu1 %v5199_v28 }
 0x3db   : > { %5202 = vmatprep.subr.bf16.mxu1 %v5201_v38 }
 0x3de   : > { %5204 = vmatpush1.bf16.msra.mxu1 %v5203_v12 }
 0x3df   : > { %5206 = vmatprep.subr.bf16.mxu1 %v5205_v62 }
 0x3e2   : > { %5208 = vmatpush1.bf16.msra.mxu1 %v5207_v8 }
 0x3e3   : > { %5210 = vmatprep.subr.bf16.mxu1 %v5209_v16 }
 0x3e6   : > { %5212 = vmatpush1.bf16.msra.mxu1 %v5211_v1 }
 0x3e7   : > { %5214 = vmatprep.subr.bf16.mxu1 %v7236_v4 }
 0x3e9   : > { %3108 = vmatmul.mubr.f32.vlgmr.msra.gmra.mrb[0].mxu1 %v7332_v20 }
 0x3ea   : > { %5216 = vmatpush1.bf16.msra.mxu1 %v7242_v34  ;;  %3113 = vmatprep.mubr.f32.mxu1 %v7556_v63 }
 0x3eb   : > { %5218 = vmatprep.subr.bf16.mxu1 %v7248_v36 }
 0x3ed   : > { %3115 = vmatmul.mubr.f32.gmra.mrb[2].mxu1 %v7367_v44 }
 0x3ee   : > { %5220 = vmatpush1.bf16.msra.mxu1 %v8193_v3  ;;  %3217 = vmatprep.mubr.f32.mxu1 %v7556_v63 }
 0x3ef   : > { %5222 = vmatprep.subr.bf16.mxu1 %v8194_v53 }
 0x3f2   : > { %5224 = vmatpush1.bf16.msra.mxu1 %v8195_v39 }
 0x3f3   : > { %5226 = vmatprep.subr.bf16.mxu1 %v8196_v50 }
 0x3f6   : > { %5228 = vmatpush1.bf16.msra.mxu1 %v8197_v18 }
 0x3f7   : > { %5230 = vmatprep.subr.bf16.mxu1 %v8198_v54 }
 0x3fa   : > { %5232 = vmatpush1.bf16.msra.mxu1 %v8199_v40 }
 0x3fb   : > { %5234 = vmatprep.subr.bf16.mxu1 %v8200_v31 }
 0x3fe   : > { %5236 = vmatpush1.bf16.msra.mxu1 %v8201_v47 }
 0x3ff   : > { %5238 = vmatprep.subr.bf16.mxu1 %v8202_v30 }
 0x402   : > { %5240 = vmatpush1.bf16.msra.mxu1 %v8203_v59 }
 0x403   : > { %5242 = vmatprep.subr.bf16.mxu1 %v8204_v9 }
 0x406   : > { %5244 = vmatpush1.bf16.msra.mxu1 %v8207_v25 }
 0x409   : > { %3219 = vmatmul.mubr.f32.vlgmr.msra.gmra.mrb[0].mxu1 %v7332_v20 }
 0x40a   : > { %3224 = vmatprep.mubr.f32.mxu1 %v7556_v63 }
 0x40d   : > { %3226 = vmatmul.mubr.f32.gmra.mrb[2].mxu1 %v7367_v44 }
 0x420   : > { %v1914_v4 = vpop.f32.mrb[4].mxu0 }
 0x421   : > { %v1916_v34 = vpop.f32.mrb[5].mxu0 }
 0x424   : > { %v1922_v36 = vpop.f32.mrb[6].mxu0 }
 0x425   : > { %v1924_v49 = vpop.f32.mrb[7].mxu0 }
 0x4dc   : > { %v3220_v55 = vpop.f32.mrb[0].mxu1 }
 0x4dd   : > { %v5245_v5 = vadd.f32 %v3220_v55, %v1914_v4  ;;  %v3222_v56 = vpop.f32.mrb[1].mxu1 }
 0x4de   : > { %v5246_v57 = vadd.f32 %v3222_v56, %v1916_v34 }
 0x4df   : > { %3232 = vst [vmem:[#allocation2] sm:$0xff] %v5245_v5 }
 0x4e0   : > { %3233 = vst [vmem:[#allocation2 + $0x8] sm:$0xff] %v5246_v57  ;;  %v3227_v35 = vpop.f32.mrb[2].mxu1 }
 0x4e1   : > { %v5247_v14 = vadd.f32 %v3227_v35, %v1922_v36  ;;  %v3229_v3 = vpop.f32.mrb[3].mxu1 }
 0x4e2   : > { %v5248_v53 = vadd.f32 %v3229_v3, %v1924_v49 }
 0x4e3   : > { %3234 = vst [vmem:[#allocation2 + $0x10] sm:$0xff] %v5247_v14 }
 0x4e4   : > { %3235 = vst [vmem:[#allocation2 + $0x18] sm:$0xff] %v5248_v53 }
 0x4e5 PF: > { %v5497_v20 = vld [vmem:[#allocation15 + $0x40] sm:$0xff]   ;;  %v5499_v44 = vld [vmem:[#allocation15 + $0x48] sm:$0xff]   ;;  %v5501_v50 = vld [vmem:[#allocation15 + $0x50] sm:$0xff]   ;;  %vm3529_vm0 = vcmask 261120   ;;  %s8239_s12 = sld [smem:[#allocation35_spill]] }
 0x4e6   : > { %v5498_v63 = vld [vmem:[#allocation15] sm:$0xff]   ;;  %4383 = vmatprep.subr.bf16.mxu0 %v5497_v20  ;;  %v5500_v39 = vld [vmem:[#allocation15 + $0x8] sm:$0xff]   ;;  %v5502_v18 = vld [vmem:[#allocation15 + $0x10] sm:$0xff]  }
 0x4e7   : > { %4384 = vmatpush3.bf16.msra.mxu0 %v5498_v63  ;;  %v5503_v54 = vld [vmem:[#allocation15 + $0x58] sm:$0xff]   ;;  %v5505_v31 = vld [vmem:[#allocation15 + $0x60] sm:$0xff]   ;;  %v5507_v30 = vld [vmem:[#allocation15 + $0x68] sm:$0xff]  }
 0x4e8   : > { %4385 = vmatprep.subr.bf16.mxu0 %v5499_v44  ;;  %v5504_v40 = vld [vmem:[#allocation15 + $0x18] sm:$0xff]   ;;  %v5506_v47 = vld [vmem:[#allocation15 + $0x20] sm:$0xff]   ;;  %v3254_v25 = vld [vmem:[#allocation2 + $0x8] sm:$0xff] }
 0x4e9   : > { %v3252_v59 = vld [vmem:[#allocation2] sm:$0xff]  ;;  %v5508_v13 = vld [vmem:[#allocation15 + $0x28] sm:$0xff]   ;;  %v5509_v24 = vld [vmem:[#allocation15 + $0x70] sm:$0xff]  }
 0x4ea   : > { %v3253_v9 = vld [vmem:[#allocation2 + $0x10] sm:$0xff]  ;;  %v3257_v19 = vld [vmem:[%s501_s6 + $0x8] sm:$0xff]  ;;  %v5513_v46 = vld [vmem:[%s6513_s28] sm:$0xff]  }
 0x4eb   : > { %4386 = vmatpush3.bf16.msra.mxu0 %v5500_v39  ;;  %v3255_v17 = vld [vmem:[#allocation2 + $0x18] sm:$0xff]  ;;  %v3256_v51 = vld [vmem:[%s501_s6] sm:$0xff]  ;;  %v3261_v6 = vmul.f32 %v3257_v19, %v3253_v9  ;;  %4653 = vmatprep.mubr.msk.bf16.mxu1 %vm3529_vm0, %v5513_v46  ;;  %v5514_v55 = vld [vmem:[%s6513_s28 + $0x8] sm:$0xff]   ;;  %s3667_s0 = sld [smem:[#allocation5 + %s8239_s12]]  ;;  %p4233_p3 = scmp.ne.s32.totalorder %s8239_s12, 3 }
 0x4ec   : > { %4387 = vmatprep.subr.bf16.mxu0 %v5501_v50  ;;  %v3258_v22 = vld [vmem:[%s510_s26] sm:$0xff]  ;;  %v3259_v26 = vld [vmem:[%s510_s26 + $0x8] sm:$0xff]  ;;  %v3268_v29 = vmul.f32 %v3256_v51, %v3254_v25  ;;  %v3269_v10 = vmul.f32 %v3257_v19, %v3255_v17  ;;  %v3260_v0 = vmul.f32 %v3256_v51, %v3252_v59 }
 0x4ed   : > { %v3266_v41 = vmul.f32 %v3258_v22, %v3252_v59  ;;  %v3267_v2 = vmul.f32 %v3259_v26, %v3253_v9  ;;  %v5510_v60 = vld [vmem:[#allocation15 + $0x30] sm:$0xff]   ;;  %v3262_v45 = vmul.f32 %v3258_v22, %v3254_v25  ;;  %v3263_v23 = vmul.f32 %v3259_v26, %v3255_v17  ;;  %v5511_v28 = vld [vmem:[#allocation15 + $0x78] sm:$0xff]   ;;  %v5517_v57 = vld [vmem:[%s6513_s28 + $0x20] sm:$0xff]  }
 0x4ee   : > { %v5512_v58 = vld [vmem:[#allocation15 + $0x38] sm:$0xff]   ;;  %v5515_v5 = vld [vmem:[%s6513_s28 + $0x10] sm:$0xff]   ;;  %v5518_v35 = vld [vmem:[%s6513_s28 + $0x28] sm:$0xff]  }
 0x4ef   : > { %4388 = vmatpush3.bf16.msra.mxu0 %v5502_v18  ;;  %v3270_v42 = vadd.f32 %v3268_v29, %v3266_v41  ;;  %v3271_v32 = vadd.f32 %v3269_v10, %v3267_v2  ;;  %v3264_v52 = vsub.f32 %v3260_v0, %v3262_v45  ;;  %v3265_v38 = vsub.f32 %v3261_v6, %v3263_v23  ;;  %v5516_v56 = vld [vmem:[%s6513_s28 + $0x18] sm:$0xff]   ;;  %v5519_v14 = vld [vmem:[%s6513_s28 + $0x30] sm:$0xff]   ;;  %v3652_v17 = vld [vmem:[#allocation4 + $0x8] sm:$0xff] }
 0x4f0   : > { %4389 = vmatprep.subr.bf16.mxu0 %v5503_v54  ;;  %v5520_v3 = vld [vmem:[%s6513_s28 + $0x38] sm:$0xff]   ;;  %v3653_v39 = vld [vmem:[#allocation4 + $0x10] sm:$0xff] }
 0x4f1   : > { %v3274_v37 = vsub.f32 0.0, %v3270_v42  ;;  %v3275_v21 = vsub.f32 0.0, %v3271_v32  ;;  %v3290_v12 = vpack.c.bf16 %v3265_v38, %v3264_v52  ;;  %v3292_v48 = vpack.c.bf16 %v3271_v32, %v3270_v42  ;;  %v3654_v59 = vld [vmem:[#allocation4 + $0x18] sm:$0xff]  ;;  %v3657_v41 = vld [vmem:[#allocation4 + $0x30] sm:$0xff]  ;;  %v3655_v32 = vld [vmem:[#allocation4 + $0x20] sm:$0xff] }
 0x4f2   : > { %v7725_v20 = vstv %s3667_s0  ;;  %v3658_v23 = vld [vmem:[#allocation4 + $0x38] sm:$0xff] }
 0x4f3   : > { %4390 = vmatpush3.bf16.msra.mxu0 %v5504_v40  ;;  %v3291_v15 = vpack.c.bf16 %v3275_v21, %v3274_v37  ;;  %v3651_v40 = vld [vmem:[#allocation4] sm:$0xff] }
 0x4f4   : > { %4391 = vmatprep.subr.bf16.mxu0 %v5505_v31 }
 0x4f5   : > { %3454 = vmatprep.mubr.bf16.mxu0 %v3291_v15  ;;  %v3656_v15 = vld [vmem:[#allocation4 + $0x28] sm:$0xff] }
 0x4f7   : > { %4392 = vmatpush3.bf16.msra.mxu0 %v5506_v47 }
 0x4f8   : > { %4393 = vmatprep.subr.bf16.mxu0 %v5507_v30 }
 0x4fb   : > { %4394 = vmatpush3.bf16.msra.mxu0 %v5508_v13 }
 0x4fc   : > { %4395 = vmatprep.subr.bf16.mxu0 %v5509_v24 }
 0x4ff   : > { %4396 = vmatpush3.bf16.msra.mxu0 %v5510_v60 }
 0x500   : > { %4397 = vmatprep.subr.bf16.mxu0 %v5511_v28 }
 0x503   : > { %4398 = vmatpush3.bf16.msra.mxu0 %v5512_v58 }
 0x506   : > { %3455 = vmatmul.mubr.bf16.vlgmr.msra.gmra.mrb[0].mxu0 %v3290_v12 }
 0x507   : > { %3462 = vmatprep.mubr.bf16.mxu0 %v3290_v12 }
 0x50e   : > { %3463 = vmatmul.mubr.bf16.gmra.mrb[4].mxu0 %v3292_v48 }
 0x5d9   : > { %v4399_v62 = vpop.f32.mrb[0].mxu0 }
 0x5da   : > { %v4400_v27 = vpop.f32.mrb[1].mxu0 }
 0x5db   : > { %v4401_v33 = vadd.f32 %v4400_v27, %v4399_v62  ;;  %v4402_v8 = vpop.f32.mrb[2].mxu0  ;;  %v3661_v27 = vld [vmem:[#allocation4 + $0x50] sm:$0xff] }
 0x5dc   : > { %v4403_v43 = vpop.f32.mrb[3].mxu0 }
 0x5dd   : > { %v4404_v7 = vadd.f32 %v4403_v43, %v4402_v8 }
 0x5df   : > { %v3487_v16 = vpack.c.bf16 %v4404_v7, %v4401_v33  ;;  %v3659_v7 = vld [vmem:[#allocation4 + $0x40] sm:$0xff] }
 0x5e1   : > { %v4405_v61 = vpop.f32.mrb[4].mxu0  ;;  %4649 = vmatprep.subr.bf16.mxu1 %v3487_v16 }
 0x5e2   : > { %v4406_v11 = vpop.f32.mrb[5].mxu0  ;;  %4650 = vmatpush3.bf16.msra.mxu1 %v3487_v16 }
 0x5e3   : > { %v4407_v1 = vadd.f32 %v4406_v11, %v4405_v61  ;;  %v4408_v4 = vpop.f32.mrb[6].mxu0 }
 0x5e4   : > { %v4409_v34 = vpop.f32.mrb[7].mxu0 }
 0x5e5   : > { %v4410_v36 = vadd.f32 %v4409_v34, %v4408_v4 }
 0x5e7   : > { %v3488_v49 = vpack.c.bf16 %v4410_v36, %v4407_v1  ;;  %v3662_v1 = vld [vmem:[#allocation4 + $0x58] sm:$0xff] }
 0x5e9   : > { %4651 = vmatprep.subr.bf16.mxu1 %v3488_v49 }
 0x5ea   : > { %4652 = vmatpush3.bf16.msra.mxu1 %v3488_v49  ;;  %v3660_v49 = vld [vmem:[#allocation4 + $0x48] sm:$0xff] }
 0x5ed   : > { %4654 = vmatmul.mubr.msk.bf16.vlgmr.msra.gmra.mrb[0].mxu1 %vm3529_vm0, %v5514_v55 }
 0x5ee   : > { %4657 = vmatprep.mubr.msk.bf16.mxu1 %vm3529_vm0, %v5515_v5 }
 0x5f5   : > { %4658 = vmatmul.mubr.msk.bf16.gmra.mrb[4].mxu1 %vm3529_vm0, %v5516_v56 }
 0x5f6   : > { %4661 = vmatprep.mubr.msk.bf16.mxu1 %vm3529_vm0, %v5517_v57 }
 0x5fd   : > { %4662 = vmatmul.mubr.msk.bf16.gmra.mrb[8].mxu1 %vm3529_vm0, %v5518_v35 }
 0x5fe   : > { %4665 = vmatprep.mubr.msk.bf16.mxu1 %vm3529_vm0, %v5519_v14 }
 0x605   : > { %4666 = vmatmul.mubr.msk.bf16.gmra.mrb[12].mxu1 %vm3529_vm0, %v5520_v3 }
 0x6c0   : > { %v4655_v53 = vpop.f32.mrb[0].mxu1 }
 0x6c1   : > { %v3670_v63 = vmul.f32 %v4655_v53, %v4655_v53  ;;  %v3588_v44 = vpop.f32.mrb[1].mxu1  ;;  %v3665_v53 = vld [vmem:[#allocation4 + $0x70] sm:$0xff] }
 0x6c2   : > { %v3668_v50 = vmul.f32 %v3588_v44, %v3588_v44  ;;  %v4656_v18 = vpop.f32.mrb[2].mxu1 }
 0x6c3   : > { %v3687_v54 = vmul.f32 %v7725_v20, %v3670_v63  ;;  %v3671_v31 = vmul.f32 %v4656_v18, %v4656_v18  ;;  %v3591_v47 = vpop.f32.mrb[3].mxu1 }
 0x6c4   : > { %v3685_v30 = vmul.f32 %v7725_v20, %v3668_v50  ;;  %v3669_v9 = vmul.f32 %v3591_v47, %v3591_v47  ;;  %v3663_v50 = vld [vmem:[#allocation4 + $0x60] sm:$0xff] }
 0x6c5   : > { %v3703_v25 = vadd.f32 %v3687_v54, %v3653_v39  ;;  %v3688_v13 = vmul.f32 %v7725_v20, %v3671_v31  ;;  %v3666_v31 = vld [vmem:[#allocation4 + $0x78] sm:$0xff] }
 0x6c6   : > { %v3701_v51 = vadd.f32 %v3685_v30, %v3651_v40  ;;  %v3686_v19 = vmul.f32 %v7725_v20, %v3669_v9  ;;  %v3664_v9 = vld [vmem:[#allocation4 + $0x68] sm:$0xff] }
 0x6c7   : > { %3719 = vst [vmem:[#allocation4 + $0x10] sm:$0xff] %v3703_v25  ;;  %v3704_v24 = vadd.f32 %v3688_v13, %v3654_v59 }
 0x6c8   : > { %3717 = vst [vmem:[#allocation4] sm:$0xff] %v3701_v51  ;;  %v3702_v22 = vadd.f32 %v3686_v19, %v3652_v17  ;;  %v4659_v26 = vpop.f32.mrb[4].mxu1 }
 0x6c9   : > { %3720 = vst [vmem:[#allocation4 + $0x18] sm:$0xff] %v3704_v24  ;;  %v3674_v29 = vmul.f32 %v4659_v26, %v4659_v26  ;;  %v3604_v10 = vpop.f32.mrb[5].mxu1 }
 0x6ca   : > { %3718 = vst [vmem:[#allocation4 + $0x8] sm:$0xff] %v3702_v22  ;;  %v3672_v2 = vmul.f32 %v3604_v10, %v3604_v10  ;;  %v4660_v60 = vpop.f32.mrb[6].mxu1 }
 0x6cb   : > { %v3691_v42 = vmul.f32 %v7725_v20, %v3674_v29  ;;  %v3675_v0 = vmul.f32 %v4660_v60, %v4660_v60  ;;  %v3607_v6 = vpop.f32.mrb[7].mxu1 }
 0x6cc   : > { %v3689_v45 = vmul.f32 %v7725_v20, %v3672_v2  ;;  %v3673_v37 = vmul.f32 %v3607_v6, %v3607_v6 }
 0x6cd   : > { %v3707_v21 = vadd.f32 %v3691_v42, %v3657_v41  ;;  %v3692_v28 = vmul.f32 %v7725_v20, %v3675_v0 }
 0x6ce   : > { %v3705_v52 = vadd.f32 %v3689_v45, %v3655_v32  ;;  %v3690_v38 = vmul.f32 %v7725_v20, %v3673_v37  ;;  %v3739_v10 = vld [vmem:[#allocation4 + $0x10] sm:$0xff] (!%p4233_p3) }
 0x6cf   : > { %3723 = vst [vmem:[#allocation4 + $0x30] sm:$0xff] %v3707_v21  ;;  %v3708_v58 = vadd.f32 %v3692_v28, %v3658_v23  ;;  %v3737_v19 = vld [vmem:[#allocation4] sm:$0xff] (!%p4233_p3) }
 0x6d0   : > { %3721 = vst [vmem:[#allocation4 + $0x20] sm:$0xff] %v3705_v52  ;;  %v3706_v12 = vadd.f32 %v3690_v38, %v3656_v15  ;;  %v4663_v48 = vpop.f32.mrb[8].mxu1  ;;  %v3740_v42 = vld [vmem:[#allocation4 + $0x18] sm:$0xff] (!%p4233_p3) }
 0x6d1   : > { %3724 = vst [vmem:[#allocation4 + $0x38] sm:$0xff] %v3708_v58  ;;  %v3678_v46 = vmul.f32 %v4663_v48, %v4663_v48  ;;  %v3620_v62 = vpop.f32.mrb[9].mxu1  ;;  %v3738_v22 = vld [vmem:[#allocation4 + $0x8] sm:$0xff] (!%p4233_p3) }
 0x6d2   : > { %3722 = vst [vmem:[#allocation4 + $0x28] sm:$0xff] %v3706_v12  ;;  %v3676_v33 = vmul.f32 %v3620_v62, %v3620_v62  ;;  %v4664_v8 = vpop.f32.mrb[10].mxu1 }
 0x6d3   : > { %v3695_v43 = vmul.f32 %v7725_v20, %v3678_v46  ;;  %v3679_v16 = vmul.f32 %v4664_v8, %v4664_v8  ;;  %v3623_v61 = vpop.f32.mrb[11].mxu1 }
 0x6d4   : > { %v3693_v11 = vmul.f32 %v7725_v20, %v3676_v33  ;;  %v3677_v4 = vmul.f32 %v3623_v61, %v3623_v61 }
 0x6d5   : > { %v3711_v34 = vadd.f32 %v3695_v43, %v3661_v27  ;;  %v3696_v36 = vmul.f32 %v7725_v20, %v3679_v16 }
 0x6d6   : > { %v3709_v55 = vadd.f32 %v3693_v11, %v3659_v7  ;;  %v3694_v5 = vmul.f32 %v7725_v20, %v3677_v4  ;;  %v3743_v38 = vld [vmem:[#allocation4 + $0x30] sm:$0xff] (!%p4233_p3) }
 0x6d7   : > { %3727 = vst [vmem:[#allocation4 + $0x50] sm:$0xff] %v3711_v34  ;;  %v3712_v56 = vadd.f32 %v3696_v36, %v3662_v1  ;;  %v3741_v32 = vld [vmem:[#allocation4 + $0x20] sm:$0xff] (!%p4233_p3) }
 0x6d8   : > { %3725 = vst [vmem:[#allocation4 + $0x40] sm:$0xff] %v3709_v55  ;;  %v3710_v57 = vadd.f32 %v3694_v5, %v3660_v49  ;;  %v4667_v35 = vpop.f32.mrb[12].mxu1  ;;  %v3744_v62 = vld [vmem:[#allocation4 + $0x38] sm:$0xff] (!%p4233_p3) }
 0x6d9   : > { %3728 = vst [vmem:[#allocation4 + $0x58] sm:$0xff] %v3712_v56  ;;  %v3682_v14 = vmul.f32 %v4667_v35, %v4667_v35  ;;  %v3636_v3 = vpop.f32.mrb[13].mxu1  ;;  %v3742_v23 = vld [vmem:[#allocation4 + $0x28] sm:$0xff] (!%p4233_p3) }
 0x6da   : > { %3726 = vst [vmem:[#allocation4 + $0x48] sm:$0xff] %v3710_v57  ;;  %v3680_v63 = vmul.f32 %v3636_v3, %v3636_v3  ;;  %v4668_v44 = vpop.f32.mrb[14].mxu1 }
 0x6db   : > { %v3699_v39 = vmul.f32 %v7725_v20, %v3682_v14  ;;  %v3683_v18 = vmul.f32 %v4668_v44, %v4668_v44  ;;  %v3639_v54 = vpop.f32.mrb[15].mxu1 }
 0x6dc   : > { %v3697_v40 = vmul.f32 %v7725_v20, %v3680_v63  ;;  %v3681_v47 = vmul.f32 %v3639_v54, %v3639_v54  ;;  %3736 = sbr.rel (%p4233_p3) target bundleno = 1828 (0x724), region = 100 }
 0x6dd   : > { %v3715_v30 = vadd.f32 %v3699_v39, %v3665_v53  ;;  %v3700_v59 = vmul.f32 %v7725_v20, %v3683_v18 }
 0x6de   : > { %v3713_v25 = vadd.f32 %v3697_v40, %v3663_v50  ;;  %v3698_v13 = vmul.f32 %v7725_v20, %v3681_v47  ;;  %v3747_v41 = vld [vmem:[#allocation4 + $0x50] sm:$0xff] (!%p4233_p3) }
 0x6df   : > { %3731 = vst [vmem:[#allocation4 + $0x70] sm:$0xff] %v3715_v30  ;;  %v3716_v17 = vadd.f32 %v3700_v59, %v3666_v31  ;;  %v3745_v24 = vld [vmem:[#allocation4 + $0x40] sm:$0xff] (!%p4233_p3)  ;;  %v3755_v60 = vadd.f32 (!%p4233_p3), %v3747_v41, %v3739_v10 }
 0x6e0   : > { %3729 = vst [vmem:[#allocation4 + $0x60] sm:$0xff] %v3713_v25  ;;  %v3714_v51 = vadd.f32 %v3698_v13, %v3664_v9  ;;  %v3753_v26 = vadd.f32 (!%p4233_p3), %v3745_v24, %v3737_v19  ;;  %v3748_v20 = vld [vmem:[#allocation4 + $0x58] sm:$0xff] (!%p4233_p3) }
 0x6e1   : > { %3732 = vst [vmem:[#allocation4 + $0x78] sm:$0xff] %v3716_v17  ;;  %v3746_v29 = vld [vmem:[#allocation4 + $0x48] sm:$0xff] (!%p4233_p3)  ;;  %v3756_v6 = vadd.f32 (!%p4233_p3), %v3748_v20, %v3740_v42  ;;  %v4236_v28 = vadd.f32 (!%p4233_p3), -0.225, %v3755_v60  ;;  %v3835_v59 = vmul.f32 (!%p4233_p3), 1.0404, %v3755_v60 }
 0x6e2   : > { %3730 = vst [vmem:[#allocation4 + $0x68] sm:$0xff] %v3714_v51  ;;  %v3754_v2 = vadd.f32 (!%p4233_p3), %v3746_v29, %v3738_v22  ;;  %v4234_v0 = vadd.f32 (!%p4233_p3), -0.225, %v3753_v26  ;;  %v3833_v54 = vmul.f32 (!%p4233_p3), 1.0404, %v3753_v26 }
 0x6e3   : > { %v4237_v48 = vadd.f32 -0.225, %v3756_v6  ;;  %v3771_v8 = vmul.f32 50.0, %v4236_v28  ;;  %v3836_v9 = vmul.f32 1.0404, %v3756_v6 }
 0x6e4   : > { %v4235_v21 = vadd.f32 -0.225, %v3754_v2  ;;  %v3769_v12 = vmul.f32 50.0, %v4234_v0  ;;  %v3834_v47 = vmul.f32 1.0404, %v3754_v2 }
 0x6e5   : > { %v3772_v61 = vmul.f32 50.0, %v4237_v48  ;;  %v3779_v34 = vsub.f32 0.0, %v3771_v8  ;;  %v4242_v30 = vadd.f32 -0.225, %v3833_v54  ;;  %v4244_v19 = vadd.f32 -0.225, %v3835_v59 }
 0x6e6   : > { %v3751_v58 = vld [vmem:[#allocation4 + $0x70] sm:$0xff]  ;;  %v3770_v33 = vmul.f32 50.0, %v4235_v21  ;;  %v3777_v16 = vsub.f32 0.0, %v3769_v12  ;;  %v4243_v13 = vadd.f32 -0.225, %v3834_v47 }
 0x6e7   : > { %v3749_v45 = vld [vmem:[#allocation4 + $0x60] sm:$0xff]  ;;  %v3759_v46 = vadd.f32 %v3751_v58, %v3743_v38  ;;  %v3780_v5 = vsub.f32 0.0, %v3772_v61  ;;  %v3789_v14 = vmul.f32 1.442695, %v3779_v34  ;;  %v3849_v51 = vmul.f32 50.0, %v4242_v30 }
 0x6e8   : > { %v3757_v15 = vadd.f32 %v3749_v45, %v3741_v32  ;;  %v3752_v27 = vld [vmem:[#allocation4 + $0x78] sm:$0xff]  ;;  %v3778_v4 = vsub.f32 0.0, %v3770_v33  ;;  %v3785_v55 = vmul.f32 1.442695, %v3777_v16  ;;  %v3850_v24 = vmul.f32 50.0, %v4243_v13 }
 0x6e9   : > { %v3750_v37 = vld [vmem:[#allocation4 + $0x68] sm:$0xff]  ;;  %v4240_v11 = vadd.f32 -0.225, %v3759_v46  ;;  %v3760_v1 = vadd.f32 %v3752_v27, %v3744_v62  ;;  %v3791_v63 = vmul.f32 1.442695, %v3780_v5  ;;  %v3857_v26 = vsub.f32 0.0, %v3849_v51 }
 0x6ea   : > { %v3758_v52 = vadd.f32 %v3750_v37, %v3742_v23  ;;  %v4238_v43 = vadd.f32 -0.225, %v3757_v15  ;;  %v3787_v35 = vmul.f32 1.442695, %v3778_v4  ;;  %5521 = vpow2.f32 %v3785_v55 }
 0x6eb   : > { %v3775_v56 = vmul.f32 50.0, %v4240_v11  ;;  %v4241_v57 = vadd.f32 -0.225, %v3760_v1  ;;  %v3837_v17 = vmul.f32 1.0404, %v3757_v15  ;;  %v3858_v41 = vsub.f32 0.0, %v3850_v24 }
 0x6ec   : > { %v4239_v7 = vadd.f32 -0.225, %v3758_v52  ;;  %v3773_v36 = vmul.f32 50.0, %v4238_v43  ;;  %5523 = vpow2.f32 %v3787_v35  ;;  %v4245_v22 = vadd.f32 -0.225, %v3836_v9 }
 0x6ed   : > { %v3783_v44 = vsub.f32 0.0, %v3775_v56  ;;  %v3776_v39 = vmul.f32 50.0, %v4241_v57  ;;  %5525 = vpow2.f32 %v3789_v14  ;;  %v3838_v29 = vmul.f32 1.0404, %v3758_v52 }
 0x6ee   : > { %v3774_v49 = vmul.f32 50.0, %v4239_v7  ;;  %v3781_v3 = vsub.f32 0.0, %v3773_v36  ;;  %5527 = vpow2.f32 %v3791_v63  ;;  %v4246_v10 = vadd.f32 -0.225, %v3837_v17 }
 0x6ef   : > { %v3797_v40 = vmul.f32 1.442695, %v3783_v44  ;;  %v3784_v31 = vsub.f32 0.0, %v3776_v39  ;;  %v3839_v2 = vmul.f32 1.0404, %v3759_v46  ;;  %v3851_v20 = vmul.f32 50.0, %v4244_v19 }
 0x6f0   : > { %v3782_v53 = vsub.f32 0.0, %v3774_v49  ;;  %v3793_v50 = vmul.f32 1.442695, %v3781_v3  ;;  %v3865_v42 = vmul.f32 1.442695, %v3857_v26  ;;  %v3852_v6 = vmul.f32 50.0, %v4245_v22 }
 0x6f1   : > { %v3799_v25 = vmul.f32 1.442695, %v3784_v31  ;;  %v3840_v60 = vmul.f32 1.0404, %v3760_v1  ;;  %v3867_v0 = vmul.f32 1.442695, %v3858_v41 }
 0x6f2   : > { %v3795_v18 = vmul.f32 1.442695, %v3782_v53  ;;  %5529 = vpow2.f32 %v3793_v50  ;;  %v4247_v45 = vadd.f32 -0.225, %v3838_v29  ;;  %v3853_v21 = vmul.f32 50.0, %v4246_v10 }
 0x6f3   : > { %v4248_v28 = vadd.f32 -0.225, %v3839_v2  ;;  %v3859_v12 = vsub.f32 0.0, %v3851_v20  ;;  %v4249_v48 = vadd.f32 -0.225, %v3840_v60  ;;  %v3860_v27 = vsub.f32 0.0, %v3852_v6 }
 0x6f4   : > { %5531 = vpow2.f32 %v3795_v18  ;;  %v5522_v32 = vpop.eup %5521  ;;  %v3854_v33 = vmul.f32 50.0, %v4247_v45  ;;  %v3861_v7 = vsub.f32 0.0, %v3853_v21 }
 0x6f5   : > { %5533 = vpow2.f32 %v3797_v40  ;;  %v3801_v37 = vadd.f32 1.0, %v5522_v32  ;;  %v3855_v16 = vmul.f32 50.0, %v4248_v28  ;;  %v3856_v1 = vmul.f32 50.0, %v4249_v48 }
 0x6f6   : > { %5535 = vpow2.f32 %v3799_v25  ;;  %v5524_v23 = vpop.eup %5523  ;;  %v3869_v36 = vmul.f32 1.442695, %v3859_v12  ;;  %v3871_v55 = vmul.f32 1.442695, %v3860_v27  ;;  %v3862_v5 = vsub.f32 0.0, %v3854_v33 }
 0x6f7   : > { %5537 = vpow2.f32 %v3865_v42  ;;  %v5526_v15 = vpop.eup %5525  ;;  %v3802_v38 = vadd.f32 1.0, %v5524_v23  ;;  %v3873_v56 = vmul.f32 1.442695, %v3861_v7  ;;  %v3863_v57 = vsub.f32 0.0, %v3855_v16 }
 0x6f8   : > { %5539 = vpow2.f32 %v3867_v0  ;;  %v5528_v52 = vpop.eup %5527  ;;  %v3803_v58 = vadd.f32 1.0, %v5526_v15  ;;  %v3864_v35 = vsub.f32 0.0, %v3856_v1  ;;  %v3875_v63 = vmul.f32 1.442695, %v3862_v5 }
 0x6f9   : > { %5541 = vrcp.f32 %v3801_v37  ;;  %v3804_v62 = vadd.f32 1.0, %v5528_v52  ;;  %v3877_v50 = vmul.f32 1.442695, %v3863_v57 }
 0x6fa   : > { %5543 = vrcp.f32 %v3802_v38  ;;  %v3879_v54 = vmul.f32 1.442695, %v3864_v35 }
 0x6fb   : > { %5545 = vrcp.f32 %v3803_v58 }
 0x6fc   : > { %v5530_v46 = vpop.eup %5529  ;;  %5547 = vrcp.f32 %v3804_v62 }
 0x6fd   : > { %v3805_v43 = vadd.f32 1.0, %v5530_v46 }
 0x6fe   : > { %v5532_v8 = vpop.eup %5531 }
 0x6ff   : > { %v5534_v61 = vpop.eup %5533  ;;  %v3806_v11 = vadd.f32 1.0, %v5532_v8  ;;  %5549 = vrcp.f32 %v3805_v43 }
 0x700   : > { %v5536_v4 = vpop.eup %5535  ;;  %v3807_v34 = vadd.f32 1.0, %v5534_v61 }
 0x701   : > { %5551 = vrcp.f32 %v3806_v11  ;;  %v3808_v49 = vadd.f32 1.0, %v5536_v4  ;;  %v5538_v14 = vpop.eup %5537 }
 0x702   : > { %5553 = vrcp.f32 %v3807_v34  ;;  %v5540_v3 = vpop.eup %5539  ;;  %v3881_v53 = vadd.f32 1.0, %v5538_v14 }
 0x703   : > { %5555 = vrcp.f32 %v3808_v49  ;;  %v5542_v44 = vpop.eup %5541  ;;  %v3882_v39 = vadd.f32 1.0, %v5540_v3 }
 0x704   : > { %5557 = vpow2.f32 %v3869_v36  ;;  %v5544_v18 = vpop.eup %5543  ;;  %3825 = vst [vmem:[%s6532_s29] sm:$0xff] %v5542_v44 }
 0x705   : > { %5559 = vpow2.f32 %v3871_v55  ;;  %v5546_v40 = vpop.eup %5545  ;;  %3826 = vst [vmem:[%s6532_s29 + $0x8] sm:$0xff] %v5544_v18 }
 0x706   : > { %5561 = vpow2.f32 %v3873_v56  ;;  %v5548_v31 = vpop.eup %5547  ;;  %3827 = vst [vmem:[%s6532_s29 + $0x10] sm:$0xff] %v5546_v40 }
 0x707   : > { %5563 = vrcp.f32 %v3881_v53  ;;  %3828 = vst [vmem:[%s6532_s29 + $0x18] sm:$0xff] %v5548_v31 }
 0x708   : > { %5565 = vrcp.f32 %v3882_v39 }
 0x709   : > { %5567 = vpow2.f32 %v3875_v63  ;;  %v5550_v47 = vpop.eup %5549 }
 0x70a   : > { %5569 = vpow2.f32 %v3877_v50  ;;  %3829 = vst [vmem:[%s6532_s29 + $0x20] sm:$0xff] %v5550_v47 }
 0x70b   : > { %v5552_v30 = vpop.eup %5551  ;;  %5571 = vpow2.f32 %v3879_v54 }
 0x70c   : > { %v5554_v59 = vpop.eup %5553  ;;  %3830 = vst [vmem:[%s6532_s29 + $0x28] sm:$0xff] %v5552_v30 }
 0x70d   : > { %v5556_v9 = vpop.eup %5555  ;;  %3831 = vst [vmem:[%s6532_s29 + $0x30] sm:$0xff] %v5554_v59 }
 0x70e   : > { %v5558_v25 = vpop.eup %5557  ;;  %3832 = vst [vmem:[%s6532_s29 + $0x38] sm:$0xff] %v5556_v9 }
 0x70f   : > { %v5560_v13 = vpop.eup %5559  ;;  %v3883_v17 = vadd.f32 1.0, %v5558_v25 }
 0x710   : > { %v5562_v51 = vpop.eup %5561  ;;  %v3884_v19 = vadd.f32 1.0, %v5560_v13 }
 0x711   : > { %v5564_v24 = vpop.eup %5563  ;;  %5573 = vrcp.f32 %v3883_v17  ;;  %v3885_v22 = vadd.f32 1.0, %v5562_v51 }
 0x712   : > { %v5566_v29 = vpop.eup %5565  ;;  %3905 = vst [vmem:[%s6534_s2] sm:$0xff] %v5564_v24  ;;  %5575 = vrcp.f32 %v3884_v19 }
 0x713   : > { %v5568_v26 = vpop.eup %5567  ;;  %3906 = vst [vmem:[%s6534_s2 + $0x8] sm:$0xff] %v5566_v29  ;;  %5577 = vrcp.f32 %v3885_v22 }
 0x714   : > { %v5570_v10 = vpop.eup %5569  ;;  %v3886_v41 = vadd.f32 1.0, %v5568_v26 }
 0x715   : > { %v5572_v2 = vpop.eup %5571  ;;  %v3887_v42 = vadd.f32 1.0, %v5570_v10 }
 0x716   : > { %5579 = vrcp.f32 %v3886_v41  ;;  %v3888_v20 = vadd.f32 1.0, %v5572_v2 }
 0x717   : > { %5581 = vrcp.f32 %v3887_v42 }
 0x718   : > { %5583 = vrcp.f32 %v3888_v20 }
 0x71b   : > { %v5574_v60 = vpop.eup %5573 }
 0x71c   : > { %v5576_v32 = vpop.eup %5575  ;;  %3907 = vst [vmem:[%s6534_s2 + $0x10] sm:$0xff] %v5574_v60 }
 0x71d   : > { %v5578_v0 = vpop.eup %5577  ;;  %3908 = vst [vmem:[%s6534_s2 + $0x18] sm:$0xff] %v5576_v32 }
 0x71e   : > { %3909 = vst [vmem:[%s6534_s2 + $0x20] sm:$0xff] %v5578_v0 }
 0x720   : > { %v5580_v6 = vpop.eup %5579 }
 0x721   : > { %v5582_v45 = vpop.eup %5581  ;;  %3910 = vst [vmem:[%s6534_s2 + $0x28] sm:$0xff] %v5580_v6 }
 0x722   : > { %v5584_v23 = vpop.eup %5583  ;;  %3911 = vst [vmem:[%s6534_s2 + $0x30] sm:$0xff] %v5582_v45 }
 0x723   : > { %3912 = vst [vmem:[%s6534_s2 + $0x38] sm:$0xff] %v5584_v23 }
 0x724 PF: > { %s8240_s22 = sld [smem:[#allocation36_spill]]  ;;  %s3932_s5 = sshll.u32 %s6532_s29, 4  ;;  %s7769_s5 = int_to_ptr.vmem [resolvable:$true] %s3932_s5 }
 0x725   : > { %s8241_s1 = sld [smem:[#allocation81_spill]]  ;;  %s3914_s25 = scalar_lea.sflag [#allocation7], %s6510_s19 }
 0x726   : > { %s5828_s8 = scalar_lea.vmem %s7769_s5, 1024  ;;  %p8242_p12 = scmp.ne.s32.totalorder %s8012_s11, 0 }
 0x727   : > { %p5829_p5 = scmp.ne.s32.totalorder %s7769_s5, %s5828_s8  ;;  %s6024_s28 = smov [#allocation21]  }
 0x728   : > { %s5832_s27 = sshll.u32 %s6024_s28, 4  ;;  %s5833_s27 = int_to_ptr.vmem [resolvable:$false] %s5832_s27 }
 0x729   : > { %p5830_p2 = pnand %p5829_p5, %p8242_p12  ;;  %s5834_s10 = scalar_lea.vmem %s5833_s27, 2048 }
 0x72a   : > { %s4261_s13 = sshll.u32 %s8240_s22, 10  ;;  %p5835_p0 = scmp.lt.s32.totalorder %s7769_s5, %s5833_s27 }
 0x72b   : > { %s7766_s4 = scalar_lea.hbm %s8241_s1, %s4261_s13  ;;  %p5831_p10 = pneg %p5830_p2 }
 0x72c   : > { %p5836_p7 = scmp.lt.s32.totalorder %s5834_s10, %s5828_s8 }
 0x72e   : > { %p5837_p9 = por %p5836_p7, %p5835_p0 }
 0x730   : > { %p5838_p1 = pnand %p5837_p9, %p5831_p10 }
 0x732   : > { %5841 = shalt.err (!%p5838_p1)
}
 0x733   : > { %s5842_s6 = scalar_lea.hbm %s7766_s4, 1024  ;;  %s5846_s29 = scalar_lea.hbm %s8241_s1, 2048 }
 0x734   : > { %p5843_p13 = scmp.ne.s32.totalorder %s7766_s4, %s5842_s6  ;;  %p5847_p8 = scmp.lt.u32.totalorder %s7766_s4, %s8241_s1 }
 0x735   : > { %p5848_p11 = scmp.lt.u32.totalorder %s5846_s29, %s5842_s6  ;;  %p5850_p5 = scmp.lt.u32.totalorder %s5842_s6, %s7766_s4 }
 0x736   : > { %p5844_p4 = pnand %p5843_p13, %p8242_p12 }
 0x737   : > { %p5849_p3 = por %p5848_p11, %p5847_p8 }
 0x738   : > { %p5845_p6 = pneg %p5844_p4 }
 0x739   : > { %p5851_p2 = por %p5850_p5, %p5849_p3 }
 0x73b   : > { %p5852_p10 = pnand %p5851_p2, %p5845_p6 }
 0x73d   : > { %5855 = shalt.err (!%p5852_p10)
}
 0x73e   : > { %s6025_s0 = smov 128   ;;  %s6026_s9 = smov 8  }
 0x73f   : > { %5339 = dma.vmem_to_hbm [thread:$0]  (%p8242_p12), %s7769_s5, 1024, %s7766_s4, %s3914_s25, %s6025_s0, %s6025_s0, %s6026_s9  }
 0x740   : > { %s8243_s28 = sld [smem:[#allocation82_spill]]  ;;  %s3948_s10 = sshll.u32 %s6534_s2, 4  ;;  %s7806_s10 = int_to_ptr.vmem [resolvable:$true] %s3948_s10 }
 0x741   : > { %s3919_s6 = scalar_lea.sflag [#allocation23], %s6510_s19  ;;  %s5856_s24 = scalar_lea.vmem %s7806_s10, 1024 }
 0x742   : > { %p5857_p0 = scmp.ne.s32.totalorder %s7806_s10, %s5856_s24  ;;  %s6027_s26 = smov [#allocation22]  }
 0x743   : > { %s5860_s4 = sshll.u32 %s6027_s26, 4  ;;  %s5861_s4 = int_to_ptr.vmem [resolvable:$false] %s5860_s4 }
 0x744   : > { %p5858_p7 = pnand %p5857_p0, %p8242_p12  ;;  %s5862_s22 = scalar_lea.vmem %s5861_s4, 2048 }
 0x745   : > { %p5863_p1 = scmp.lt.s32.totalorder %s7806_s10, %s5861_s4  ;;  %p5864_p13 = scmp.lt.s32.totalorder %s5862_s22, %s5856_s24 }
 0x746   : > { %s7803_s27 = scalar_lea.hbm %s8243_s28, %s4261_s13  ;;  %p5859_p9 = pneg %p5858_p7 }
 0x747   : > { %p5865_p4 = por %p5864_p13, %p5863_p1 }
 0x749   : > { %p5866_p6 = pnand %p5865_p4, %p5859_p9 }
 0x74b   : > { %5869 = shalt.err (!%p5866_p6)
}
 0x74c   : > { %s5870_s2 = scalar_lea.hbm %s7803_s27, 1024  ;;  %s5874_s25 = scalar_lea.hbm %s8243_s28, 2048 }
 0x74d   : > { %p5871_p8 = scmp.ne.s32.totalorder %s7803_s27, %s5870_s2  ;;  %p5875_p5 = scmp.lt.u32.totalorder %s7803_s27, %s8243_s28 }
 0x74e   : > { %p5876_p2 = scmp.lt.u32.totalorder %s5874_s25, %s5870_s2  ;;  %p5878_p0 = scmp.lt.u32.totalorder %s5870_s2, %s7803_s27 }
 0x74f   : > { %p5872_p11 = pnand %p5871_p8, %p8242_p12 }
 0x750   : > { %p5877_p10 = por %p5876_p2, %p5875_p5 }
 0x751   : > { %p5873_p3 = pneg %p5872_p11 }
 0x752   : > { %p5879_p7 = por %p5878_p0, %p5877_p10 }
 0x754   : > { %p5880_p9 = pnand %p5879_p7, %p5873_p3 }
 0x756   : > { %5883 = shalt.err (!%p5880_p9)
}
 0x757   : > { %5340 = dma.vmem_to_hbm [thread:$0]  (%p8242_p12), %s7806_s10, 1024, %s7803_s27, %s3919_s6, %s6025_s0, %s6025_s0, %s6026_s9  }
 0x758 PF: > { %s8244_s12 = sld [smem:[#allocation34_spill]]  ;;  %s8245_s16 = sld [smem:[#allocation39_spill]] }
 0x759   : > { %p5392_p1 = scmp.ge.s32.totalorder %s6006_s23, 2 }
 0x75e   : > { %s3963_s8 = sand.u32 1, %s8244_s12   ;;  %p8246_p13 = scmp.ne.s32.totalorder %s8245_s16, 0 }
 0x75f   : > { %s3964_s24 = scalar_lea.sflag [#allocation7], %s3963_s8 }
 0x760   : > { %p5373_p4 = pnand %p5392_p1, %p8246_p13 }
 0x762   : > { %5957 = dma.done.wait (!%p5373_p4), %s3964_s24, 1024  }
 0x763   : > { %5959 = vsyncadd (!%p5373_p4), %s3964_s24, 4294966272  ;;  %s3973_s11 = scalar_lea.sflag [#allocation23], %s3963_s8 }
 0x764   : > { %5961 = dma.done.wait (!%p5373_p4), %s3973_s11, 1024  }
 0x765   : > { %5963 = vsyncadd (!%p5373_p4), %s3973_s11, 4294966272  ;;  %s37_s23 = sadd.s32 1, %s6006_s23   ;;  %s8247_s0 = sld [smem:[#allocation37_spill]] }
 0x766   : > { %p34_p6 = scmp.ge.s32.totalorder %s37_s23, 10   ;;  %s8248_s9 = sld [smem:[#allocation40_spill]] }
 0x767   : > { %s8249_s22 = sld [smem:[#allocation41_spill]]  ;;  %s8250_s13 = smov %s5970_s14 }
 0x768   : > { %s8251_s14 = smov %s5974_s15  ;;  %s8252_s15 = smov %s6396_s20 }
 0x769   : > { %s8253_s16 = smov %s5982_s17  ;;  %s8254_s17 = smov %s5986_s18 }
 0x76a   : > { %s8255_s18 = smov %s6410_s3  ;;  %s8256_s19 = smov %s5998_s21 }
 0x76b   : > { %s8257_s20 = smov %s8247_s0  ;;  %36 = sbr.rel (!%p34_p6) target bundleno = 29 (0x1d), region = 176 }
 0x76c   : > { %s8258_s21 = smov %s8248_s9 }
 0x772   :  { %3978 = vsyncpa [#allocation6], 1 }
 0x773   :  { %3980 = vsyncpa [#allocation6 + $0x1], 1 }
 0x774   :  { %3981 = vsyncpa [#allocation11], 1 }
 0x775   :  { %3982 = vsyncpa [#allocation14], 1 }
 0x776   :  { %3983 = vsyncpa [#allocation17], 1 }
 0x777   :  { %3985 = vsyncpa [#allocation17 + $0x1], 1 }
 0x778   :  { %3986 = vsyncpa [#allocation20], 1 }
 0x779   :  { %3988 = vsyncpa [#allocation20 + $0x1], 1 }
 0x77a   :  { %3989 = vsyncpa [#allocation7], 1 }
 0x77b   :  { %3991 = vsyncpa [#allocation7 + $0x1], 1 }
 0x77c   :  { %3992 = vsyncpa [#allocation23], 1 }
 0x77d   :  { %3994 = vsyncpa [#allocation23 + $0x1], 1 }
 0x77e   :  { %3995 = vsyncpa [#allocation8], 1 }
 0x77f   :  { %3997 = vsyncpa [#allocation8 + $0x1], 1 }

</bundles_post_ra>
